<compile_context>
chip_gen: v5e
topology: v5e:2x2
jax: 0.10.0
libtpu: 0.0.40
codegen_flags: <defaults>
</compile_context>

<pallas_src>
import functools

import jax
import jax.numpy as jnp
from jax.experimental import pallas as pl
from jax.experimental.pallas import tpu as pltpu


_CHUNK_C = 8  # channels per chunk: one sublane tile; bounds live vregs.


def _flat_to_padded_plane(flat, h, w, pad_h, pad_w):
    """(1, h*w) lane-flat pooled map -> zero-padded (h+2*pad_h, w+2*pad_w)."""
    wp = w + 2 * pad_w
    zrow = jnp.zeros((1, wp), jnp.float32)
    zcol = jnp.zeros((1, pad_w), jnp.float32) if pad_w else None
    rows = [zrow] * pad_h
    for r in range(h):
        row = jax.lax.slice(flat, (0, r * w), (1, r * w + w))       # (1, w)
        if pad_w:
            row = jnp.concatenate([zcol, row, zcol], axis=1)        # (1, wp)
        rows.append(row)
    rows.extend([zrow] * pad_h)
    return jnp.concatenate(rows, axis=0)                            # (hp, wp)


def _plane_to_flat(plane, h, w):
    """(h, w) gate plane -> (1, h*w) lane-flat row for lane-dense stores."""
    rows = [jax.lax.slice(plane, (r, 0), (r + 1, w)) for r in range(h)]
    return jnp.concatenate(rows, axis=1)                            # (1, h*w)


def _spatial_gate_kernel(x_ref, w_ref, b_ref, o_ref, *,
                         nb, c, h, w, kh, kw, pad_h, pad_w):
    # x_ref/o_ref: (nb, C, H*W) VMEM blocks (H*W on the lane axis).
    # w_ref: (2*KH*KW,) SMEM  BN-scale-folded conv weights, [ci, i, j] flat.
    # b_ref: (1,)       SMEM  folded BN bias.
    hw = h * w
    hp = h + 2 * pad_h

    for b in range(nb):                       # static unroll over images
        # --- ChannelPool: max & mean over C, streamed 8 channels at a time ---
        cmax = None
        csum = None
        for c0 in range(0, c, _CHUNK_C):
            cs = min(_CHUNK_C, c - c0)
            xb = x_ref[b, pl.ds(c0, cs), :]                        # (cs, HW)
            bmax = jnp.max(xb, axis=0, keepdims=True)              # (1, HW)
            bsum = jnp.sum(xb.astype(jnp.float32), axis=0, keepdims=True)
            cmax = bmax if cmax is None else jnp.maximum(cmax, bmax)
            csum = bsum if csum is None else csum + bsum
        cmean = csum * (1.0 / c)                                   # (1, HW) f32
        cmax = cmax.astype(jnp.float32)

        # --- tiny layout crossing: flat pooled maps -> padded (H, W) planes --
        planes = (_flat_to_padded_plane(cmax, h, w, pad_h, pad_w),
                  _flat_to_padded_plane(cmean, h, w, pad_h, pad_w))

        # --- KHxKW conv, Cin=2 -> Cout=1, unrolled VPU MACs.  Lane shifts are
        #     hoisted (kw shifted copies per plane); inner loop takes sublane
        #     slices only; 4 partial accumulators break the serial add chain. -
        accs = [jnp.zeros((h, w), jnp.float32) for _ in range(4)]
        t = 0
        for ci in range(2):
            padded = planes[ci]                                    # (Hp, Wp)
            shifted = [jax.lax.slice(padded, (0, j), (hp, j + w))  # (Hp, W)
                       for j in range(kw)]
            for j in range(kw):
                sj = shifted[j]
                for i in range(kh):
                    tap = jax.lax.slice(sj, (i, 0), (i + h, w))    # (H, W)
                    wt = w_ref[ci * kh * kw + i * kw + j]
                    accs[t % 4] = accs[t % 4] + wt * tap
                    t += 1
        acc = (accs[0] + accs[1]) + (accs[2] + accs[3])

        # --- folded BN bias + sigmoid (exp & reciprocal use the EUP slot) ----
        z = acc + b_ref[0]
        gate = pl.reciprocal(1.0 + jnp.exp(-z), approx=False)      # (H, W) f32
        gate_flat = _plane_to_flat(gate, h, w).astype(x_ref.dtype)  # (1, HW)

        # --- gated output: lane-dense stores, 8-channel chunks ---------------
        for c0 in range(0, c, _CHUNK_C):
            cs = min(_CHUNK_C, c - c0)
            xb = x_ref[b, pl.ds(c0, cs), :]                        # (cs, HW)
            o_ref[b, pl.ds(c0, cs), :] = (xb * gate_flat).astype(o_ref.dtype)


def _pick_batch_block(n, per_img_bytes):
    """Largest divisor of n whose per-step footprint fits a conservative
    budget (v5e's 16 MiB scoped-VMEM default), keeping >= 2 grid steps when
    n >= 2 so both v7x TensorCores get work."""
    budget = 8 * 1024 * 1024
    best = 1
    for nb in range(1, n + 1):
        if n % nb:
            continue
        if nb * per_img_bytes > budget:
            continue
        if n >= 2 and n // nb < 2:
            continue
        best = nb
    return best


def spatial_gate(x_nchw, conv_weight, gamma, beta, running_mean, running_var,
                 *, eps=1e-5):
    """SpatialGate forward: x * sigmoid(BN(conv_kxk(channel_pool(x))))."""
    n, c, h, w = x_nchw.shape
    cout, cin2, kh, kw = conv_weight.shape
    assert cout == 1 and cin2 == 2, "SpatialGate conv must be (1, 2, KH, KW)"
    assert kh % 2 == 1 and kw % 2 == 1, "odd kernel sizes only ('same' pad)"
    pad_h = (kh - 1) // 2
    pad_w = (kw - 1) // 2
    hw = h * w

    # Fold eval-mode BatchNorm into the conv weights and one bias scalar.
    scale = gamma / jnp.sqrt(running_var + eps)                         # (1,)
    bias = (beta - running_mean * scale).astype(jnp.float32)            # (1,)
    w_folded = (conv_weight[0] * scale[0]).reshape(-1).astype(jnp.float32)

    # Lane-dense layout: collapse (H, W) into one trailing H*W axis (free,
    # layout-preserving reshape in HBM).
    x_flat = x_nchw.reshape(n, c, hw)

    # Per-image VMEM footprint of one grid step: in + out, double-buffered.
    per_img = 2 * 2 * c * hw * x_nchw.dtype.itemsize
    nb = _pick_batch_block(n, per_img)

    kernel = functools.partial(
        _spatial_gate_kernel, nb=nb, c=c, h=h, w=w, kh=kh, kw=kw,
        pad_h=pad_h, pad_w=pad_w)

    out_flat = pl.pallas_call(
        kernel,
        out_shape=jax.ShapeDtypeStruct((n, c, hw), x_nchw.dtype),
        grid=(n // nb,),
        in_specs=[
            pl.BlockSpec((nb, c, hw), lambda i: (i, 0, 0)),
            pl.BlockSpec(memory_space=pltpu.MemorySpace.SMEM),   # folded weights
            pl.BlockSpec(memory_space=pltpu.MemorySpace.SMEM),   # folded bias
        ],
        out_specs=pl.BlockSpec((nb, c, hw), lambda i: (i, 0, 0)),
        compiler_params=pltpu.CompilerParams(
            dimension_semantics=("parallel",)),
    )(x_flat, w_folded, bias)

    return out_flat.reshape(n, c, h, w)


def _reference(x, wgt, gamma, beta, mean, var, *, eps=1e-5):
    cmax = jnp.max(x, axis=1, keepdims=True)
    cmean = jnp.mean(x, axis=1, keepdims=True)
    xc = jnp.concatenate([cmax, cmean], axis=1)                 # (N, 2, H, W)
    pad_h = (wgt.shape[2] - 1) // 2
    pad_w = (wgt.shape[3] - 1) // 2
    y = jax.lax.conv_general_dilated(
        xc, wgt, window_strides=(1, 1),
        padding=((pad_h, pad_h), (pad_w, pad_w)),
        dimension_numbers=("NCHW", "OIHW", "NCHW"))
    scale = gamma / jnp.sqrt(var + eps)
    bias = beta - mean * scale
    y = y * scale[None, :, None, None] + bias[None, :, None, None]
    return x * jax.nn.sigmoid(y)


if __name__ == "__main__":
    # SpatialGate on a small NCHW input.
    N, C, H, W = 2, 4, 16, 16
    KH = KW = 7

    key = jax.random.PRNGKey(0)
    kx, kw_, kg, kb, km, kv = jax.random.split(key, 6)

    x = jax.random.normal(kx, (N, C, H, W), jnp.float32)
    conv_weight = jax.random.normal(kw_, (1, 2, KH, KW), jnp.float32) * 0.1
    gamma = 1.0 + 0.1 * jax.random.normal(kg, (1,), jnp.float32)
    beta = 0.1 * jax.random.normal(kb, (1,), jnp.float32)
    running_mean = 0.1 * jax.random.normal(km, (1,), jnp.float32)
    running_var = jnp.abs(1.0 + 0.1 * jax.random.normal(kv, (1,), jnp.float32))

    out = spatial_gate(x, conv_weight, gamma, beta, running_mean, running_var)
    out = jax.block_until_ready(out)

    ref = _reference(x, conv_weight, gamma, beta, running_mean, running_var)
    assert out.shape == (N, C, H, W), out.shape
    assert jnp.allclose(out, ref, atol=1e-4, rtol=1e-4), \
        float(jnp.max(jnp.abs(out - ref)))

    print("KERNEL_OK")
</pallas_src>

<mosaic_0001>
module attributes {stable_mosaic.version = 11 : i64} {
  func.func @_spatial_gate_kernel(%arg0: i32, %arg1: memref<1x4x256xf32, #tpu.memory_space<vmem>>, %arg2: memref<98xf32, #tpu.memory_space<smem>>, %arg3: memref<1xf32, #tpu.memory_space<smem>>, %arg4: memref<1x4x256xf32, #tpu.memory_space<vmem>>) attributes {dimension_semantics = [#tpu.dimension_semantics<parallel>], iteration_bounds = array<i64: 2>, scalar_prefetch = 0 : i64, scratch_operands = 0 : i64, tpu.core_type = #tpu.core_type<tc>, window_params = [{transform_indices = @transform_0, window_bounds = array<i64: 1, 4, 256>}, {transform_indices = @transform_1, window_bounds = array<i64: 98>}, {transform_indices = @transform_2, window_bounds = array<i64: 1>}, {transform_indices = @transform_3, window_bounds = array<i64: 1, 4, 256>}]} {
    %c0 = arith.constant 0 : index
    %c0_0 = arith.constant 0 : index
    %c0_1 = arith.constant 0 : index
    %0 = vector.load %arg1[%c0, %c0_0, %c0_1] : memref<1x4x256xf32, #tpu.memory_space<vmem>>, vector<1x4x256xf32>
    %1 = vector.shape_cast %0 : vector<1x4x256xf32> to vector<4x256xf32>
    %cst = arith.constant dense<0xFF800000> : vector<256xf32>
    %2 = vector.multi_reduction <maximumf>, %1, %cst [0] : vector<4x256xf32> to vector<256xf32>
    %3 = vector.shape_cast %2 : vector<256xf32> to vector<1x256xf32>
    %cst_2 = arith.constant dense<0.000000e+00> : vector<256xf32>
    %4 = vector.multi_reduction <add>, %1, %cst_2 [0] : vector<4x256xf32> to vector<256xf32>
    %5 = vector.shape_cast %4 : vector<256xf32> to vector<1x256xf32>
    %cst_3 = arith.constant 2.500000e-01 : f32
    %6 = vector.broadcast %cst_3 : f32 to vector<1x256xf32>
    %7 = arith.mulf %5, %6 : vector<1x256xf32>
    %cst_4 = arith.constant 0.000000e+00 : f32
    %8 = vector.broadcast %cst_4 : f32 to vector<1x22xf32>
    %cst_5 = arith.constant 0.000000e+00 : f32
    %9 = vector.broadcast %cst_5 : f32 to vector<1x3xf32>
    %10 = vector.extract_strided_slice %3 {offsets = [0, 0], sizes = [1, 16], strides = [1, 1]} : vector<1x256xf32> to vector<1x16xf32>
    %11 = tpu.concatenate %9, %10, %9 in 1 : vector<1x3xf32>, vector<1x16xf32>, vector<1x3xf32> -> vector<1x22xf32>
    %12 = vector.extract_strided_slice %3 {offsets = [0, 16], sizes = [1, 16], strides = [1, 1]} : vector<1x256xf32> to vector<1x16xf32>
    %13 = tpu.concatenate %9, %12, %9 in 1 : vector<1x3xf32>, vector<1x16xf32>, vector<1x3xf32> -> vector<1x22xf32>
    %14 = vector.extract_strided_slice %3 {offsets = [0, 32], sizes = [1, 16], strides = [1, 1]} : vector<1x256xf32> to vector<1x16xf32>
    %15 = tpu.concatenate %9, %14, %9 in 1 : vector<1x3xf32>, vector<1x16xf32>, vector<1x3xf32> -> vector<1x22xf32>
    %16 = vector.extract_strided_slice %3 {offsets = [0, 48], sizes = [1, 16], strides = [1, 1]} : vector<1x256xf32> to vector<1x16xf32>
    %17 = tpu.concatenate %9, %16, %9 in 1 : vector<1x3xf32>, vector<1x16xf32>, vector<1x3xf32> -> vector<1x22xf32>
    %18 = vector.extract_strided_slice %3 {offsets = [0, 64], sizes = [1, 16], strides = [1, 1]} : vector<1x256xf32> to vector<1x16xf32>
    %19 = tpu.concatenate %9, %18, %9 in 1 : vector<1x3xf32>, vector<1x16xf32>, vector<1x3xf32> -> vector<1x22xf32>
    %20 = vector.extract_strided_slice %3 {offsets = [0, 80], sizes = [1, 16], strides = [1, 1]} : vector<1x256xf32> to vector<1x16xf32>
    %21 = tpu.concatenate %9, %20, %9 in 1 : vector<1x3xf32>, vector<1x16xf32>, vector<1x3xf32> -> vector<1x22xf32>
    %22 = vector.extract_strided_slice %3 {offsets = [0, 96], sizes = [1, 16], strides = [1, 1]} : vector<1x256xf32> to vector<1x16xf32>
    %23 = tpu.concatenate %9, %22, %9 in 1 : vector<1x3xf32>, vector<1x16xf32>, vector<1x3xf32> -> vector<1x22xf32>
    %24 = vector.extract_strided_slice %3 {offsets = [0, 112], sizes = [1, 16], strides = [1, 1]} : vector<1x256xf32> to vector<1x16xf32>
    %25 = tpu.concatenate %9, %24, %9 in 1 : vector<1x3xf32>, vector<1x16xf32>, vector<1x3xf32> -> vector<1x22xf32>
    %26 = vector.extract_strided_slice %3 {offsets = [0, 128], sizes = [1, 16], strides = [1, 1]} : vector<1x256xf32> to vector<1x16xf32>
    %27 = tpu.concatenate %9, %26, %9 in 1 : vector<1x3xf32>, vector<1x16xf32>, vector<1x3xf32> -> vector<1x22xf32>
    %28 = vector.extract_strided_slice %3 {offsets = [0, 144], sizes = [1, 16], strides = [1, 1]} : vector<1x256xf32> to vector<1x16xf32>
    %29 = tpu.concatenate %9, %28, %9 in 1 : vector<1x3xf32>, vector<1x16xf32>, vector<1x3xf32> -> vector<1x22xf32>
    %30 = vector.extract_strided_slice %3 {offsets = [0, 160], sizes = [1, 16], strides = [1, 1]} : vector<1x256xf32> to vector<1x16xf32>
    %31 = tpu.concatenate %9, %30, %9 in 1 : vector<1x3xf32>, vector<1x16xf32>, vector<1x3xf32> -> vector<1x22xf32>
    %32 = vector.extract_strided_slice %3 {offsets = [0, 176], sizes = [1, 16], strides = [1, 1]} : vector<1x256xf32> to vector<1x16xf32>
    %33 = tpu.concatenate %9, %32, %9 in 1 : vector<1x3xf32>, vector<1x16xf32>, vector<1x3xf32> -> vector<1x22xf32>
    %34 = vector.extract_strided_slice %3 {offsets = [0, 192], sizes = [1, 16], strides = [1, 1]} : vector<1x256xf32> to vector<1x16xf32>
    %35 = tpu.concatenate %9, %34, %9 in 1 : vector<1x3xf32>, vector<1x16xf32>, vector<1x3xf32> -> vector<1x22xf32>
    %36 = vector.extract_strided_slice %3 {offsets = [0, 208], sizes = [1, 16], strides = [1, 1]} : vector<1x256xf32> to vector<1x16xf32>
    %37 = tpu.concatenate %9, %36, %9 in 1 : vector<1x3xf32>, vector<1x16xf32>, vector<1x3xf32> -> vector<1x22xf32>
    %38 = vector.extract_strided_slice %3 {offsets = [0, 224], sizes = [1, 16], strides = [1, 1]} : vector<1x256xf32> to vector<1x16xf32>
    %39 = tpu.concatenate %9, %38, %9 in 1 : vector<1x3xf32>, vector<1x16xf32>, vector<1x3xf32> -> vector<1x22xf32>
    %40 = vector.extract_strided_slice %3 {offsets = [0, 240], sizes = [1, 16], strides = [1, 1]} : vector<1x256xf32> to vector<1x16xf32>
    %41 = tpu.concatenate %9, %40, %9 in 1 : vector<1x3xf32>, vector<1x16xf32>, vector<1x3xf32> -> vector<1x22xf32>
    %42 = tpu.concatenate %8, %8, %8, %11, %13, %15, %17, %19, %21, %23, %25, %27, %29, %31, %33, %35 in 0 : vector<1x22xf32>, vector<1x22xf32>, vector<1x22xf32>, vector<1x22xf32>, vector<1x22xf32>, vector<1x22xf32>, vector<1x22xf32>, vector<1x22xf32>, vector<1x22xf32>, vector<1x22xf32>, vector<1x22xf32>, vector<1x22xf32>, vector<1x22xf32>, vector<1x22xf32>, vector<1x22xf32>, vector<1x22xf32> -> vector<16x22xf32>
    %43 = tpu.concatenate %37, %39, %41, %8, %8, %8 in 0 : vector<1x22xf32>, vector<1x22xf32>, vector<1x22xf32>, vector<1x22xf32>, vector<1x22xf32>, vector<1x22xf32> -> vector<6x22xf32>
    %44 = tpu.concatenate %42, %43 in 0 : vector<16x22xf32>, vector<6x22xf32> -> vector<22x22xf32>
    %cst_6 = arith.constant 0.000000e+00 : f32
    %45 = vector.broadcast %cst_6 : f32 to vector<1x22xf32>
    %cst_7 = arith.constant 0.000000e+00 : f32
    %46 = vector.broadcast %cst_7 : f32 to vector<1x3xf32>
    %47 = vector.extract_strided_slice %7 {offsets = [0, 0], sizes = [1, 16], strides = [1, 1]} : vector<1x256xf32> to vector<1x16xf32>
    %48 = tpu.concatenate %46, %47, %46 in 1 : vector<1x3xf32>, vector<1x16xf32>, vector<1x3xf32> -> vector<1x22xf32>
    %49 = vector.extract_strided_slice %7 {offsets = [0, 16], sizes = [1, 16], strides = [1, 1]} : vector<1x256xf32> to vector<1x16xf32>
    %50 = tpu.concatenate %46, %49, %46 in 1 : vector<1x3xf32>, vector<1x16xf32>, vector<1x3xf32> -> vector<1x22xf32>
    %51 = vector.extract_strided_slice %7 {offsets = [0, 32], sizes = [1, 16], strides = [1, 1]} : vector<1x256xf32> to vector<1x16xf32>
    %52 = tpu.concatenate %46, %51, %46 in 1 : vector<1x3xf32>, vector<1x16xf32>, vector<1x3xf32> -> vector<1x22xf32>
    %53 = vector.extract_strided_slice %7 {offsets = [0, 48], sizes = [1, 16], strides = [1, 1]} : vector<1x256xf32> to vector<1x16xf32>
    %54 = tpu.concatenate %46, %53, %46 in 1 : vector<1x3xf32>, vector<1x16xf32>, vector<1x3xf32> -> vector<1x22xf32>
    %55 = vector.extract_strided_slice %7 {offsets = [0, 64], sizes = [1, 16], strides = [1, 1]} : vector<1x256xf32> to vector<1x16xf32>
    %56 = tpu.concatenate %46, %55, %46 in 1 : vector<1x3xf32>, vector<1x16xf32>, vector<1x3xf32> -> vector<1x22xf32>
    %57 = vector.extract_strided_slice %7 {offsets = [0, 80], sizes = [1, 16], strides = [1, 1]} : vector<1x256xf32> to vector<1x16xf32>
    %58 = tpu.concatenate %46, %57, %46 in 1 : vector<1x3xf32>, vector<1x16xf32>, vector<1x3xf32> -> vector<1x22xf32>
    %59 = vector.extract_strided_slice %7 {offsets = [0, 96], sizes = [1, 16], strides = [1, 1]} : vector<1x256xf32> to vector<1x16xf32>
    %60 = tpu.concatenate %46, %59, %46 in 1 : vector<1x3xf32>, vector<1x16xf32>, vector<1x3xf32> -> vector<1x22xf32>
    %61 = vector.extract_strided_slice %7 {offsets = [0, 112], sizes = [1, 16], strides = [1, 1]} : vector<1x256xf32> to vector<1x16xf32>
    %62 = tpu.concatenate %46, %61, %46 in 1 : vector<1x3xf32>, vector<1x16xf32>, vector<1x3xf32> -> vector<1x22xf32>
    %63 = vector.extract_strided_slice %7 {offsets = [0, 128], sizes = [1, 16], strides = [1, 1]} : vector<1x256xf32> to vector<1x16xf32>
    %64 = tpu.concatenate %46, %63, %46 in 1 : vector<1x3xf32>, vector<1x16xf32>, vector<1x3xf32> -> vector<1x22xf32>
    %65 = vector.extract_strided_slice %7 {offsets = [0, 144], sizes = [1, 16], strides = [1, 1]} : vector<1x256xf32> to vector<1x16xf32>
    %66 = tpu.concatenate %46, %65, %46 in 1 : vector<1x3xf32>, vector<1x16xf32>, vector<1x3xf32> -> vector<1x22xf32>
    %67 = vector.extract_strided_slice %7 {offsets = [0, 160], sizes = [1, 16], strides = [1, 1]} : vector<1x256xf32> to vector<1x16xf32>
    %68 = tpu.concatenate %46, %67, %46 in 1 : vector<1x3xf32>, vector<1x16xf32>, vector<1x3xf32> -> vector<1x22xf32>
    %69 = vector.extract_strided_slice %7 {offsets = [0, 176], sizes = [1, 16], strides = [1, 1]} : vector<1x256xf32> to vector<1x16xf32>
    %70 = tpu.concatenate %46, %69, %46 in 1 : vector<1x3xf32>, vector<1x16xf32>, vector<1x3xf32> -> vector<1x22xf32>
    %71 = vector.extract_strided_slice %7 {offsets = [0, 192], sizes = [1, 16], strides = [1, 1]} : vector<1x256xf32> to vector<1x16xf32>
    %72 = tpu.concatenate %46, %71, %46 in 1 : vector<1x3xf32>, vector<1x16xf32>, vector<1x3xf32> -> vector<1x22xf32>
    %73 = vector.extract_strided_slice %7 {offsets = [0, 208], sizes = [1, 16], strides = [1, 1]} : vector<1x256xf32> to vector<1x16xf32>
    %74 = tpu.concatenate %46, %73, %46 in 1 : vector<1x3xf32>, vector<1x16xf32>, vector<1x3xf32> -> vector<1x22xf32>
    %75 = vector.extract_strided_slice %7 {offsets = [0, 224], sizes = [1, 16], strides = [1, 1]} : vector<1x256xf32> to vector<1x16xf32>
    %76 = tpu.concatenate %46, %75, %46 in 1 : vector<1x3xf32>, vector<1x16xf32>, vector<1x3xf32> -> vector<1x22xf32>
    %77 = vector.extract_strided_slice %7 {offsets = [0, 240], sizes = [1, 16], strides = [1, 1]} : vector<1x256xf32> to vector<1x16xf32>
    %78 = tpu.concatenate %46, %77, %46 in 1 : vector<1x3xf32>, vector<1x16xf32>, vector<1x3xf32> -> vector<1x22xf32>
    %79 = tpu.concatenate %45, %45, %45, %48, %50, %52, %54, %56, %58, %60, %62, %64, %66, %68, %70, %72 in 0 : vector<1x22xf32>, vector<1x22xf32>, vector<1x22xf32>, vector<1x22xf32>, vector<1x22xf32>, vector<1x22xf32>, vector<1x22xf32>, vector<1x22xf32>, vector<1x22xf32>, vector<1x22xf32>, vector<1x22xf32>, vector<1x22xf32>, vector<1x22xf32>, vector<1x22xf32>, vector<1x22xf32>, vector<1x22xf32> -> vector<16x22xf32>
    %80 = tpu.concatenate %74, %76, %78, %45, %45, %45 in 0 : vector<1x22xf32>, vector<1x22xf32>, vector<1x22xf32>, vector<1x22xf32>, vector<1x22xf32>, vector<1x22xf32> -> vector<6x22xf32>
    %81 = tpu.concatenate %79, %80 in 0 : vector<16x22xf32>, vector<6x22xf32> -> vector<22x22xf32>
    %cst_8 = arith.constant 0.000000e+00 : f32
    %82 = vector.broadcast %cst_8 : f32 to vector<16x16xf32>
    %cst_9 = arith.constant 0.000000e+00 : f32
    %83 = vector.broadcast %cst_9 : f32 to vector<16x16xf32>
    %cst_10 = arith.constant 0.000000e+00 : f32
    %84 = vector.broadcast %cst_10 : f32 to vector<16x16xf32>
    %cst_11 = arith.constant 0.000000e+00 : f32
    %85 = vector.broadcast %cst_11 : f32 to vector<16x16xf32>
    %86 = vector.extract_strided_slice %44 {offsets = [0, 0], sizes = [22, 16], strides = [1, 1]} : vector<22x22xf32> to vector<22x16xf32>
    %87 = vector.extract_strided_slice %44 {offsets = [0, 1], sizes = [22, 16], strides = [1, 1]} : vector<22x22xf32> to vector<22x16xf32>
    %88 = vector.extract_strided_slice %44 {offsets = [0, 2], sizes = [22, 16], strides = [1, 1]} : vector<22x22xf32> to vector<22x16xf32>
    %89 = vector.extract_strided_slice %44 {offsets = [0, 3], sizes = [22, 16], strides = [1, 1]} : vector<22x22xf32> to vector<22x16xf32>
    %90 = vector.extract_strided_slice %44 {offsets = [0, 4], sizes = [22, 16], strides = [1, 1]} : vector<22x22xf32> to vector<22x16xf32>
    %91 = vector.extract_strided_slice %44 {offsets = [0, 5], sizes = [22, 16], strides = [1, 1]} : vector<22x22xf32> to vector<22x16xf32>
    %92 = vector.extract_strided_slice %44 {offsets = [0, 6], sizes = [22, 16], strides = [1, 1]} : vector<22x22xf32> to vector<22x16xf32>
    %93 = vector.extract_strided_slice %86 {offsets = [0, 0], sizes = [16, 16], strides = [1, 1]} : vector<22x16xf32> to vector<16x16xf32>
    %c0_12 = arith.constant 0 : index
    %94 = memref.load %arg2[%c0_12] : memref<98xf32, #tpu.memory_space<smem>>
    %95 = vector.broadcast %94 : f32 to vector<16x16xf32>
    %96 = arith.mulf %95, %93 : vector<16x16xf32>
    %97 = arith.addf %82, %96 : vector<16x16xf32>
    %98 = vector.extract_strided_slice %86 {offsets = [1, 0], sizes = [16, 16], strides = [1, 1]} : vector<22x16xf32> to vector<16x16xf32>
    %c7 = arith.constant 7 : index
    %99 = memref.load %arg2[%c7] : memref<98xf32, #tpu.memory_space<smem>>
    %100 = vector.broadcast %99 : f32 to vector<16x16xf32>
    %101 = arith.mulf %100, %98 : vector<16x16xf32>
    %102 = arith.addf %83, %101 : vector<16x16xf32>
    %103 = vector.extract_strided_slice %86 {offsets = [2, 0], sizes = [16, 16], strides = [1, 1]} : vector<22x16xf32> to vector<16x16xf32>
    %c14 = arith.constant 14 : index
    %104 = memref.load %arg2[%c14] : memref<98xf32, #tpu.memory_space<smem>>
    %105 = vector.broadcast %104 : f32 to vector<16x16xf32>
    %106 = arith.mulf %105, %103 : vector<16x16xf32>
    %107 = arith.addf %84, %106 : vector<16x16xf32>
    %108 = vector.extract_strided_slice %86 {offsets = [3, 0], sizes = [16, 16], strides = [1, 1]} : vector<22x16xf32> to vector<16x16xf32>
    %c21 = arith.constant 21 : index
    %109 = memref.load %arg2[%c21] : memref<98xf32, #tpu.memory_space<smem>>
    %110 = vector.broadcast %109 : f32 to vector<16x16xf32>
    %111 = arith.mulf %110, %108 : vector<16x16xf32>
    %112 = arith.addf %85, %111 : vector<16x16xf32>
    %113 = vector.extract_strided_slice %86 {offsets = [4, 0], sizes = [16, 16], strides = [1, 1]} : vector<22x16xf32> to vector<16x16xf32>
    %c28 = arith.constant 28 : index
    %114 = memref.load %arg2[%c28] : memref<98xf32, #tpu.memory_space<smem>>
    %115 = vector.broadcast %114 : f32 to vector<16x16xf32>
    %116 = arith.mulf %115, %113 : vector<16x16xf32>
    %117 = arith.addf %97, %116 : vector<16x16xf32>
    %118 = vector.extract_strided_slice %86 {offsets = [5, 0], sizes = [16, 16], strides = [1, 1]} : vector<22x16xf32> to vector<16x16xf32>
    %c35 = arith.constant 35 : index
    %119 = memref.load %arg2[%c35] : memref<98xf32, #tpu.memory_space<smem>>
    %120 = vector.broadcast %119 : f32 to vector<16x16xf32>
    %121 = arith.mulf %120, %118 : vector<16x16xf32>
    %122 = arith.addf %102, %121 : vector<16x16xf32>
    %123 = vector.extract_strided_slice %86 {offsets = [6, 0], sizes = [16, 16], strides = [1, 1]} : vector<22x16xf32> to vector<16x16xf32>
    %c42 = arith.constant 42 : index
    %124 = memref.load %arg2[%c42] : memref<98xf32, #tpu.memory_space<smem>>
    %125 = vector.broadcast %124 : f32 to vector<16x16xf32>
    %126 = arith.mulf %125, %123 : vector<16x16xf32>
    %127 = arith.addf %107, %126 : vector<16x16xf32>
    %128 = vector.extract_strided_slice %87 {offsets = [0, 0], sizes = [16, 16], strides = [1, 1]} : vector<22x16xf32> to vector<16x16xf32>
    %c1 = arith.constant 1 : index
    %129 = memref.load %arg2[%c1] : memref<98xf32, #tpu.memory_space<smem>>
    %130 = vector.broadcast %129 : f32 to vector<16x16xf32>
    %131 = arith.mulf %130, %128 : vector<16x16xf32>
    %132 = arith.addf %112, %131 : vector<16x16xf32>
    %133 = vector.extract_strided_slice %87 {offsets = [1, 0], sizes = [16, 16], strides = [1, 1]} : vector<22x16xf32> to vector<16x16xf32>
    %c8 = arith.constant 8 : index
    %134 = memref.load %arg2[%c8] : memref<98xf32, #tpu.memory_space<smem>>
    %135 = vector.broadcast %134 : f32 to vector<16x16xf32>
    %136 = arith.mulf %135, %133 : vector<16x16xf32>
    %137 = arith.addf %117, %136 : vector<16x16xf32>
    %138 = vector.extract_strided_slice %87 {offsets = [2, 0], sizes = [16, 16], strides = [1, 1]} : vector<22x16xf32> to vector<16x16xf32>
    %c15 = arith.constant 15 : index
    %139 = memref.load %arg2[%c15] : memref<98xf32, #tpu.memory_space<smem>>
    %140 = vector.broadcast %139 : f32 to vector<16x16xf32>
    %141 = arith.mulf %140, %138 : vector<16x16xf32>
    %142 = arith.addf %122, %141 : vector<16x16xf32>
    %143 = vector.extract_strided_slice %87 {offsets = [3, 0], sizes = [16, 16], strides = [1, 1]} : vector<22x16xf32> to vector<16x16xf32>
    %c22 = arith.constant 22 : index
    %144 = memref.load %arg2[%c22] : memref<98xf32, #tpu.memory_space<smem>>
    %145 = vector.broadcast %144 : f32 to vector<16x16xf32>
    %146 = arith.mulf %145, %143 : vector<16x16xf32>
    %147 = arith.addf %127, %146 : vector<16x16xf32>
    %148 = vector.extract_strided_slice %87 {offsets = [4, 0], sizes = [16, 16], strides = [1, 1]} : vector<22x16xf32> to vector<16x16xf32>
    %c29 = arith.constant 29 : index
    %149 = memref.load %arg2[%c29] : memref<98xf32, #tpu.memory_space<smem>>
    %150 = vector.broadcast %149 : f32 to vector<16x16xf32>
    %151 = arith.mulf %150, %148 : vector<16x16xf32>
    %152 = arith.addf %132, %151 : vector<16x16xf32>
    %153 = vector.extract_strided_slice %87 {offsets = [5, 0], sizes = [16, 16], strides = [1, 1]} : vector<22x16xf32> to vector<16x16xf32>
    %c36 = arith.constant 36 : index
    %154 = memref.load %arg2[%c36] : memref<98xf32, #tpu.memory_space<smem>>
    %155 = vector.broadcast %154 : f32 to vector<16x16xf32>
    %156 = arith.mulf %155, %153 : vector<16x16xf32>
    %157 = arith.addf %137, %156 : vector<16x16xf32>
    %158 = vector.extract_strided_slice %87 {offsets = [6, 0], sizes = [16, 16], strides = [1, 1]} : vector<22x16xf32> to vector<16x16xf32>
    %c43 = arith.constant 43 : index
    %159 = memref.load %arg2[%c43] : memref<98xf32, #tpu.memory_space<smem>>
    %160 = vector.broadcast %159 : f32 to vector<16x16xf32>
    %161 = arith.mulf %160, %158 : vector<16x16xf32>
    %162 = arith.addf %142, %161 : vector<16x16xf32>
    %163 = vector.extract_strided_slice %88 {offsets = [0, 0], sizes = [16, 16], strides = [1, 1]} : vector<22x16xf32> to vector<16x16xf32>
    %c2 = arith.constant 2 : index
    %164 = memref.load %arg2[%c2] : memref<98xf32, #tpu.memory_space<smem>>
    %165 = vector.broadcast %164 : f32 to vector<16x16xf32>
    %166 = arith.mulf %165, %163 : vector<16x16xf32>
    %167 = arith.addf %147, %166 : vector<16x16xf32>
    %168 = vector.extract_strided_slice %88 {offsets = [1, 0], sizes = [16, 16], strides = [1, 1]} : vector<22x16xf32> to vector<16x16xf32>
    %c9 = arith.constant 9 : index
    %169 = memref.load %arg2[%c9] : memref<98xf32, #tpu.memory_space<smem>>
    %170 = vector.broadcast %169 : f32 to vector<16x16xf32>
    %171 = arith.mulf %170, %168 : vector<16x16xf32>
    %172 = arith.addf %152, %171 : vector<16x16xf32>
    %173 = vector.extract_strided_slice %88 {offsets = [2, 0], sizes = [16, 16], strides = [1, 1]} : vector<22x16xf32> to vector<16x16xf32>
    %c16 = arith.constant 16 : index
    %174 = memref.load %arg2[%c16] : memref<98xf32, #tpu.memory_space<smem>>
    %175 = vector.broadcast %174 : f32 to vector<16x16xf32>
    %176 = arith.mulf %175, %173 : vector<16x16xf32>
    %177 = arith.addf %157, %176 : vector<16x16xf32>
    %178 = vector.extract_strided_slice %88 {offsets = [3, 0], sizes = [16, 16], strides = [1, 1]} : vector<22x16xf32> to vector<16x16xf32>
    %c23 = arith.constant 23 : index
    %179 = memref.load %arg2[%c23] : memref<98xf32, #tpu.memory_space<smem>>
    %180 = vector.broadcast %179 : f32 to vector<16x16xf32>
    %181 = arith.mulf %180, %178 : vector<16x16xf32>
    %182 = arith.addf %162, %181 : vector<16x16xf32>
    %183 = vector.extract_strided_slice %88 {offsets = [4, 0], sizes = [16, 16], strides = [1, 1]} : vector<22x16xf32> to vector<16x16xf32>
    %c30 = arith.constant 30 : index
    %184 = memref.load %arg2[%c30] : memref<98xf32, #tpu.memory_space<smem>>
    %185 = vector.broadcast %184 : f32 to vector<16x16xf32>
    %186 = arith.mulf %185, %183 : vector<16x16xf32>
    %187 = arith.addf %167, %186 : vector<16x16xf32>
    %188 = vector.extract_strided_slice %88 {offsets = [5, 0], sizes = [16, 16], strides = [1, 1]} : vector<22x16xf32> to vector<16x16xf32>
    %c37 = arith.constant 37 : index
    %189 = memref.load %arg2[%c37] : memref<98xf32, #tpu.memory_space<smem>>
    %190 = vector.broadcast %189 : f32 to vector<16x16xf32>
    %191 = arith.mulf %190, %188 : vector<16x16xf32>
    %192 = arith.addf %172, %191 : vector<16x16xf32>
    %193 = vector.extract_strided_slice %88 {offsets = [6, 0], sizes = [16, 16], strides = [1, 1]} : vector<22x16xf32> to vector<16x16xf32>
    %c44 = arith.constant 44 : index
    %194 = memref.load %arg2[%c44] : memref<98xf32, #tpu.memory_space<smem>>
    %195 = vector.broadcast %194 : f32 to vector<16x16xf32>
    %196 = arith.mulf %195, %193 : vector<16x16xf32>
    %197 = arith.addf %177, %196 : vector<16x16xf32>
    %198 = vector.extract_strided_slice %89 {offsets = [0, 0], sizes = [16, 16], strides = [1, 1]} : vector<22x16xf32> to vector<16x16xf32>
    %c3 = arith.constant 3 : index
    %199 = memref.load %arg2[%c3] : memref<98xf32, #tpu.memory_space<smem>>
    %200 = vector.broadcast %199 : f32 to vector<16x16xf32>
    %201 = arith.mulf %200, %198 : vector<16x16xf32>
    %202 = arith.addf %182, %201 : vector<16x16xf32>
    %203 = vector.extract_strided_slice %89 {offsets = [1, 0], sizes = [16, 16], strides = [1, 1]} : vector<22x16xf32> to vector<16x16xf32>
    %c10 = arith.constant 10 : index
    %204 = memref.load %arg2[%c10] : memref<98xf32, #tpu.memory_space<smem>>
    %205 = vector.broadcast %204 : f32 to vector<16x16xf32>
    %206 = arith.mulf %205, %203 : vector<16x16xf32>
    %207 = arith.addf %187, %206 : vector<16x16xf32>
    %208 = vector.extract_strided_slice %89 {offsets = [2, 0], sizes = [16, 16], strides = [1, 1]} : vector<22x16xf32> to vector<16x16xf32>
    %c17 = arith.constant 17 : index
    %209 = memref.load %arg2[%c17] : memref<98xf32, #tpu.memory_space<smem>>
    %210 = vector.broadcast %209 : f32 to vector<16x16xf32>
    %211 = arith.mulf %210, %208 : vector<16x16xf32>
    %212 = arith.addf %192, %211 : vector<16x16xf32>
    %213 = vector.extract_strided_slice %89 {offsets = [3, 0], sizes = [16, 16], strides = [1, 1]} : vector<22x16xf32> to vector<16x16xf32>
    %c24 = arith.constant 24 : index
    %214 = memref.load %arg2[%c24] : memref<98xf32, #tpu.memory_space<smem>>
    %215 = vector.broadcast %214 : f32 to vector<16x16xf32>
    %216 = arith.mulf %215, %213 : vector<16x16xf32>
    %217 = arith.addf %197, %216 : vector<16x16xf32>
    %218 = vector.extract_strided_slice %89 {offsets = [4, 0], sizes = [16, 16], strides = [1, 1]} : vector<22x16xf32> to vector<16x16xf32>
    %c31 = arith.constant 31 : index
    %219 = memref.load %arg2[%c31] : memref<98xf32, #tpu.memory_space<smem>>
    %220 = vector.broadcast %219 : f32 to vector<16x16xf32>
    %221 = arith.mulf %220, %218 : vector<16x16xf32>
    %222 = arith.addf %202, %221 : vector<16x16xf32>
    %223 = vector.extract_strided_slice %89 {offsets = [5, 0], sizes = [16, 16], strides = [1, 1]} : vector<22x16xf32> to vector<16x16xf32>
    %c38 = arith.constant 38 : index
    %224 = memref.load %arg2[%c38] : memref<98xf32, #tpu.memory_space<smem>>
    %225 = vector.broadcast %224 : f32 to vector<16x16xf32>
    %226 = arith.mulf %225, %223 : vector<16x16xf32>
    %227 = arith.addf %207, %226 : vector<16x16xf32>
    %228 = vector.extract_strided_slice %89 {offsets = [6, 0], sizes = [16, 16], strides = [1, 1]} : vector<22x16xf32> to vector<16x16xf32>
    %c45 = arith.constant 45 : index
    %229 = memref.load %arg2[%c45] : memref<98xf32, #tpu.memory_space<smem>>
    %230 = vector.broadcast %229 : f32 to vector<16x16xf32>
    %231 = arith.mulf %230, %228 : vector<16x16xf32>
    %232 = arith.addf %212, %231 : vector<16x16xf32>
    %233 = vector.extract_strided_slice %90 {offsets = [0, 0], sizes = [16, 16], strides = [1, 1]} : vector<22x16xf32> to vector<16x16xf32>
    %c4 = arith.constant 4 : index
    %234 = memref.load %arg2[%c4] : memref<98xf32, #tpu.memory_space<smem>>
    %235 = vector.broadcast %234 : f32 to vector<16x16xf32>
    %236 = arith.mulf %235, %233 : vector<16x16xf32>
    %237 = arith.addf %217, %236 : vector<16x16xf32>
    %238 = vector.extract_strided_slice %90 {offsets = [1, 0], sizes = [16, 16], strides = [1, 1]} : vector<22x16xf32> to vector<16x16xf32>
    %c11 = arith.constant 11 : index
    %239 = memref.load %arg2[%c11] : memref<98xf32, #tpu.memory_space<smem>>
    %240 = vector.broadcast %239 : f32 to vector<16x16xf32>
    %241 = arith.mulf %240, %238 : vector<16x16xf32>
    %242 = arith.addf %222, %241 : vector<16x16xf32>
    %243 = vector.extract_strided_slice %90 {offsets = [2, 0], sizes = [16, 16], strides = [1, 1]} : vector<22x16xf32> to vector<16x16xf32>
    %c18 = arith.constant 18 : index
    %244 = memref.load %arg2[%c18] : memref<98xf32, #tpu.memory_space<smem>>
    %245 = vector.broadcast %244 : f32 to vector<16x16xf32>
    %246 = arith.mulf %245, %243 : vector<16x16xf32>
    %247 = arith.addf %227, %246 : vector<16x16xf32>
    %248 = vector.extract_strided_slice %90 {offsets = [3, 0], sizes = [16, 16], strides = [1, 1]} : vector<22x16xf32> to vector<16x16xf32>
    %c25 = arith.constant 25 : index
    %249 = memref.load %arg2[%c25] : memref<98xf32, #tpu.memory_space<smem>>
    %250 = vector.broadcast %249 : f32 to vector<16x16xf32>
    %251 = arith.mulf %250, %248 : vector<16x16xf32>
    %252 = arith.addf %232, %251 : vector<16x16xf32>
    %253 = vector.extract_strided_slice %90 {offsets = [4, 0], sizes = [16, 16], strides = [1, 1]} : vector<22x16xf32> to vector<16x16xf32>
    %c32 = arith.constant 32 : index
    %254 = memref.load %arg2[%c32] : memref<98xf32, #tpu.memory_space<smem>>
    %255 = vector.broadcast %254 : f32 to vector<16x16xf32>
    %256 = arith.mulf %255, %253 : vector<16x16xf32>
    %257 = arith.addf %237, %256 : vector<16x16xf32>
    %258 = vector.extract_strided_slice %90 {offsets = [5, 0], sizes = [16, 16], strides = [1, 1]} : vector<22x16xf32> to vector<16x16xf32>
    %c39 = arith.constant 39 : index
    %259 = memref.load %arg2[%c39] : memref<98xf32, #tpu.memory_space<smem>>
    %260 = vector.broadcast %259 : f32 to vector<16x16xf32>
    %261 = arith.mulf %260, %258 : vector<16x16xf32>
    %262 = arith.addf %242, %261 : vector<16x16xf32>
    %263 = vector.extract_strided_slice %90 {offsets = [6, 0], sizes = [16, 16], strides = [1, 1]} : vector<22x16xf32> to vector<16x16xf32>
    %c46 = arith.constant 46 : index
    %264 = memref.load %arg2[%c46] : memref<98xf32, #tpu.memory_space<smem>>
    %265 = vector.broadcast %264 : f32 to vector<16x16xf32>
    %266 = arith.mulf %265, %263 : vector<16x16xf32>
    %267 = arith.addf %247, %266 : vector<16x16xf32>
    %268 = vector.extract_strided_slice %91 {offsets = [0, 0], sizes = [16, 16], strides = [1, 1]} : vector<22x16xf32> to vector<16x16xf32>
    %c5 = arith.constant 5 : index
    %269 = memref.load %arg2[%c5] : memref<98xf32, #tpu.memory_space<smem>>
    %270 = vector.broadcast %269 : f32 to vector<16x16xf32>
    %271 = arith.mulf %270, %268 : vector<16x16xf32>
    %272 = arith.addf %252, %271 : vector<16x16xf32>
    %273 = vector.extract_strided_slice %91 {offsets = [1, 0], sizes = [16, 16], strides = [1, 1]} : vector<22x16xf32> to vector<16x16xf32>
    %c12 = arith.constant 12 : index
    %274 = memref.load %arg2[%c12] : memref<98xf32, #tpu.memory_space<smem>>
    %275 = vector.broadcast %274 : f32 to vector<16x16xf32>
    %276 = arith.mulf %275, %273 : vector<16x16xf32>
    %277 = arith.addf %257, %276 : vector<16x16xf32>
    %278 = vector.extract_strided_slice %91 {offsets = [2, 0], sizes = [16, 16], strides = [1, 1]} : vector<22x16xf32> to vector<16x16xf32>
    %c19 = arith.constant 19 : index
    %279 = memref.load %arg2[%c19] : memref<98xf32, #tpu.memory_space<smem>>
    %280 = vector.broadcast %279 : f32 to vector<16x16xf32>
    %281 = arith.mulf %280, %278 : vector<16x16xf32>
    %282 = arith.addf %262, %281 : vector<16x16xf32>
    %283 = vector.extract_strided_slice %91 {offsets = [3, 0], sizes = [16, 16], strides = [1, 1]} : vector<22x16xf32> to vector<16x16xf32>
    %c26 = arith.constant 26 : index
    %284 = memref.load %arg2[%c26] : memref<98xf32, #tpu.memory_space<smem>>
    %285 = vector.broadcast %284 : f32 to vector<16x16xf32>
    %286 = arith.mulf %285, %283 : vector<16x16xf32>
    %287 = arith.addf %267, %286 : vector<16x16xf32>
    %288 = vector.extract_strided_slice %91 {offsets = [4, 0], sizes = [16, 16], strides = [1, 1]} : vector<22x16xf32> to vector<16x16xf32>
    %c33 = arith.constant 33 : index
    %289 = memref.load %arg2[%c33] : memref<98xf32, #tpu.memory_space<smem>>
    %290 = vector.broadcast %289 : f32 to vector<16x16xf32>
    %291 = arith.mulf %290, %288 : vector<16x16xf32>
    %292 = arith.addf %272, %291 : vector<16x16xf32>
    %293 = vector.extract_strided_slice %91 {offsets = [5, 0], sizes = [16, 16], strides = [1, 1]} : vector<22x16xf32> to vector<16x16xf32>
    %c40 = arith.constant 40 : index
    %294 = memref.load %arg2[%c40] : memref<98xf32, #tpu.memory_space<smem>>
    %295 = vector.broadcast %294 : f32 to vector<16x16xf32>
    %296 = arith.mulf %295, %293 : vector<16x16xf32>
    %297 = arith.addf %277, %296 : vector<16x16xf32>
    %298 = vector.extract_strided_slice %91 {offsets = [6, 0], sizes = [16, 16], strides = [1, 1]} : vector<22x16xf32> to vector<16x16xf32>
    %c47 = arith.constant 47 : index
    %299 = memref.load %arg2[%c47] : memref<98xf32, #tpu.memory_space<smem>>
    %300 = vector.broadcast %299 : f32 to vector<16x16xf32>
    %301 = arith.mulf %300, %298 : vector<16x16xf32>
    %302 = arith.addf %282, %301 : vector<16x16xf32>
    %303 = vector.extract_strided_slice %92 {offsets = [0, 0], sizes = [16, 16], strides = [1, 1]} : vector<22x16xf32> to vector<16x16xf32>
    %c6 = arith.constant 6 : index
    %304 = memref.load %arg2[%c6] : memref<98xf32, #tpu.memory_space<smem>>
    %305 = vector.broadcast %304 : f32 to vector<16x16xf32>
    %306 = arith.mulf %305, %303 : vector<16x16xf32>
    %307 = arith.addf %287, %306 : vector<16x16xf32>
    %308 = vector.extract_strided_slice %92 {offsets = [1, 0], sizes = [16, 16], strides = [1, 1]} : vector<22x16xf32> to vector<16x16xf32>
    %c13 = arith.constant 13 : index
    %309 = memref.load %arg2[%c13] : memref<98xf32, #tpu.memory_space<smem>>
    %310 = vector.broadcast %309 : f32 to vector<16x16xf32>
    %311 = arith.mulf %310, %308 : vector<16x16xf32>
    %312 = arith.addf %292, %311 : vector<16x16xf32>
    %313 = vector.extract_strided_slice %92 {offsets = [2, 0], sizes = [16, 16], strides = [1, 1]} : vector<22x16xf32> to vector<16x16xf32>
    %c20 = arith.constant 20 : index
    %314 = memref.load %arg2[%c20] : memref<98xf32, #tpu.memory_space<smem>>
    %315 = vector.broadcast %314 : f32 to vector<16x16xf32>
    %316 = arith.mulf %315, %313 : vector<16x16xf32>
    %317 = arith.addf %297, %316 : vector<16x16xf32>
    %318 = vector.extract_strided_slice %92 {offsets = [3, 0], sizes = [16, 16], strides = [1, 1]} : vector<22x16xf32> to vector<16x16xf32>
    %c27 = arith.constant 27 : index
    %319 = memref.load %arg2[%c27] : memref<98xf32, #tpu.memory_space<smem>>
    %320 = vector.broadcast %319 : f32 to vector<16x16xf32>
    %321 = arith.mulf %320, %318 : vector<16x16xf32>
    %322 = arith.addf %302, %321 : vector<16x16xf32>
    %323 = vector.extract_strided_slice %92 {offsets = [4, 0], sizes = [16, 16], strides = [1, 1]} : vector<22x16xf32> to vector<16x16xf32>
    %c34 = arith.constant 34 : index
    %324 = memref.load %arg2[%c34] : memref<98xf32, #tpu.memory_space<smem>>
    %325 = vector.broadcast %324 : f32 to vector<16x16xf32>
    %326 = arith.mulf %325, %323 : vector<16x16xf32>
    %327 = arith.addf %307, %326 : vector<16x16xf32>
    %328 = vector.extract_strided_slice %92 {offsets = [5, 0], sizes = [16, 16], strides = [1, 1]} : vector<22x16xf32> to vector<16x16xf32>
    %c41 = arith.constant 41 : index
    %329 = memref.load %arg2[%c41] : memref<98xf32, #tpu.memory_space<smem>>
    %330 = vector.broadcast %329 : f32 to vector<16x16xf32>
    %331 = arith.mulf %330, %328 : vector<16x16xf32>
    %332 = arith.addf %312, %331 : vector<16x16xf32>
    %333 = vector.extract_strided_slice %92 {offsets = [6, 0], sizes = [16, 16], strides = [1, 1]} : vector<22x16xf32> to vector<16x16xf32>
    %c48 = arith.constant 48 : index
    %334 = memref.load %arg2[%c48] : memref<98xf32, #tpu.memory_space<smem>>
    %335 = vector.broadcast %334 : f32 to vector<16x16xf32>
    %336 = arith.mulf %335, %333 : vector<16x16xf32>
    %337 = arith.addf %317, %336 : vector<16x16xf32>
    %338 = vector.extract_strided_slice %81 {offsets = [0, 0], sizes = [22, 16], strides = [1, 1]} : vector<22x22xf32> to vector<22x16xf32>
    %339 = vector.extract_strided_slice %81 {offsets = [0, 1], sizes = [22, 16], strides = [1, 1]} : vector<22x22xf32> to vector<22x16xf32>
    %340 = vector.extract_strided_slice %81 {offsets = [0, 2], sizes = [22, 16], strides = [1, 1]} : vector<22x22xf32> to vector<22x16xf32>
    %341 = vector.extract_strided_slice %81 {offsets = [0, 3], sizes = [22, 16], strides = [1, 1]} : vector<22x22xf32> to vector<22x16xf32>
    %342 = vector.extract_strided_slice %81 {offsets = [0, 4], sizes = [22, 16], strides = [1, 1]} : vector<22x22xf32> to vector<22x16xf32>
    %343 = vector.extract_strided_slice %81 {offsets = [0, 5], sizes = [22, 16], strides = [1, 1]} : vector<22x22xf32> to vector<22x16xf32>
    %344 = vector.extract_strided_slice %81 {offsets = [0, 6], sizes = [22, 16], strides = [1, 1]} : vector<22x22xf32> to vector<22x16xf32>
    %345 = vector.extract_strided_slice %338 {offsets = [0, 0], sizes = [16, 16], strides = [1, 1]} : vector<22x16xf32> to vector<16x16xf32>
    %c49 = arith.constant 49 : index
    %346 = memref.load %arg2[%c49] : memref<98xf32, #tpu.memory_space<smem>>
    %347 = vector.broadcast %346 : f32 to vector<16x16xf32>
    %348 = arith.mulf %347, %345 : vector<16x16xf32>
    %349 = arith.addf %322, %348 : vector<16x16xf32>
    %350 = vector.extract_strided_slice %338 {offsets = [1, 0], sizes = [16, 16], strides = [1, 1]} : vector<22x16xf32> to vector<16x16xf32>
    %c56 = arith.constant 56 : index
    %351 = memref.load %arg2[%c56] : memref<98xf32, #tpu.memory_space<smem>>
    %352 = vector.broadcast %351 : f32 to vector<16x16xf32>
    %353 = arith.mulf %352, %350 : vector<16x16xf32>
    %354 = arith.addf %327, %353 : vector<16x16xf32>
    %355 = vector.extract_strided_slice %338 {offsets = [2, 0], sizes = [16, 16], strides = [1, 1]} : vector<22x16xf32> to vector<16x16xf32>
    %c63 = arith.constant 63 : index
    %356 = memref.load %arg2[%c63] : memref<98xf32, #tpu.memory_space<smem>>
    %357 = vector.broadcast %356 : f32 to vector<16x16xf32>
    %358 = arith.mulf %357, %355 : vector<16x16xf32>
    %359 = arith.addf %332, %358 : vector<16x16xf32>
    %360 = vector.extract_strided_slice %338 {offsets = [3, 0], sizes = [16, 16], strides = [1, 1]} : vector<22x16xf32> to vector<16x16xf32>
    %c70 = arith.constant 70 : index
    %361 = memref.load %arg2[%c70] : memref<98xf32, #tpu.memory_space<smem>>
    %362 = vector.broadcast %361 : f32 to vector<16x16xf32>
    %363 = arith.mulf %362, %360 : vector<16x16xf32>
    %364 = arith.addf %337, %363 : vector<16x16xf32>
    %365 = vector.extract_strided_slice %338 {offsets = [4, 0], sizes = [16, 16], strides = [1, 1]} : vector<22x16xf32> to vector<16x16xf32>
    %c77 = arith.constant 77 : index
    %366 = memref.load %arg2[%c77] : memref<98xf32, #tpu.memory_space<smem>>
    %367 = vector.broadcast %366 : f32 to vector<16x16xf32>
    %368 = arith.mulf %367, %365 : vector<16x16xf32>
    %369 = arith.addf %349, %368 : vector<16x16xf32>
    %370 = vector.extract_strided_slice %338 {offsets = [5, 0], sizes = [16, 16], strides = [1, 1]} : vector<22x16xf32> to vector<16x16xf32>
    %c84 = arith.constant 84 : index
    %371 = memref.load %arg2[%c84] : memref<98xf32, #tpu.memory_space<smem>>
    %372 = vector.broadcast %371 : f32 to vector<16x16xf32>
    %373 = arith.mulf %372, %370 : vector<16x16xf32>
    %374 = arith.addf %354, %373 : vector<16x16xf32>
    %375 = vector.extract_strided_slice %338 {offsets = [6, 0], sizes = [16, 16], strides = [1, 1]} : vector<22x16xf32> to vector<16x16xf32>
    %c91 = arith.constant 91 : index
    %376 = memref.load %arg2[%c91] : memref<98xf32, #tpu.memory_space<smem>>
    %377 = vector.broadcast %376 : f32 to vector<16x16xf32>
    %378 = arith.mulf %377, %375 : vector<16x16xf32>
    %379 = arith.addf %359, %378 : vector<16x16xf32>
    %380 = vector.extract_strided_slice %339 {offsets = [0, 0], sizes = [16, 16], strides = [1, 1]} : vector<22x16xf32> to vector<16x16xf32>
    %c50 = arith.constant 50 : index
    %381 = memref.load %arg2[%c50] : memref<98xf32, #tpu.memory_space<smem>>
    %382 = vector.broadcast %381 : f32 to vector<16x16xf32>
    %383 = arith.mulf %382, %380 : vector<16x16xf32>
    %384 = arith.addf %364, %383 : vector<16x16xf32>
    %385 = vector.extract_strided_slice %339 {offsets = [1, 0], sizes = [16, 16], strides = [1, 1]} : vector<22x16xf32> to vector<16x16xf32>
    %c57 = arith.constant 57 : index
    %386 = memref.load %arg2[%c57] : memref<98xf32, #tpu.memory_space<smem>>
    %387 = vector.broadcast %386 : f32 to vector<16x16xf32>
    %388 = arith.mulf %387, %385 : vector<16x16xf32>
    %389 = arith.addf %369, %388 : vector<16x16xf32>
    %390 = vector.extract_strided_slice %339 {offsets = [2, 0], sizes = [16, 16], strides = [1, 1]} : vector<22x16xf32> to vector<16x16xf32>
    %c64 = arith.constant 64 : index
    %391 = memref.load %arg2[%c64] : memref<98xf32, #tpu.memory_space<smem>>
    %392 = vector.broadcast %391 : f32 to vector<16x16xf32>
    %393 = arith.mulf %392, %390 : vector<16x16xf32>
    %394 = arith.addf %374, %393 : vector<16x16xf32>
    %395 = vector.extract_strided_slice %339 {offsets = [3, 0], sizes = [16, 16], strides = [1, 1]} : vector<22x16xf32> to vector<16x16xf32>
    %c71 = arith.constant 71 : index
    %396 = memref.load %arg2[%c71] : memref<98xf32, #tpu.memory_space<smem>>
    %397 = vector.broadcast %396 : f32 to vector<16x16xf32>
    %398 = arith.mulf %397, %395 : vector<16x16xf32>
    %399 = arith.addf %379, %398 : vector<16x16xf32>
    %400 = vector.extract_strided_slice %339 {offsets = [4, 0], sizes = [16, 16], strides = [1, 1]} : vector<22x16xf32> to vector<16x16xf32>
    %c78 = arith.constant 78 : index
    %401 = memref.load %arg2[%c78] : memref<98xf32, #tpu.memory_space<smem>>
    %402 = vector.broadcast %401 : f32 to vector<16x16xf32>
    %403 = arith.mulf %402, %400 : vector<16x16xf32>
    %404 = arith.addf %384, %403 : vector<16x16xf32>
    %405 = vector.extract_strided_slice %339 {offsets = [5, 0], sizes = [16, 16], strides = [1, 1]} : vector<22x16xf32> to vector<16x16xf32>
    %c85 = arith.constant 85 : index
    %406 = memref.load %arg2[%c85] : memref<98xf32, #tpu.memory_space<smem>>
    %407 = vector.broadcast %406 : f32 to vector<16x16xf32>
    %408 = arith.mulf %407, %405 : vector<16x16xf32>
    %409 = arith.addf %389, %408 : vector<16x16xf32>
    %410 = vector.extract_strided_slice %339 {offsets = [6, 0], sizes = [16, 16], strides = [1, 1]} : vector<22x16xf32> to vector<16x16xf32>
    %c92 = arith.constant 92 : index
    %411 = memref.load %arg2[%c92] : memref<98xf32, #tpu.memory_space<smem>>
    %412 = vector.broadcast %411 : f32 to vector<16x16xf32>
    %413 = arith.mulf %412, %410 : vector<16x16xf32>
    %414 = arith.addf %394, %413 : vector<16x16xf32>
    %415 = vector.extract_strided_slice %340 {offsets = [0, 0], sizes = [16, 16], strides = [1, 1]} : vector<22x16xf32> to vector<16x16xf32>
    %c51 = arith.constant 51 : index
    %416 = memref.load %arg2[%c51] : memref<98xf32, #tpu.memory_space<smem>>
    %417 = vector.broadcast %416 : f32 to vector<16x16xf32>
    %418 = arith.mulf %417, %415 : vector<16x16xf32>
    %419 = arith.addf %399, %418 : vector<16x16xf32>
    %420 = vector.extract_strided_slice %340 {offsets = [1, 0], sizes = [16, 16], strides = [1, 1]} : vector<22x16xf32> to vector<16x16xf32>
    %c58 = arith.constant 58 : index
    %421 = memref.load %arg2[%c58] : memref<98xf32, #tpu.memory_space<smem>>
    %422 = vector.broadcast %421 : f32 to vector<16x16xf32>
    %423 = arith.mulf %422, %420 : vector<16x16xf32>
    %424 = arith.addf %404, %423 : vector<16x16xf32>
    %425 = vector.extract_strided_slice %340 {offsets = [2, 0], sizes = [16, 16], strides = [1, 1]} : vector<22x16xf32> to vector<16x16xf32>
    %c65 = arith.constant 65 : index
    %426 = memref.load %arg2[%c65] : memref<98xf32, #tpu.memory_space<smem>>
    %427 = vector.broadcast %426 : f32 to vector<16x16xf32>
    %428 = arith.mulf %427, %425 : vector<16x16xf32>
    %429 = arith.addf %409, %428 : vector<16x16xf32>
    %430 = vector.extract_strided_slice %340 {offsets = [3, 0], sizes = [16, 16], strides = [1, 1]} : vector<22x16xf32> to vector<16x16xf32>
    %c72 = arith.constant 72 : index
    %431 = memref.load %arg2[%c72] : memref<98xf32, #tpu.memory_space<smem>>
    %432 = vector.broadcast %431 : f32 to vector<16x16xf32>
    %433 = arith.mulf %432, %430 : vector<16x16xf32>
    %434 = arith.addf %414, %433 : vector<16x16xf32>
    %435 = vector.extract_strided_slice %340 {offsets = [4, 0], sizes = [16, 16], strides = [1, 1]} : vector<22x16xf32> to vector<16x16xf32>
    %c79 = arith.constant 79 : index
    %436 = memref.load %arg2[%c79] : memref<98xf32, #tpu.memory_space<smem>>
    %437 = vector.broadcast %436 : f32 to vector<16x16xf32>
    %438 = arith.mulf %437, %435 : vector<16x16xf32>
    %439 = arith.addf %419, %438 : vector<16x16xf32>
    %440 = vector.extract_strided_slice %340 {offsets = [5, 0], sizes = [16, 16], strides = [1, 1]} : vector<22x16xf32> to vector<16x16xf32>
    %c86 = arith.constant 86 : index
    %441 = memref.load %arg2[%c86] : memref<98xf32, #tpu.memory_space<smem>>
    %442 = vector.broadcast %441 : f32 to vector<16x16xf32>
    %443 = arith.mulf %442, %440 : vector<16x16xf32>
    %444 = arith.addf %424, %443 : vector<16x16xf32>
    %445 = vector.extract_strided_slice %340 {offsets = [6, 0], sizes = [16, 16], strides = [1, 1]} : vector<22x16xf32> to vector<16x16xf32>
    %c93 = arith.constant 93 : index
    %446 = memref.load %arg2[%c93] : memref<98xf32, #tpu.memory_space<smem>>
    %447 = vector.broadcast %446 : f32 to vector<16x16xf32>
    %448 = arith.mulf %447, %445 : vector<16x16xf32>
    %449 = arith.addf %429, %448 : vector<16x16xf32>
    %450 = vector.extract_strided_slice %341 {offsets = [0, 0], sizes = [16, 16], strides = [1, 1]} : vector<22x16xf32> to vector<16x16xf32>
    %c52 = arith.constant 52 : index
    %451 = memref.load %arg2[%c52] : memref<98xf32, #tpu.memory_space<smem>>
    %452 = vector.broadcast %451 : f32 to vector<16x16xf32>
    %453 = arith.mulf %452, %450 : vector<16x16xf32>
    %454 = arith.addf %434, %453 : vector<16x16xf32>
    %455 = vector.extract_strided_slice %341 {offsets = [1, 0], sizes = [16, 16], strides = [1, 1]} : vector<22x16xf32> to vector<16x16xf32>
    %c59 = arith.constant 59 : index
    %456 = memref.load %arg2[%c59] : memref<98xf32, #tpu.memory_space<smem>>
    %457 = vector.broadcast %456 : f32 to vector<16x16xf32>
    %458 = arith.mulf %457, %455 : vector<16x16xf32>
    %459 = arith.addf %439, %458 : vector<16x16xf32>
    %460 = vector.extract_strided_slice %341 {offsets = [2, 0], sizes = [16, 16], strides = [1, 1]} : vector<22x16xf32> to vector<16x16xf32>
    %c66 = arith.constant 66 : index
    %461 = memref.load %arg2[%c66] : memref<98xf32, #tpu.memory_space<smem>>
    %462 = vector.broadcast %461 : f32 to vector<16x16xf32>
    %463 = arith.mulf %462, %460 : vector<16x16xf32>
    %464 = arith.addf %444, %463 : vector<16x16xf32>
    %465 = vector.extract_strided_slice %341 {offsets = [3, 0], sizes = [16, 16], strides = [1, 1]} : vector<22x16xf32> to vector<16x16xf32>
    %c73 = arith.constant 73 : index
    %466 = memref.load %arg2[%c73] : memref<98xf32, #tpu.memory_space<smem>>
    %467 = vector.broadcast %466 : f32 to vector<16x16xf32>
    %468 = arith.mulf %467, %465 : vector<16x16xf32>
    %469 = arith.addf %449, %468 : vector<16x16xf32>
    %470 = vector.extract_strided_slice %341 {offsets = [4, 0], sizes = [16, 16], strides = [1, 1]} : vector<22x16xf32> to vector<16x16xf32>
    %c80 = arith.constant 80 : index
    %471 = memref.load %arg2[%c80] : memref<98xf32, #tpu.memory_space<smem>>
    %472 = vector.broadcast %471 : f32 to vector<16x16xf32>
    %473 = arith.mulf %472, %470 : vector<16x16xf32>
    %474 = arith.addf %454, %473 : vector<16x16xf32>
    %475 = vector.extract_strided_slice %341 {offsets = [5, 0], sizes = [16, 16], strides = [1, 1]} : vector<22x16xf32> to vector<16x16xf32>
    %c87 = arith.constant 87 : index
    %476 = memref.load %arg2[%c87] : memref<98xf32, #tpu.memory_space<smem>>
    %477 = vector.broadcast %476 : f32 to vector<16x16xf32>
    %478 = arith.mulf %477, %475 : vector<16x16xf32>
    %479 = arith.addf %459, %478 : vector<16x16xf32>
    %480 = vector.extract_strided_slice %341 {offsets = [6, 0], sizes = [16, 16], strides = [1, 1]} : vector<22x16xf32> to vector<16x16xf32>
    %c94 = arith.constant 94 : index
    %481 = memref.load %arg2[%c94] : memref<98xf32, #tpu.memory_space<smem>>
    %482 = vector.broadcast %481 : f32 to vector<16x16xf32>
    %483 = arith.mulf %482, %480 : vector<16x16xf32>
    %484 = arith.addf %464, %483 : vector<16x16xf32>
    %485 = vector.extract_strided_slice %342 {offsets = [0, 0], sizes = [16, 16], strides = [1, 1]} : vector<22x16xf32> to vector<16x16xf32>
    %c53 = arith.constant 53 : index
    %486 = memref.load %arg2[%c53] : memref<98xf32, #tpu.memory_space<smem>>
    %487 = vector.broadcast %486 : f32 to vector<16x16xf32>
    %488 = arith.mulf %487, %485 : vector<16x16xf32>
    %489 = arith.addf %469, %488 : vector<16x16xf32>
    %490 = vector.extract_strided_slice %342 {offsets = [1, 0], sizes = [16, 16], strides = [1, 1]} : vector<22x16xf32> to vector<16x16xf32>
    %c60 = arith.constant 60 : index
    %491 = memref.load %arg2[%c60] : memref<98xf32, #tpu.memory_space<smem>>
    %492 = vector.broadcast %491 : f32 to vector<16x16xf32>
    %493 = arith.mulf %492, %490 : vector<16x16xf32>
    %494 = arith.addf %474, %493 : vector<16x16xf32>
    %495 = vector.extract_strided_slice %342 {offsets = [2, 0], sizes = [16, 16], strides = [1, 1]} : vector<22x16xf32> to vector<16x16xf32>
    %c67 = arith.constant 67 : index
    %496 = memref.load %arg2[%c67] : memref<98xf32, #tpu.memory_space<smem>>
    %497 = vector.broadcast %496 : f32 to vector<16x16xf32>
    %498 = arith.mulf %497, %495 : vector<16x16xf32>
    %499 = arith.addf %479, %498 : vector<16x16xf32>
    %500 = vector.extract_strided_slice %342 {offsets = [3, 0], sizes = [16, 16], strides = [1, 1]} : vector<22x16xf32> to vector<16x16xf32>
    %c74 = arith.constant 74 : index
    %501 = memref.load %arg2[%c74] : memref<98xf32, #tpu.memory_space<smem>>
    %502 = vector.broadcast %501 : f32 to vector<16x16xf32>
    %503 = arith.mulf %502, %500 : vector<16x16xf32>
    %504 = arith.addf %484, %503 : vector<16x16xf32>
    %505 = vector.extract_strided_slice %342 {offsets = [4, 0], sizes = [16, 16], strides = [1, 1]} : vector<22x16xf32> to vector<16x16xf32>
    %c81 = arith.constant 81 : index
    %506 = memref.load %arg2[%c81] : memref<98xf32, #tpu.memory_space<smem>>
    %507 = vector.broadcast %506 : f32 to vector<16x16xf32>
    %508 = arith.mulf %507, %505 : vector<16x16xf32>
    %509 = arith.addf %489, %508 : vector<16x16xf32>
    %510 = vector.extract_strided_slice %342 {offsets = [5, 0], sizes = [16, 16], strides = [1, 1]} : vector<22x16xf32> to vector<16x16xf32>
    %c88 = arith.constant 88 : index
    %511 = memref.load %arg2[%c88] : memref<98xf32, #tpu.memory_space<smem>>
    %512 = vector.broadcast %511 : f32 to vector<16x16xf32>
    %513 = arith.mulf %512, %510 : vector<16x16xf32>
    %514 = arith.addf %494, %513 : vector<16x16xf32>
    %515 = vector.extract_strided_slice %342 {offsets = [6, 0], sizes = [16, 16], strides = [1, 1]} : vector<22x16xf32> to vector<16x16xf32>
    %c95 = arith.constant 95 : index
    %516 = memref.load %arg2[%c95] : memref<98xf32, #tpu.memory_space<smem>>
    %517 = vector.broadcast %516 : f32 to vector<16x16xf32>
    %518 = arith.mulf %517, %515 : vector<16x16xf32>
    %519 = arith.addf %499, %518 : vector<16x16xf32>
    %520 = vector.extract_strided_slice %343 {offsets = [0, 0], sizes = [16, 16], strides = [1, 1]} : vector<22x16xf32> to vector<16x16xf32>
    %c54 = arith.constant 54 : index
    %521 = memref.load %arg2[%c54] : memref<98xf32, #tpu.memory_space<smem>>
    %522 = vector.broadcast %521 : f32 to vector<16x16xf32>
    %523 = arith.mulf %522, %520 : vector<16x16xf32>
    %524 = arith.addf %504, %523 : vector<16x16xf32>
    %525 = vector.extract_strided_slice %343 {offsets = [1, 0], sizes = [16, 16], strides = [1, 1]} : vector<22x16xf32> to vector<16x16xf32>
    %c61 = arith.constant 61 : index
    %526 = memref.load %arg2[%c61] : memref<98xf32, #tpu.memory_space<smem>>
    %527 = vector.broadcast %526 : f32 to vector<16x16xf32>
    %528 = arith.mulf %527, %525 : vector<16x16xf32>
    %529 = arith.addf %509, %528 : vector<16x16xf32>
    %530 = vector.extract_strided_slice %343 {offsets = [2, 0], sizes = [16, 16], strides = [1, 1]} : vector<22x16xf32> to vector<16x16xf32>
    %c68 = arith.constant 68 : index
    %531 = memref.load %arg2[%c68] : memref<98xf32, #tpu.memory_space<smem>>
    %532 = vector.broadcast %531 : f32 to vector<16x16xf32>
    %533 = arith.mulf %532, %530 : vector<16x16xf32>
    %534 = arith.addf %514, %533 : vector<16x16xf32>
    %535 = vector.extract_strided_slice %343 {offsets = [3, 0], sizes = [16, 16], strides = [1, 1]} : vector<22x16xf32> to vector<16x16xf32>
    %c75 = arith.constant 75 : index
    %536 = memref.load %arg2[%c75] : memref<98xf32, #tpu.memory_space<smem>>
    %537 = vector.broadcast %536 : f32 to vector<16x16xf32>
    %538 = arith.mulf %537, %535 : vector<16x16xf32>
    %539 = arith.addf %519, %538 : vector<16x16xf32>
    %540 = vector.extract_strided_slice %343 {offsets = [4, 0], sizes = [16, 16], strides = [1, 1]} : vector<22x16xf32> to vector<16x16xf32>
    %c82 = arith.constant 82 : index
    %541 = memref.load %arg2[%c82] : memref<98xf32, #tpu.memory_space<smem>>
    %542 = vector.broadcast %541 : f32 to vector<16x16xf32>
    %543 = arith.mulf %542, %540 : vector<16x16xf32>
    %544 = arith.addf %524, %543 : vector<16x16xf32>
    %545 = vector.extract_strided_slice %343 {offsets = [5, 0], sizes = [16, 16], strides = [1, 1]} : vector<22x16xf32> to vector<16x16xf32>
    %c89 = arith.constant 89 : index
    %546 = memref.load %arg2[%c89] : memref<98xf32, #tpu.memory_space<smem>>
    %547 = vector.broadcast %546 : f32 to vector<16x16xf32>
    %548 = arith.mulf %547, %545 : vector<16x16xf32>
    %549 = arith.addf %529, %548 : vector<16x16xf32>
    %550 = vector.extract_strided_slice %343 {offsets = [6, 0], sizes = [16, 16], strides = [1, 1]} : vector<22x16xf32> to vector<16x16xf32>
    %c96 = arith.constant 96 : index
    %551 = memref.load %arg2[%c96] : memref<98xf32, #tpu.memory_space<smem>>
    %552 = vector.broadcast %551 : f32 to vector<16x16xf32>
    %553 = arith.mulf %552, %550 : vector<16x16xf32>
    %554 = arith.addf %534, %553 : vector<16x16xf32>
    %555 = vector.extract_strided_slice %344 {offsets = [0, 0], sizes = [16, 16], strides = [1, 1]} : vector<22x16xf32> to vector<16x16xf32>
    %c55 = arith.constant 55 : index
    %556 = memref.load %arg2[%c55] : memref<98xf32, #tpu.memory_space<smem>>
    %557 = vector.broadcast %556 : f32 to vector<16x16xf32>
    %558 = arith.mulf %557, %555 : vector<16x16xf32>
    %559 = arith.addf %539, %558 : vector<16x16xf32>
    %560 = vector.extract_strided_slice %344 {offsets = [1, 0], sizes = [16, 16], strides = [1, 1]} : vector<22x16xf32> to vector<16x16xf32>
    %c62 = arith.constant 62 : index
    %561 = memref.load %arg2[%c62] : memref<98xf32, #tpu.memory_space<smem>>
    %562 = vector.broadcast %561 : f32 to vector<16x16xf32>
    %563 = arith.mulf %562, %560 : vector<16x16xf32>
    %564 = arith.addf %544, %563 : vector<16x16xf32>
    %565 = vector.extract_strided_slice %344 {offsets = [2, 0], sizes = [16, 16], strides = [1, 1]} : vector<22x16xf32> to vector<16x16xf32>
    %c69 = arith.constant 69 : index
    %566 = memref.load %arg2[%c69] : memref<98xf32, #tpu.memory_space<smem>>
    %567 = vector.broadcast %566 : f32 to vector<16x16xf32>
    %568 = arith.mulf %567, %565 : vector<16x16xf32>
    %569 = arith.addf %549, %568 : vector<16x16xf32>
    %570 = vector.extract_strided_slice %344 {offsets = [3, 0], sizes = [16, 16], strides = [1, 1]} : vector<22x16xf32> to vector<16x16xf32>
    %c76 = arith.constant 76 : index
    %571 = memref.load %arg2[%c76] : memref<98xf32, #tpu.memory_space<smem>>
    %572 = vector.broadcast %571 : f32 to vector<16x16xf32>
    %573 = arith.mulf %572, %570 : vector<16x16xf32>
    %574 = arith.addf %554, %573 : vector<16x16xf32>
    %575 = vector.extract_strided_slice %344 {offsets = [4, 0], sizes = [16, 16], strides = [1, 1]} : vector<22x16xf32> to vector<16x16xf32>
    %c83 = arith.constant 83 : index
    %576 = memref.load %arg2[%c83] : memref<98xf32, #tpu.memory_space<smem>>
    %577 = vector.broadcast %576 : f32 to vector<16x16xf32>
    %578 = arith.mulf %577, %575 : vector<16x16xf32>
    %579 = arith.addf %559, %578 : vector<16x16xf32>
    %580 = vector.extract_strided_slice %344 {offsets = [5, 0], sizes = [16, 16], strides = [1, 1]} : vector<22x16xf32> to vector<16x16xf32>
    %c90 = arith.constant 90 : index
    %581 = memref.load %arg2[%c90] : memref<98xf32, #tpu.memory_space<smem>>
    %582 = vector.broadcast %581 : f32 to vector<16x16xf32>
    %583 = arith.mulf %582, %580 : vector<16x16xf32>
    %584 = arith.addf %564, %583 : vector<16x16xf32>
    %585 = vector.extract_strided_slice %344 {offsets = [6, 0], sizes = [16, 16], strides = [1, 1]} : vector<22x16xf32> to vector<16x16xf32>
    %c97 = arith.constant 97 : index
    %586 = memref.load %arg2[%c97] : memref<98xf32, #tpu.memory_space<smem>>
    %587 = vector.broadcast %586 : f32 to vector<16x16xf32>
    %588 = arith.mulf %587, %585 : vector<16x16xf32>
    %589 = arith.addf %569, %588 : vector<16x16xf32>
    %590 = arith.addf %584, %589 : vector<16x16xf32>
    %591 = arith.addf %574, %579 : vector<16x16xf32>
    %592 = arith.addf %590, %591 : vector<16x16xf32>
    %c0_13 = arith.constant 0 : index
    %593 = memref.load %arg3[%c0_13] : memref<1xf32, #tpu.memory_space<smem>>
    %594 = vector.broadcast %593 : f32 to vector<16x16xf32>
    %595 = arith.addf %592, %594 : vector<16x16xf32>
    %cst_14 = arith.constant 0.000000e+00 : f32
    %596 = vector.broadcast %cst_14 : f32 to vector<16x16xf32>
    %597 = arith.subf %596, %595 : vector<16x16xf32>
    %598 = math.exp %597 : vector<16x16xf32>
    %cst_15 = arith.constant 1.000000e+00 : f32
    %599 = vector.broadcast %cst_15 : f32 to vector<16x16xf32>
    %600 = arith.addf %599, %598 : vector<16x16xf32>
    %601 = tpu.reciprocal %600 : vector<16x16xf32> -> vector<16x16xf32>
    %602 = vector.extract_strided_slice %601 {offsets = [0, 0], sizes = [1, 16], strides = [1, 1]} : vector<16x16xf32> to vector<1x16xf32>
    %603 = vector.extract_strided_slice %601 {offsets = [1, 0], sizes = [1, 16], strides = [1, 1]} : vector<16x16xf32> to vector<1x16xf32>
    %604 = vector.extract_strided_slice %601 {offsets = [2, 0], sizes = [1, 16], strides = [1, 1]} : vector<16x16xf32> to vector<1x16xf32>
    %605 = vector.extract_strided_slice %601 {offsets = [3, 0], sizes = [1, 16], strides = [1, 1]} : vector<16x16xf32> to vector<1x16xf32>
    %606 = vector.extract_strided_slice %601 {offsets = [4, 0], sizes = [1, 16], strides = [1, 1]} : vector<16x16xf32> to vector<1x16xf32>
    %607 = vector.extract_strided_slice %601 {offsets = [5, 0], sizes = [1, 16], strides = [1, 1]} : vector<16x16xf32> to vector<1x16xf32>
    %608 = vector.extract_strided_slice %601 {offsets = [6, 0], sizes = [1, 16], strides = [1, 1]} : vector<16x16xf32> to vector<1x16xf32>
    %609 = vector.extract_strided_slice %601 {offsets = [7, 0], sizes = [1, 16], strides = [1, 1]} : vector<16x16xf32> to vector<1x16xf32>
    %610 = vector.extract_strided_slice %601 {offsets = [8, 0], sizes = [1, 16], strides = [1, 1]} : vector<16x16xf32> to vector<1x16xf32>
    %611 = vector.extract_strided_slice %601 {offsets = [9, 0], sizes = [1, 16], strides = [1, 1]} : vector<16x16xf32> to vector<1x16xf32>
    %612 = vector.extract_strided_slice %601 {offsets = [10, 0], sizes = [1, 16], strides = [1, 1]} : vector<16x16xf32> to vector<1x16xf32>
    %613 = vector.extract_strided_slice %601 {offsets = [11, 0], sizes = [1, 16], strides = [1, 1]} : vector<16x16xf32> to vector<1x16xf32>
    %614 = vector.extract_strided_slice %601 {offsets = [12, 0], sizes = [1, 16], strides = [1, 1]} : vector<16x16xf32> to vector<1x16xf32>
    %615 = vector.extract_strided_slice %601 {offsets = [13, 0], sizes = [1, 16], strides = [1, 1]} : vector<16x16xf32> to vector<1x16xf32>
    %616 = vector.extract_strided_slice %601 {offsets = [14, 0], sizes = [1, 16], strides = [1, 1]} : vector<16x16xf32> to vector<1x16xf32>
    %617 = vector.extract_strided_slice %601 {offsets = [15, 0], sizes = [1, 16], strides = [1, 1]} : vector<16x16xf32> to vector<1x16xf32>
    %618 = tpu.concatenate %602, %603, %604, %605, %606, %607, %608, %609, %610, %611, %612, %613, %614, %615, %616, %617 in 1 : vector<1x16xf32>, vector<1x16xf32>, vector<1x16xf32>, vector<1x16xf32>, vector<1x16xf32>, vector<1x16xf32>, vector<1x16xf32>, vector<1x16xf32>, vector<1x16xf32>, vector<1x16xf32>, vector<1x16xf32>, vector<1x16xf32>, vector<1x16xf32>, vector<1x16xf32>, vector<1x16xf32>, vector<1x16xf32> -> vector<1x256xf32>
    %c0_16 = arith.constant 0 : index
    %c0_17 = arith.constant 0 : index
    %c0_18 = arith.constant 0 : index
    %619 = vector.load %arg1[%c0_16, %c0_17, %c0_18] : memref<1x4x256xf32, #tpu.memory_space<vmem>>, vector<1x4x256xf32>
    %620 = vector.shape_cast %619 : vector<1x4x256xf32> to vector<4x256xf32>
    %621 = vector.broadcast %618 : vector<1x256xf32> to vector<4x256xf32>
    %622 = arith.mulf %620, %621 : vector<4x256xf32>
    %c0_19 = arith.constant 0 : index
    %c0_20 = arith.constant 0 : index
    %c0_21 = arith.constant 0 : index
    %623 = vector.load %arg4[%c0_19, %c0_20, %c0_21] : memref<1x4x256xf32, #tpu.memory_space<vmem>>, vector<1x4x256xf32>
    %624 = vector.shape_cast %623 : vector<1x4x256xf32> to vector<4x256xf32>
    %625 = vector.shape_cast %622 : vector<4x256xf32> to vector<1x4x256xf32>
    tpu.vector_store %arg4[%c0_19, %c0_20, %c0_21], %625 {strides = array<i32>} : memref<1x4x256xf32, #tpu.memory_space<vmem>>, vector<1x4x256xf32>,
    return
  }
  func.func @transform_0(%arg0: i32) -> (i32, i32, i32) {
    %c0_i32 = arith.constant 0 : i32
    %c0_i32_0 = arith.constant 0 : i32
    %c0_i32_1 = arith.constant 0 : i32
    return %arg0, %c0_i32, %c0_i32_0 : i32, i32, i32
  }
  func.func @transform_1(%arg0: i32) -> i32 {
    %c0_i32 = arith.constant 0 : i32
    %c0_i32_0 = arith.constant 0 : i32
    return %c0_i32 : i32
  }
  func.func @transform_2(%arg0: i32) -> i32 {
    %c0_i32 = arith.constant 0 : i32
    %c0_i32_0 = arith.constant 0 : i32
    return %c0_i32 : i32
  }
  func.func @transform_3(%arg0: i32) -> (i32, i32, i32) {
    %c0_i32 = arith.constant 0 : i32
    %c0_i32_0 = arith.constant 0 : i32
    %c0_i32_1 = arith.constant 0 : i32
    return %arg0, %c0_i32, %c0_i32_0 : i32, i32, i32
  }
}

</mosaic_0001>

<bundles_post_ra>
// kernel: tpu_custom_call.1
= control target key start
LH: loop header
LB: loop body
LE: loop exit
PB: predicated region body
PF: predicated region fallthrough
CT: control target
= control target key end

     0   :  { %s5226_s0 = inlined_call_operand.hbm [shape: f32[2,4,256], index: 0, kind: input, shape index: {}]   ;;  %s5227_s1 = inlined_call_operand.vmem [shape: f32[98], index: 1, kind: input, shape index: {}]   ;;  %s5228_s2 = inlined_call_operand.<no memory space> [shape: f32[1], index: 2, kind: input, shape index: {}]   ;;  %s5229_s3 = inlined_call_operand.hbm [shape: f32[2,4,256], index: 3, kind: output, shape index: {}]  }
   0x1   :  { %8 = sst [smem:[#allocation2]] %s5228_s2 }
   0x2   :  { %9 = vsyncpa [#allocation4], 0 }
   0x3   :  { %11 = vsyncpa [#allocation4 + $0x1], 0 }
   0x4   :  { %12 = vsyncpa [#allocation6], 0 }
   0x5   :  { %13 = vsyncpa [#allocation5], 0 }
   0x6   :  { %15 = vsyncpa [#allocation5 + $0x1], 0  ;;  %s3287_s14 = smov 0   ;;  %s3289_s15 = smov 0  }
   0x7   :  { %s3291_s16 = smov 0   ;;  %s3293_s17 = smov 0  }
   0x8 LB: > { %s3308_s2 = sadd.s32 4294967295, %s3240_s17   ;;  %s2924_s18 = sadd.s32 4294967294, %s3240_s17   ;;  %s3240_s17 = sphi %s3293_s17, %s5408_s17   ;;  %s3236_s16 = sphi %s3291_s16, %s5407_s16   ;;  %s3232_s15 = sphi %s3289_s15, %s5406_s15   ;;  %s3228_s14 = sphi %s3287_s14, %s5405_s14  }
   0x9   : > { %p41_p0 = scmp.ne.s32.totalorder %s3232_s15, %s3228_s14  ;;  %p42_p1 = scmp.eq.s32.totalorder %s3308_s2, 0 }
   0xa   : > { %p107_p2 = scmp.eq.s32.totalorder %s3308_s2, 1  ;;  %p113_p3 = scmp.eq.s32.totalorder %s2924_s18, 1 }
   0xb   : > { %p3317_p4 = por %p42_p1, %p41_p0  ;;  %p2925_p5 = scmp.ge.s32.totalorder %s3240_s17, 1 }
   0xc   : > { %p3322_p6 = por %p113_p3, %p41_p0  ;;  %p120_p7 = scmp.lt.s32.totalorder %s3240_s17, 3 }
   0xd   : > { %s132_s23 = sshll.u32 %s5227_s1, 4  ;;  %s3338_s25 = sadd.s32 1, %s3240_s17   ;;  %s133_s23 = int_to_ptr.vmem [resolvable:$true] %s132_s23 }
   0xe   : > { %p3330_p8 = pnand %p2925_p5, %p120_p7  ;;  %s25_s26 = ssub.s32 %s3240_s17, %s3338_s25 }
   0xf   : > { %p26_p12 = scmp.eq.s32.totalorder %s25_s26, 0  ;;  %s28_s27 = sadd.s32 1, %s3236_s16 }
  0x10   : > { %p3047_p10 = pneg %p3330_p8  ;;  %p35_p13 = scmp.ne.s32.totalorder %s3236_s16, %s3232_s15 }
  0x11   : > { %s3242_s28 = smov [#allocation7]   ;;  %p36_p0 = scmp.eq.s32.totalorder %s3240_s17, 0 }
  0x12   : > { %p3048_p11 = pnand %p3047_p10, %p42_p1  ;;  %p3353_p3 = por %p107_p2, %p35_p13 }
  0x13   : > { %s3348_s29 = scalar_select %p26_p12, %s3236_s16, %s28_s27  }
  0x14   : > { %3050 = dma.vmem_to_smem (!%p3048_p11), %s133_s23, 16, %s3242_s28, [#allocation6]  }
  0x15   : > { %s146_s4 = sand.u32 1, %s3236_s16   ;;  %p37_p5 = por %p36_p0, %p35_p13 }
  0x16   : > { %p3060_p7 = scmp.lt.s32.totalorder %s3240_s17, 2  ;;  %s2928_s5 = sshll.u32 %s146_s4, 3 }
  0x17   : > { %s3037_s6 = sshll.u32 %s3240_s17, 3  ;;  %s150_s11 = scalar_lea.vmem [#allocation3], %s2928_s5 }
  0x18   : > { %s155_s9 = scalar_lea.hbm %s5226_s0, %s3037_s6  ;;  %s159_s12 = sshll.u32 %s150_s11, 4  ;;  %s160_s12 = int_to_ptr.vmem [resolvable:$true] %s159_s12 }
  0x19   : > { %s157_s10 = sshll.u32 %s155_s9, 4  ;;  %p3363_p10 = pnand %p3060_p7, %p37_p5  ;;  %s158_s10 = int_to_ptr.hbm [resolvable:$true] %s157_s10 }
  0x1a   : > { %s147_s18 = scalar_lea.sflag [#allocation4], %s146_s4  ;;  %s3140_s21 = sshra.s32 %s158_s10, 4  ;;  %s3141_s21 = int_to_ptr.hbm [resolvable:$true] %s3140_s21 }
  0x1b   : > { %s3142_s22 = scalar_lea.hbm %s3141_s21, 8  ;;  %p3144_p11 = pneg %p3363_p10 }
  0x1c   : > { %p3143_p2 = scmp.ne.s32.totalorder %s3141_s21, %s3142_s22  ;;  %s3147_s27 = scalar_lea.hbm %s5226_s0, 16 }
  0x1d   : > { %p3148_p0 = scmp.lt.s32.totalorder %s3141_s21, %s5226_s0  ;;  %p3149_p5 = scmp.lt.s32.totalorder %s3147_s27, %s3142_s22 }
  0x1e   : > { %p3145_p12 = pnand %p3144_p11, %p3143_p2 }
  0x1f   : > { %p3150_p7 = por %p3149_p5, %p3148_p0 }
  0x20   : > { %p3146_p13 = pneg %p3145_p12 }
  0x22   : > { %p3151_p9 = pnand %p3150_p7, %p3146_p13 }
  0x24   : > { %3154 = shalt.err (!%p3151_p9)
}
  0x25   : > { %3054 = dma.hbm_to_vmem [thread:$0]  (!%p3363_p10), %s158_s10, 128, %s160_s12, %s147_s18  }
  0x26   : > { %168 = sbr.rel (%p3330_p8) target bundleno = 1155 (0x483), region = 32 }
  0x2b   : > { %s3380_s4 = sand.u32 1, %s3232_s15  }
  0x2c   : > { %s2932_s6 = sshll.u32 %s3380_s4, 3  ;;  %s171_s7 = scalar_lea.sflag [#allocation4], %s3380_s4 }
  0x2d   : > { %s174_s8 = scalar_lea.vmem [#allocation3], %s2932_s6 }
  0x2e   : > { %3215 = dma.done.wait (%p3317_p4), %s171_s7, 128  }
  0x2f   : > { %3217 = vsyncadd (%p3317_p4), %s171_s7, 4294967168 }
  0x30   : > { %3219 = dma.done.wait (%p42_p1), [#allocation6], 16  }
  0x31   : > { %3221 = vsyncadd (%p42_p1), [#allocation6], 4294967280 }
  0x32   : > { %185 = sfence }
  0x33   : > { %v3394_v0 = vld [vmem:[%s174_s8] sm:$0xff]  ;;  %vm211_vm0 = vcmask 1043456   ;;  %s3243_s19 = smov 3   ;;  %s3244_s24 = smov 99   ;;  %vm251_vm1 = vcmask 23552   ;;  %vm253_vm2 = vcmask 154624  }
  0x34   : > { %5240 = vst [vmem:[#allocation12_spill] sm:$0xff] %v3394_v0  ;;  %s3245_s9 = smov 67   ;;  %s3246_s10 = smov 115   ;;  %vm367_vm3 = vcmask 1042432   ;;  %vm370_vm4 = vcmask 1044480   ;;  %vm372_vm5 = vcmask 1045504  }
  0x35   : > { %206 = vst [vmem:[#allocation1] ss:$2 sm:$0xff] %v3394_v0  ;;  %s3247_s11 = smov 83   ;;  %s3248_s12 = smov 51   ;;  %vm374_vm6 = vcmask 1046528   ;;  %vm376_vm7 = vcmask 1040384  }
  0x36   : > { %s3249_s13 = smov 35   ;;  %s3250_s18 = smov 19   ;;  %vm378_vm8 = vcmask 1041408  }
  0x37   : > { %s3437_s21 = sld [smem:[#allocation7 + $0x1]]  ;;  %s3251_s22 = smov 127  }
  0x38   : > { %s2943_s23 = sld [smem:[#allocation7 + $0xf]] }
  0x39   : > { %s2947_s26 = sld [smem:[#allocation7 + $0x2b]] }
  0x3a   : > { %s2944_s27 = sld [smem:[#allocation7 + $0x16]] }
  0x3b   : > { %s3507_s28 = sld [smem:[#allocation7 + $0x2]] }
  0x3c   : > { %v207_v1 = vld.sshfl [vmem:[#allocation1] sm:$0xff pattern:$0x75316420]  ;;  %v208_v2 = vld.sshfl [vmem:[#allocation1 + $0x8] sm:$0xff pattern:$0x75316420] }
  0x3d   : > { %v212_v3 = vsel %vm211_vm0, %v207_v1, -inf  ;;  %226 = vst [vmem:[#allocation1] ss:$2 sm:$0xff] %v3394_v0  ;;  %v219_v7 = vsel %vm211_vm0, %v208_v2, -inf  ;;  %v623_v60 = vstv %s3437_s21  ;;  %s2945_s5 = sld [smem:[#allocation7 + $0x1d]] }
  0x3e   : > { %v213_v4 = vrot.slane %v212_v3, 4  ;;  %v220_v9 = vrot.slane %v219_v7, 4  ;;  %s2942_s7 = sld [smem:[#allocation7 + $0x8]] }
  0x3f   : > { %s2946_s8 = sld [smem:[#allocation7 + $0x24]] }
  0x40   : > { %v214_v5 = vmax.f32 %v212_v3, %v213_v4  ;;  %v221_v12 = vmax.f32 %v219_v7, %v220_v9  ;;  %s2956_s21 = sld [smem:[#allocation7 + $0xa]] }
  0x42   : > { %v215_v6 = vrot.slane %v214_v5, 2  ;;  %v222_v13 = vrot.slane %v221_v12, 2 }
  0x44   : > { %v216_v8 = vmax.f32 %v214_v5, %v215_v6  ;;  %v223_v14 = vmax.f32 %v221_v12, %v222_v13  ;;  %v227_v15 = vld.sshfl [vmem:[#allocation1] sm:$0xff pattern:$0x75316420]  ;;  %v228_v24 = vld.sshfl [vmem:[#allocation1 + $0x8] sm:$0xff pattern:$0x75316420] }
  0x45   : > { %v231_v16 = vsel %vm211_vm0, %v227_v15, 0.0  ;;  %v238_v26 = vsel %vm211_vm0, %v228_v24, 0.0 }
  0x46   : > { %v217_v10 = vrot.slane %v216_v8, 1  ;;  %v224_v17 = vrot.slane %v223_v14, 1  ;;  %v232_v18 = vrot.slane %v231_v16, 4  ;;  %v239_v28 = vrot.slane %v238_v26, 4 }
  0x48   : > { %v218_v11 = vmax.f32 %v216_v8, %v217_v10  ;;  %v225_v19 = vmax.f32 %v223_v14, %v224_v17  ;;  %v233_v20 = vadd.f32 %v232_v18, %v231_v16  ;;  %v240_v29 = vadd.f32 %v239_v28, %v238_v26 }
  0x4a   : > { %248 = vrot.lane.b32.xlu0 %v218_v11, %s3243_s19  ;;  %260 = vrot.lane.b32.xlu1 %v218_v11, %s3244_s24  ;;  %v234_v21 = vrot.slane %v233_v20, 2  ;;  %v241_v30 = vrot.slane %v240_v29, 2 }
  0x4b   : > { %270 = vrot.lane.b32.xlu2 %v218_v11, %s3245_s9 }
  0x4c   : > { %v235_v22 = vadd.f32 %v234_v21, %v233_v20  ;;  %v242_v31 = vadd.f32 %v241_v30, %v240_v29 }
  0x4e   : > { %v236_v23 = vrot.slane %v235_v22, 1  ;;  %v243_v32 = vrot.slane %v242_v31, 1 }
  0x50   : > { %v237_v25 = vadd.f32 %v236_v23, %v235_v22  ;;  %v244_v33 = vadd.f32 %v243_v32, %v242_v31 }
  0x52   : > { %255 = vrot.lane.b32.xlu0 %v218_v11, %s3246_s10  ;;  %265 = vrot.lane.b32.xlu1 %v218_v11, %s3247_s11  ;;  %v245_v27 = vmul.f32 0.25, %v237_v25  ;;  %v246_v34 = vmul.f32 0.25, %v244_v33 }
  0x53   : > { %275 = vrot.lane.b32.xlu2 %v218_v11, %s3248_s12 }
  0x5a   : > { %280 = vrot.lane.b32.xlu0 %v218_v11, %s3249_s13  ;;  %285 = vrot.lane.b32.xlu1 %v218_v11, %s3250_s18 }
  0x5b   : > { %291 = vrot.lane.b32.xlu2 %v225_v19, %s3243_s19 }
  0x62   : > { %296 = vrot.lane.b32.xlu0 %v225_v19, %s3246_s10  ;;  %301 = vrot.lane.b32.xlu1 %v225_v19, %s3244_s24 }
  0x63   : > { %306 = vrot.lane.b32.xlu2 %v225_v19, %s3247_s11 }
  0x6a   : > { %311 = vrot.lane.b32.xlu0 %v225_v19, %s3245_s9  ;;  %316 = vrot.lane.b32.xlu1 %v225_v19, %s3248_s12 }
  0x6b   : > { %321 = vrot.lane.b32.xlu2 %v225_v19, %s3249_s13 }
  0x72   : > { %326 = vrot.lane.b32.xlu0 %v225_v19, %s3250_s18  ;;  %397 = vrot.lane.b32.xlu1 %v245_v27, %s3243_s19 }
  0x73   : > { %402 = vrot.lane.b32.xlu2 %v245_v27, %s3246_s10 }
  0x7a   : > { %407 = vrot.lane.b32.xlu0 %v245_v27, %s3244_s24  ;;  %412 = vrot.lane.b32.xlu1 %v245_v27, %s3247_s11 }
  0x7b   : > { %417 = vrot.lane.b32.xlu2 %v245_v27, %s3245_s9 }
  0x82   : > { %422 = vrot.lane.b32.xlu0 %v245_v27, %s3248_s12  ;;  %427 = vrot.lane.b32.xlu1 %v245_v27, %s3249_s13 }
  0x83   : > { %432 = vrot.lane.b32.xlu2 %v245_v27, %s3250_s18 }
  0x8a   : > { %438 = vrot.lane.b32.xlu0 %v246_v34, %s3243_s19  ;;  %443 = vrot.lane.b32.xlu1 %v246_v34, %s3246_s10  ;;  %s3252_s19 = smov 126   ;;  %s2951_s10 = sld [smem:[#allocation7 + $0x17]] }
  0x8b   : > { %448 = vrot.lane.b32.xlu2 %v246_v34, %s3244_s24  ;;  %s2949_s24 = sld [smem:[#allocation7 + $0x9]] }
  0x92   : > { %453 = vrot.lane.b32.xlu0 %v246_v34, %s3247_s11  ;;  %458 = vrot.lane.b32.xlu1 %v246_v34, %s3245_s9  ;;  %s2950_s9 = sld [smem:[#allocation7 + $0x10]] }
  0x93   : > { %463 = vrot.lane.b32.xlu2 %v246_v34, %s3248_s12  ;;  %s2952_s11 = sld [smem:[#allocation7 + $0x1e]] }
  0x94   : > { %s2953_s12 = sld [smem:[#allocation7 + $0x25]] }
  0x9a   : > { %468 = vrot.lane.b32.xlu0 %v246_v34, %s3249_s13  ;;  %473 = vrot.lane.b32.xlu1 %v246_v34, %s3250_s18  ;;  %s3618_s13 = sld [smem:[#allocation7 + $0x3]] }
  0x9b   : > { %s2954_s18 = sld [smem:[#allocation7 + $0x2c]] }
  0xa5   : > { %v271_v35 = vpop.permute.xlu2 %270 }
  0xa6   : > { %v273_v44 = vsel %vm251_vm1, 0.0, %v271_v35 }
  0xa7   : > { %v274_v52 = vsel %vm253_vm2, %v273_v44, 0.0 }
  0xa8   : > { %v344_v58 = vrot.slane %v274_v52, 1 }
  0xad   : > { %v276_v38 = vpop.permute.xlu2 %275 }
  0xae   : > { %v278_v5 = vsel %vm251_vm1, 0.0, %v276_v38 }
  0xaf   : > { %v279_v12 = vsel %vm253_vm2, %v278_v5, 0.0 }
  0xb5   : > { %v292_v55 = vpop.permute.xlu2 %291 }
  0xb6   : > { %v294_v9 = vsel %vm251_vm1, 0.0, %v292_v55 }
  0xb7   : > { %v295_v14 = vsel %vm253_vm2, %v294_v9, 0.0 }
  0xb8   : > { %v353_v18 = vrot.slane %v295_v14, 5 }
  0xbc   : > { %v249_v36 = vpop.permute.xlu0 %248  ;;  %v261_v37 = vpop.permute.xlu1 %260 }
  0xbd   : > { %v252_v39 = vsel %vm251_vm1, 0.0, %v249_v36  ;;  %v263_v40 = vsel %vm251_vm1, 0.0, %v261_v37  ;;  %v307_v11 = vpop.permute.xlu2 %306 }
  0xbe   : > { %v254_v41 = vsel %vm253_vm2, %v252_v39, 0.0  ;;  %v264_v42 = vsel %vm253_vm2, %v263_v40, 0.0  ;;  %v309_v24 = vsel %vm251_vm1, 0.0, %v307_v11  ;;  %v786_v11 = vstv %s3507_s28  ;;  %s2959_s28 = sld [smem:[#allocation7 + $0x1f]] }
  0xbf   : > { %v332_v43 = vrot.slane %v254_v41, 5  ;;  %v338_v49 = vrot.slane %v264_v42, 3  ;;  %v310_v28 = vsel %vm253_vm2, %v309_v24, 0.0 }
  0xc0   : > { %v362_v31 = vrot.slane %v310_v28, 2  ;;  %v740_v28 = vstv %s2946_s8  ;;  %s2962_s8 = sld [smem:[#allocation7 + $0x4]] }
  0xc1   : > { %v368_v56 = vsel %vm367_vm3, 0.0, %v332_v43 }
  0xc4   : > { %v256_v45 = vpop.permute.xlu0 %255  ;;  %v266_v46 = vpop.permute.xlu1 %265 }
  0xc5   : > { %v258_v47 = vsel %vm251_vm1, 0.0, %v256_v45  ;;  %v268_v48 = vsel %vm251_vm1, 0.0, %v266_v46  ;;  %v322_v29 = vpop.permute.xlu2 %321 }
  0xc6   : > { %v259_v50 = vsel %vm253_vm2, %v258_v47, 0.0  ;;  %v269_v51 = vsel %vm253_vm2, %v268_v48, 0.0  ;;  %v324_v33 = vsel %vm251_vm1, 0.0, %v322_v29  ;;  %v665_v48 = vstv %s2943_s23  ;;  %s2957_s23 = sld [smem:[#allocation7 + $0x11]] }
  0xc7   : > { %v335_v53 = vrot.slane %v259_v50, 4  ;;  %v341_v54 = vrot.slane %v269_v51, 2  ;;  %v325_v39 = vsel %vm253_vm2, %v324_v33, 0.0 }
  0xc8   : > { %v386_v43 = vrot.slane %v325_v39, 7 }
  0xc9   : > { %v369_v57 = vsel %vm211_vm0, %v368_v56, %v335_v53 }
  0xca   : > { %v371_v59 = vsel %vm370_vm4, %v369_v57, %v338_v49 }
  0xcb   : > { %v373_v61 = vsel %vm372_vm5, %v371_v59, %v341_v54 }
  0xcc   : > { %v3452_v62 = vsel %vm374_vm6, %v373_v61, %v344_v58  ;;  %v281_v63 = vpop.permute.xlu0 %280  ;;  %v286_v1 = vpop.permute.xlu1 %285  ;;  %v3513_v61 = vstv %s2947_s26  ;;  %s3253_s26 = smov 125  }
  0xcd   : > { %v283_v2 = vsel %vm251_vm1, 0.0, %v281_v63  ;;  %v288_v3 = vsel %vm251_vm1, 0.0, %v286_v1  ;;  %v3457_v4 = vmul.f32 %v623_v60, %v3452_v62  ;;  %v666_v54 = vmul.f32 %v665_v48, %v3452_v62 }
  0xce   : > { %v284_v6 = vsel %vm253_vm2, %v283_v2, 0.0  ;;  %v289_v8 = vsel %vm253_vm2, %v288_v3, 0.0  ;;  %v690_v63 = vstv %s2944_s27  ;;  %v741_v33 = vmul.f32 %v740_v28, %v3452_v62  ;;  %s2958_s27 = sld [smem:[#allocation7 + $0x18]] }
  0xcf   : > { %v347_v7 = vrot.slane %v284_v6, 7  ;;  %v628_v10 = vrot.slane %v3457_v4, 5  ;;  %v350_v13 = vrot.slane %v289_v8, 6  ;;  %v672_v59 = vrot.slane %v666_v54, 1 }
  0xd0   : > { %v691_v8 = vmul.f32 %v690_v63, %v3452_v62 }
  0xd1   : > { %631 = vrot.lane.b32.xlu2 %v628_v10, %s3251_s22  ;;  %v377_v15 = vsel %vm376_vm7, %v279_v12, %v347_v7 }
  0xd2   : > { %v379_v21 = vsel %vm378_vm8, %v377_v15, %v350_v13  ;;  %v697_v12 = vrot.slane %v691_v8, 1  ;;  %v715_v15 = vstv %s2945_s5  ;;  %v762_v8 = vmul.f32 %v3513_v61, %v3452_v62  ;;  %s2960_s5 = sld [smem:[#allocation7 + $0x26]] }
  0xd3   : > { %v380_v26 = vsel %vm367_vm3, %v379_v21, %v353_v18  ;;  %v644_v21 = vstv %s2942_s7  ;;  %s2961_s7 = sld [smem:[#allocation7 + $0x2d]] }
  0xd4   : > { %v297_v16 = vpop.permute.xlu0 %296  ;;  %v302_v17 = vpop.permute.xlu1 %301  ;;  %v645_v24 = vmul.f32 %v644_v21, %v3452_v62 }
  0xd5   : > { %v299_v19 = vsel %vm251_vm1, 0.0, %v297_v16  ;;  %v304_v20 = vsel %vm251_vm1, 0.0, %v302_v17 }
  0xd6   : > { %v300_v22 = vsel %vm253_vm2, %v299_v19, 0.0  ;;  %v305_v23 = vsel %vm253_vm2, %v304_v20, 0.0  ;;  %v716_v20 = vmul.f32 %v715_v15, %v3452_v62 }
  0xd7   : > { %v356_v25 = vrot.slane %v300_v22, 4  ;;  %v359_v27 = vrot.slane %v305_v23, 3 }
  0xd9   : > { %v381_v30 = vsel %vm211_vm0, %v380_v26, %v356_v25  ;;  %v722_v25 = vrot.slane %v716_v20, 1 }
  0xda   : > { %v382_v34 = vsel %vm370_vm4, %v381_v30, %v359_v27 }
  0xdb   : > { %v383_v40 = vsel %vm372_vm5, %v382_v34, %v362_v31  ;;  %v651_v31 = vrot.slane %v645_v24, 1 }
  0xdc   : > { %v312_v32 = vpop.permute.xlu0 %311  ;;  %v317_v36 = vpop.permute.xlu1 %316 }
  0xdd   : > { %v314_v35 = vsel %vm251_vm1, 0.0, %v312_v32  ;;  %v319_v41 = vsel %vm251_vm1, 0.0, %v317_v36  ;;  %v747_v36 = vrot.slane %v741_v33, 5 }
  0xde   : > { %v315_v37 = vsel %vm253_vm2, %v314_v35, 0.0  ;;  %v320_v45 = vsel %vm253_vm2, %v319_v41, 0.0 }
  0xdf   : > { %v365_v38 = vrot.slane %v315_v37, 1  ;;  %v391_v52 = vsel %vm376_vm7, %v320_v45, %v386_v43  ;;  %v787_v37 = vmul.f32 %v786_v11, %v3452_v62  ;;  %v807_v43 = vstv %s2949_s24  ;;  %s2963_s24 = sld [smem:[#allocation7 + $0xb]] }
  0xe1   : > { %v3487_v42 = vsel %vm374_vm6, %v383_v40, %v365_v38  ;;  %v791_v39 = vrot.slane %v787_v37, 6 }
  0xe2   : > { %v3490_v44 = vmul.f32 %v623_v60, %v3487_v42  ;;  %v3496_v50 = vmul.f32 %v665_v48, %v3487_v42  ;;  %v692_v5 = vmul.f32 %v690_v63, %v3487_v42  ;;  %v788_v13 = vmul.f32 %v786_v11, %v3487_v42 }
  0xe3   : > { %v717_v17 = vmul.f32 %v715_v15, %v3487_v42  ;;  %v3532_v22 = vmul.f32 %v644_v21, %v3487_v42  ;;  %v742_v30 = vmul.f32 %v740_v28, %v3487_v42  ;;  %v763_v40 = vmul.f32 %v3513_v61, %v3487_v42 }
  0xe4   : > { %v327_v46 = vpop.permute.xlu0 %326  ;;  %v629_v47 = vrot.slane %v3490_v44, 5  ;;  %v673_v56 = vrot.slane %v3496_v50, 1  ;;  %v698_v9 = vrot.slane %v692_v5, 1  ;;  %v792_v18 = vrot.slane %v788_v13, 6 }
  0xe5   : > { %v329_v49 = vsel %vm251_vm1, 0.0, %v327_v46  ;;  %v723_v23 = vrot.slane %v717_v17, 1  ;;  %v652_v27 = vrot.slane %v3532_v22, 1  ;;  %v748_v35 = vrot.slane %v742_v30, 5 }
  0xe6   : > { %v330_v51 = vsel %vm253_vm2, %v329_v49, 0.0  ;;  %635 = vrot.lane.b32.xlu1 %v629_v47, %s3251_s22  ;;  %v674_v1 = vsel %vm374_vm6, %v672_v59, %v673_v56  ;;  %v699_v16 = vsel %vm374_vm6, %v697_v12, %v698_v9  ;;  %v769_v45 = vrot.slane %v763_v40, 5 }
  0xe7   : > { %v389_v53 = vrot.slane %v330_v51, 6  ;;  %v724_v29 = vsel %vm374_vm6, %v722_v25, %v723_v23  ;;  %v653_v34 = vsel %vm374_vm6, %v651_v31, %v652_v27  ;;  %v749_v38 = vsel %vm367_vm3, %v747_v36, %v748_v35  ;;  %v3558_v51 = vpop.permute.xlu2 %402 }
  0xe8   : > { %v808_v46 = vmul.f32 %v807_v43, %v3452_v62  ;;  %v630_v54 = vsel %vm367_vm3, %v628_v10, %v629_v47  ;;  %v832_v44 = vstv %s2950_s9  ;;  %s3254_s9 = smov 124  }
  0xe9   : > { %v392_v55 = vsel %vm378_vm8, %v391_v52, %v389_v53  ;;  %v793_v52 = vsel %vm378_vm8, %v791_v39, %v792_v18  ;;  %v809_v53 = vmul.f32 %v807_v43, %v3487_v42  ;;  %v834_v47 = vmul.f32 %v832_v44, %v3487_v42 }
  0xea   : > { %v393_v57 = vsel %vm367_vm3, %v392_v55, 0.0  ;;  %v814_v49 = vrot.slane %v808_v46, 6 }
  0xeb   : > { %v394_v58 = vsel %vm211_vm0, %v393_v57, 0.0 }
  0xec   : > { %v3511_v60 = vsel %vm370_vm4, %v394_v58, 0.0  ;;  %v815_v58 = vrot.slane %v809_v53, 6  ;;  %v3616_v36 = vpop.permute.xlu0 %407 }
  0xed   : > { %v764_v2 = vmul.f32 %v3513_v61, %v3511_v60  ;;  %v668_v3 = vmul.f32 %v665_v48, %v3511_v60  ;;  %v693_v14 = vmul.f32 %v690_v63, %v3511_v60  ;;  %v718_v26 = vmul.f32 %v715_v15, %v3511_v60 }
  0xee   : > { %677 = vrot.lane.b32.xlu1 %v674_v1, %s3251_s22  ;;  %v647_v57 = vmul.f32 %v644_v21, %v3511_v60  ;;  %v816_v4 = vsel %vm378_vm8, %v814_v49, %v815_v58  ;;  %v835_v10 = vmul.f32 %v832_v44, %v3511_v60  ;;  %v853_v15 = vstv %s2951_s10  ;;  %s2964_s10 = sld [smem:[#allocation7 + $0x12]] }
  0xef   : > { %v771_v6 = vrot.slane %v764_v2, 5  ;;  %v675_v7 = vrot.slane %v668_v3, 1  ;;  %v700_v19 = vrot.slane %v693_v14, 1  ;;  %v725_v32 = vrot.slane %v718_v26, 1  ;;  %v3575_v59 = vpop.permute.xlu2 %417  ;;  %v3581_v2 = vpop.permute.xlu1 %397 }
  0xf0   : > { %v654_v1 = vrot.slane %v647_v57, 1  ;;  %v768_v14 = vrot.slane %v762_v8, 5  ;;  %v854_v20 = vmul.f32 %v853_v15, %v3452_v62  ;;  %v833_v21 = vmul.f32 %v832_v44, %v3452_v62 }
  0xf1   : > { %777 = vrot.lane.b32.xlu2 %v771_v6, %s3251_s22  ;;  %681 = vrot.lane.b32.xlu0 %v675_v7, %s3251_s22  ;;  %v676_v41 = vsel %vm374_vm6, %v673_v56, %v675_v7  ;;  %v772_v48 = vsel %vm367_vm3, %v769_v45, %v771_v6  ;;  %v701_v50 = vsel %vm374_vm6, %v698_v9, %v700_v19  ;;  %v842_v7 = vrot.slane %v835_v10, 2 }
  0xf2   : > { %v726_v55 = vsel %vm374_vm6, %v723_v23, %v725_v32  ;;  %v743_v56 = vmul.f32 %v740_v28, %v3511_v60  ;;  %v655_v5 = vsel %vm374_vm6, %v652_v27, %v654_v1  ;;  %v810_v6 = vmul.f32 %v807_v43, %v3511_v60 }
  0xf3   : > { %v840_v9 = vrot.slane %v834_v47, 2  ;;  %v770_v17 = vsel %vm367_vm3, %v768_v14, %v769_v45  ;;  %v860_v24 = vrot.slane %v854_v20, 2  ;;  %v839_v25 = vrot.slane %v833_v21, 2 }
  0xf4   : > { %v750_v63 = vrot.slane %v743_v56, 5  ;;  %v817_v11 = vrot.slane %v810_v6, 6  ;;  %v878_v27 = vstv %s2952_s11  ;;  %v970_v47 = vstv %s2956_s21  ;;  %s2965_s11 = sld [smem:[#allocation7 + $0x19]] }
  0xf5   : > { %v843_v13 = vsel %vm372_vm5, %v840_v9, %v842_v7  ;;  %v881_v30 = vmul.f32 %v878_v27, %v3511_v60  ;;  %v880_v31 = vmul.f32 %v878_v27, %v3487_v42  ;;  %s3796_s21 = sld [smem:[#allocation7 + $0x5]] }
  0xf6   : > { %702 = vrot.lane.b32.xlu1 %v699_v16, %s3251_s22  ;;  %v751_v3 = vsel %vm367_vm3, %v748_v35, %v750_v63  ;;  %v818_v16 = vsel %vm378_vm8, %v815_v58, %v817_v11 }
  0xf7   : > { %v3590_v12 = vpop.permute.xlu2 %432  ;;  %v3600_v61 = vpop.permute.xlu1 %412  ;;  %v886_v35 = vrot.slane %v880_v31, 2 }
  0xf9   : > { %798 = vrot.lane.b32.xlu2 %v792_v18, %s3252_s19  ;;  %706 = vrot.lane.b32.xlu0 %v700_v19, %s3251_s22  ;;  %v856_v18 = vmul.f32 %v853_v15, %v3511_v60  ;;  %v855_v19 = vmul.f32 %v853_v15, %v3487_v42 }
  0xfb   : > { %v863_v22 = vrot.slane %v856_v18, 2  ;;  %v861_v23 = vrot.slane %v855_v19, 2  ;;  %v995_v18 = vstv %s2957_s23  ;;  %s2970_s23 = sld [smem:[#allocation7 + $0xc]] }
  0xfd   : > { %v862_v28 = vsel %vm372_vm5, %v860_v24, %v861_v23  ;;  %v864_v40 = vsel %vm372_vm5, %v861_v23, %v863_v22  ;;  %v972_v23 = vmul.f32 %v970_v47, %v3487_v42 }
  0xfe   : > { %727 = vrot.lane.b32.xlu1 %v724_v29, %s3251_s22  ;;  %v841_v29 = vsel %vm372_vm5, %v839_v25, %v840_v9 }
  0xff   : > { %v3605_v26 = vpop.permute.xlu2 %448  ;;  %v3614_v33 = vpop.permute.xlu1 %427 }
 0x101   : > { %656 = vrot.lane.b32.xlu2 %v653_v34, %s3251_s22  ;;  %731 = vrot.lane.b32.xlu0 %v725_v32, %s3251_s22  ;;  %v879_v32 = vmul.f32 %v878_v27, %v3452_v62  ;;  %v888_v34 = vrot.slane %v881_v30, 2 }
 0x103   : > { %v885_v37 = vrot.slane %v879_v32, 2  ;;  %v889_v57 = vsel %vm372_vm5, %v886_v35, %v888_v34 }
 0x106   : > { %752 = vrot.lane.b32.xlu1 %v749_v38, %s3251_s22  ;;  %v903_v38 = vstv %s2953_s12  ;;  %s2967_s12 = sld [smem:[#allocation7 + $0x27]] }
 0x107   : > { %v905_v43 = vmul.f32 %v903_v38, %v3487_v42  ;;  %v3625_v45 = vpop.permute.xlu2 %463  ;;  %v904_v46 = vmul.f32 %v903_v38, %v3452_v62 }
 0x109   : > { %794 = vrot.lane.b32.xlu0 %v791_v39, %s3252_s19  ;;  %679 = vrot.lane.b32.xlu2 %v676_v41, %s3251_s22  ;;  %v887_v39 = vsel %vm372_vm5, %v885_v37, %v886_v35  ;;  %v906_v41 = vmul.f32 %v903_v38, %v3511_v60  ;;  %v910_v53 = vrot.slane %v904_v46, 2  ;;  %v997_v35 = vmul.f32 %v995_v18, %v3487_v42 }
 0x10a   : > { %v973_v37 = vmul.f32 %v970_v47, %v3511_v60 }
 0x10c   : > { %v980_v46 = vrot.slane %v973_v37, 7 }
 0x10e   : > { %775 = vrot.lane.b32.xlu1 %v772_v48, %s3251_s22  ;;  %v913_v48 = vrot.slane %v906_v41, 2 }
 0x111   : > { %819 = vrot.lane.b32.xlu0 %v814_v49, %s3252_s19  ;;  %704 = vrot.lane.b32.xlu2 %v701_v50, %s3251_s22  ;;  %v911_v49 = vrot.slane %v905_v43, 2  ;;  %v949_v50 = vstv %s3618_s13  ;;  %v1003_v43 = vrot.slane %v997_v35, 7  ;;  %s2966_s13 = sld [smem:[#allocation7 + $0x20]] }
 0x112   : > { %v950_v58 = vmul.f32 %v949_v50, %v3452_v62  ;;  %v951_v7 = vmul.f32 %v949_v50, %v3487_v42 }
 0x113   : > { %v912_v56 = vsel %vm372_vm5, %v910_v53, %v911_v49  ;;  %v914_v9 = vsel %vm372_vm5, %v911_v49, %v913_v48 }
 0x116   : > { %796 = vrot.lane.b32.xlu1 %v793_v52, %s3252_s19  ;;  %v3631_v52 = vpop.permute.xlu1 %443 }
 0x119   : > { %633 = vrot.lane.b32.xlu0 %v630_v54, %s3251_s22  ;;  %729 = vrot.lane.b32.xlu2 %v726_v55, %s3251_s22  ;;  %v3634_v54 = vpop.permute.xlu0 %422  ;;  %v928_v55 = vstv %s2954_s18  ;;  %s2968_s18 = sld [smem:[#allocation7 + $0x2e]] }
 0x11a   : > { %v930_v63 = vmul.f32 %v928_v55, %v3487_v42  ;;  %v929_v1 = vmul.f32 %v928_v55, %v3452_v62  ;;  %v931_v11 = vmul.f32 %v928_v55, %v3511_v60 }
 0x11c   : > { %v936_v10 = vrot.slane %v930_v63, 6  ;;  %v998_v63 = vmul.f32 %v995_v18, %v3511_v60 }
 0x11e   : > { %821 = vrot.lane.b32.xlu1 %v816_v4, %s3252_s19  ;;  %v954_v4 = vrot.slane %v950_v58, 7  ;;  %v3647_v6 = vpop.permute.xlu1 %458 }
 0x121   : > { %754 = vrot.lane.b32.xlu2 %v751_v3, %s3251_s22  ;;  %658 = vrot.lane.b32.xlu0 %v655_v5, %s3251_s22  ;;  %v935_v3 = vrot.slane %v929_v1, 6  ;;  %v971_v5 = vmul.f32 %v970_v47, %v3452_v62 }
 0x123   : > { %v937_v8 = vsel %vm378_vm8, %v935_v3, %v936_v10  ;;  %v977_v15 = vrot.slane %v971_v5, 7  ;;  %v1005_v5 = vrot.slane %v998_v63, 7  ;;  %v1116_v63 = vstv %s2962_s8  ;;  %s2974_s8 = sld [smem:[#allocation7 + $0x28]] }
 0x126   : > { %846 = vrot.lane.b32.xlu1 %v843_v13, %s3252_s19  ;;  %v3653_v13 = vpop.permute.xlu0 %438  ;;  %v3660_v19 = vpop.permute.xlu1 %473 }
 0x129   : > { %823 = vrot.lane.b32.xlu2 %v818_v16, %s3252_s19  ;;  %773 = vrot.lane.b32.xlu0 %v770_v17, %s3251_s22  ;;  %v955_v16 = vrot.slane %v951_v7, 7  ;;  %v938_v17 = vrot.slane %v931_v11, 6  ;;  %v1066_v7 = vstv %s2960_s5  ;;  %s2972_s5 = sld [smem:[#allocation7 + $0x1a]] }
 0x12a   : > { %v1068_v11 = vmul.f32 %v1066_v7, %v3487_v42 }
 0x12b   : > { %v3643_v44 = vpop.permute.xlu2 %631  ;;  %v956_v20 = vsel %vm376_vm7, %v954_v4, %v955_v16  ;;  %v939_v21 = vsel %vm378_vm8, %v936_v10, %v938_v17  ;;  %v1006_v17 = vsel %vm376_vm7, %v1003_v43, %v1005_v5 }
 0x12e   : > { %869 = vrot.lane.b32.xlu1 %v863_v22, %s3252_s19  ;;  %v996_v22 = vmul.f32 %v995_v18, %v3452_v62  ;;  %v3668_v24 = vpop.permute.xlu0 %453 }
 0x130   : > { %v1002_v27 = vrot.slane %v996_v22, 7 }
 0x131   : > { %865 = vrot.lane.b32.xlu2 %v862_v28, %s3252_s19  ;;  %844 = vrot.lane.b32.xlu0 %v841_v29, %s3252_s19  ;;  %v978_v28 = vrot.slane %v972_v23, 7  ;;  %v1020_v29 = vstv %s2958_s27  ;;  %v1074_v23 = vrot.slane %v1068_v11, 3  ;;  %s2971_s27 = sld [smem:[#allocation7 + $0x13]] }
 0x132   : > { %v1022_v30 = vmul.f32 %v1020_v29, %v3487_v42  ;;  %v1021_v31 = vmul.f32 %v1020_v29, %v3452_v62  ;;  %v1023_v58 = vmul.f32 %v1020_v29, %v3511_v60 }
 0x134   : > { %v1028_v38 = vrot.slane %v1022_v30, 3  ;;  %v1027_v41 = vrot.slane %v1021_v31, 3  ;;  %v1030_v3 = vrot.slane %v1023_v58, 3 }
 0x136   : > { %894 = vrot.lane.b32.xlu1 %v888_v34, %s3252_s19  ;;  %v979_v34 = vsel %vm376_vm7, %v977_v15, %v978_v28  ;;  %v1029_v49 = vsel %vm370_vm4, %v1027_v41, %v1028_v38 }
 0x139   : > { %890 = vrot.lane.b32.xlu2 %v887_v39, %s3252_s19  ;;  %867 = vrot.lane.b32.xlu0 %v864_v40, %s3252_s19  ;;  %v3682_v39 = vpop.permute.xlu0 %468 }
 0x13e   : > { %919 = vrot.lane.b32.xlu1 %v913_v48, %s3252_s19  ;;  %v1041_v48 = vstv %s2959_s28  ;;  %s3255_s28 = smov 123  }
 0x13f   : > { %v1044_v50 = vmul.f32 %v1041_v48, %v3511_v60  ;;  %v1043_v53 = vmul.f32 %v1041_v48, %v3487_v42 }
 0x141   : > { %915 = vrot.lane.b32.xlu2 %v912_v56, %s3252_s19  ;;  %892 = vrot.lane.b32.xlu0 %v889_v57, %s3252_s19  ;;  %v1004_v56 = vsel %vm376_vm7, %v1002_v27, %v1003_v43  ;;  %v981_v57 = vsel %vm376_vm7, %v978_v28, %v980_v46  ;;  %v1051_v1 = vrot.slane %v1044_v50, 3  ;;  %v1049_v47 = vrot.slane %v1043_v53, 3 }
 0x146   : > { %957 = vrot.lane.b32.xlu1 %v954_v4, %s3253_s26 }
 0x149   : > { %940 = vrot.lane.b32.xlu2 %v937_v8, %s3252_s19  ;;  %917 = vrot.lane.b32.xlu0 %v914_v9, %s3252_s19  ;;  %v1052_v8 = vsel %vm370_vm4, %v1049_v47, %v1051_v1  ;;  %v1069_v9 = vmul.f32 %v1066_v7, %v3511_v60 }
 0x14b   : > { %v3657_v14 = vpop.permute.xlu2 %777  ;;  %v1076_v18 = vrot.slane %v1069_v9, 3  ;;  %v1130_v9 = vstv %s2963_s24  ;;  %s2975_s24 = sld [smem:[#allocation7 + $0x2f]] }
 0x14c   : > { %v1133_v11 = vmul.f32 %v1130_v9, %v3511_v60 }
 0x14d   : > { %v1077_v28 = vsel %vm370_vm4, %v1074_v23, %v1076_v18 }
 0x14e   : > { %982 = vrot.lane.b32.xlu1 %v977_v15, %s3253_s26 }
 0x151   : > { %959 = vrot.lane.b32.xlu2 %v956_v20, %s3253_s26  ;;  %942 = vrot.lane.b32.xlu0 %v939_v21, %s3252_s19  ;;  %v1042_v20 = vmul.f32 %v1041_v48, %v3452_v62 }
 0x153   : > { %v3670_v25 = vpop.permute.xlu2 %798  ;;  %v1048_v30 = vrot.slane %v1042_v20, 3 }
 0x154   : > { %5241 = vst [vmem:[#allocation13_spill] sm:$0xff] %v3670_v25 }
 0x155   : > { %v1050_v35 = vsel %vm370_vm4, %v1048_v30, %v1049_v47  ;;  %v1132_v30 = vmul.f32 %v1130_v9, %v3487_v42 }
 0x156   : > { %1007 = vrot.lane.b32.xlu1 %v1002_v27, %s3253_s26  ;;  %v1091_v27 = vstv %s2961_s7  ;;  %s2973_s7 = sld [smem:[#allocation7 + $0x21]] }
 0x157   : > { %v1094_v29 = vmul.f32 %v1091_v27, %v3511_v60  ;;  %v1093_v31 = vmul.f32 %v1091_v27, %v3487_v42 }
 0x158   : > { %v3675_v32 = vpop.permute.xlu1 %635 }
 0x159   : > { %984 = vrot.lane.b32.xlu2 %v979_v34, %s3253_s26  ;;  %961 = vrot.lane.b32.xlu0 %v955_v16, %s3253_s26  ;;  %v1031_v16 = vsel %vm370_vm4, %v1028_v38, %v1030_v3  ;;  %v1101_v37 = vrot.slane %v1094_v29, 3  ;;  %v1067_v38 = vmul.f32 %v1066_v7, %v3452_v62  ;;  %v1099_v46 = vrot.slane %v1093_v31, 3 }
 0x15b   : > { %v3684_v40 = vpop.permute.xlu2 %656  ;;  %v1102_v48 = vsel %vm370_vm4, %v1099_v46, %v1101_v37 }
 0x15e   : > { %1032 = vrot.lane.b32.xlu1 %v1029_v49, %s3253_s26  ;;  %v1073_v49 = vrot.slane %v1067_v38, 3  ;;  %v1170_v38 = vstv %s2965_s11  ;;  %s2977_s11 = sld [smem:[#allocation7 + $0xd]] }
 0x160   : > { %v3690_v55 = vpop.permute.xlu1 %677  ;;  %v1075_v53 = vsel %vm370_vm4, %v1073_v49, %v1074_v23 }
 0x161   : > { %1009 = vrot.lane.b32.xlu2 %v1004_v56, %s3253_s26  ;;  %986 = vrot.lane.b32.xlu0 %v981_v57, %s3253_s26  ;;  %v1092_v56 = vmul.f32 %v1091_v27, %v3452_v62  ;;  %v1150_v27 = vstv %s2964_s10  ;;  %s2976_s10 = sld [smem:[#allocation7 + $0x6]] }
 0x162   : > { %v1151_v29 = vmul.f32 %v1150_v27, %v3452_v62 }
 0x163   : > { %v3698_v4 = vpop.permute.xlu2 %679  ;;  %v3700_v10 = vpop.permute.xlu0 %681  ;;  %v1098_v47 = vrot.slane %v1092_v56, 3  ;;  %v1152_v56 = vmul.f32 %v1150_v27, %v3487_v42 }
 0x165   : > { %v1100_v5 = vsel %vm370_vm4, %v1098_v47, %v1099_v46  ;;  %v1173_v46 = vmul.f32 %v1170_v38, %v3511_v60 }
 0x166   : > { %1055 = vrot.lane.b32.xlu1 %v1052_v8, %s3253_s26 }
 0x168   : > { %v3706_v15 = vpop.permute.xlu1 %702 }
 0x169   : > { %1034 = vrot.lane.b32.xlu2 %v1031_v16, %s3253_s26  ;;  %1011 = vrot.lane.b32.xlu0 %v1006_v17, %s3253_s26  ;;  %v1131_v16 = vmul.f32 %v1130_v9, %v3452_v62  ;;  %v1117_v17 = vmul.f32 %v1116_v63, %v3452_v62 }
 0x16b   : > { %v3713_v21 = vpop.permute.xlu2 %704  ;;  %v3715_v22 = vpop.permute.xlu0 %706 }
 0x16e   : > { %1080 = vrot.lane.b32.xlu1 %v1077_v28, %s3253_s26  ;;  %v1153_v28 = vmul.f32 %v1150_v27, %v3511_v60 }
 0x170   : > { %v3721_v34 = vpop.permute.xlu1 %727 }
 0x171   : > { %1057 = vrot.lane.b32.xlu2 %v1051_v1, %s3253_s26  ;;  %1053 = vrot.lane.b32.xlu0 %v1050_v35, %s3253_s26  ;;  %v1118_v1 = vmul.f32 %v1116_v63, %v3487_v42 }
 0x173   : > { %v3727_v41 = vpop.permute.xlu2 %729  ;;  %v3729_v43 = vpop.permute.xlu0 %731 }
 0x176   : > { %1105 = vrot.lane.b32.xlu1 %v1102_v48, %s3253_s26  ;;  %v1211_v48 = vstv %s2967_s12  ;;  %s2979_s12 = sld [smem:[#allocation7 + $0x1b]] }
 0x177   : > { %v1213_v49 = vmul.f32 %v1211_v48, %v3487_v42  ;;  %v1212_v63 = vmul.f32 %v1211_v48, %v3452_v62 }
 0x178   : > { %v3733_v50 = vpop.permute.xlu1 %752 }
 0x179   : > { %1082 = vrot.lane.b32.xlu2 %v1076_v18, %s3253_s26  ;;  %1078 = vrot.lane.b32.xlu0 %v1075_v53, %s3253_s26  ;;  %v1171_v53 = vmul.f32 %v1170_v38, %v3452_v62  ;;  %v1219_v9 = vrot.slane %v1213_v49, 4  ;;  %v1172_v49 = vmul.f32 %v1170_v38, %v3487_v42 }
 0x17b   : > { %v3739_v57 = vpop.permute.xlu2 %754  ;;  %v3741_v58 = vpop.permute.xlu0 %794 }
 0x17c   : > { %5242 = vst [vmem:[#allocation14_spill] sm:$0xff] %v3739_v57 }
 0x17e   : > { %1123 = vrot.lane.b32.xlu1 %v1118_v1, %s3254_s9  ;;  %v1190_v1 = vstv %s2966_s13  ;;  %s3256_s13 = smov 122  }
 0x180   : > { %v3745_v3 = vpop.permute.xlu1 %775 }
 0x181   : > { %1107 = vrot.lane.b32.xlu2 %v1101_v37, %s3253_s26  ;;  %1103 = vrot.lane.b32.xlu0 %v1100_v5, %s3253_s26  ;;  %v1192_v5 = vmul.f32 %v1190_v1, %v3487_v42 }
 0x183   : > { %v3750_v7 = vpop.permute.xlu2 %823  ;;  %v3752_v8 = vpop.permute.xlu0 %819  ;;  %v1198_v27 = vrot.slane %v1192_v5, 4  ;;  %v1214_v5 = vmul.f32 %v1211_v48, %v3511_v60 }
 0x184   : > { %5243 = vst [vmem:[#allocation15_spill] sm:$0xff] %v3750_v7 }
 0x185   : > { %5244 = vst [vmem:[#allocation16_spill] sm:$0xff] %v3752_v8 }
 0x186   : > { %1141 = vrot.lane.b32.xlu1 %v1133_v11, %s3254_s9  ;;  %v1191_v11 = vmul.f32 %v1190_v1, %v3452_v62 }
 0x188   : > { %v3758_v18 = vpop.permute.xlu1 %796 }
 0x189   : > { %1137 = vrot.lane.b32.xlu2 %v1131_v16, %s3254_s9  ;;  %1121 = vrot.lane.b32.xlu0 %v1117_v17, %s3254_s9 }
 0x18b   : > { %v3762_v20 = vpop.permute.xlu2 %865  ;;  %v3764_v23 = vpop.permute.xlu0 %633 }
 0x18c   : > { %5245 = vst [vmem:[#allocation17_spill] sm:$0xff] %v3762_v20  ;;  %v1221_v20 = vrot.slane %v1214_v5, 4 }
 0x18e   : > { %1161 = vrot.lane.b32.xlu1 %v1153_v28, %s3254_s9  ;;  %v1218_v28 = vrot.slane %v1212_v63, 4 }
 0x190   : > { %v3770_v31 = vpop.permute.xlu1 %821 }
 0x191   : > { %1157 = vrot.lane.b32.xlu2 %v1151_v29, %s3254_s9  ;;  %1139 = vrot.lane.b32.xlu0 %v1132_v30, %s3254_s9  ;;  %v1236_v29 = vstv %s2968_s18  ;;  %v1220_v30 = vsel %vm211_vm0, %v1218_v28, %v1219_v9  ;;  %v1193_v28 = vmul.f32 %v1190_v1, %v3511_v60  ;;  %v1222_v1 = vsel %vm211_vm0, %v1219_v9, %v1221_v20  ;;  %s2978_s18 = sld [smem:[#allocation7 + $0x14]] }
 0x193   : > { %v3774_v35 = vpop.permute.xlu2 %890  ;;  %v3776_v37 = vpop.permute.xlu0 %658 }
 0x194   : > { %5246 = vst [vmem:[#allocation18_spill] sm:$0xff] %v3774_v35  ;;  %v1353_v35 = vstv %s2973_s7  ;;  %s2991_s7 = sld [smem:[#allocation7 + $0x39]] }
 0x196   : > { %1181 = vrot.lane.b32.xlu1 %v1173_v46, %s3254_s9  ;;  %v1238_v46 = vmul.f32 %v1236_v29, %v3487_v42 }
 0x198   : > { %v3784_v47 = vpop.permute.xlu1 %846 }
 0x199   : > { %5247 = vst [vmem:[#allocation19_spill] sm:$0xff] %v3784_v47  ;;  %1177 = vrot.lane.b32.xlu2 %v1171_v53, %s3254_s9  ;;  %1159 = vrot.lane.b32.xlu0 %v1152_v56, %s3254_s9  ;;  %v1197_v53 = vrot.slane %v1191_v11, 4  ;;  %v1237_v56 = vmul.f32 %v1236_v29, %v3452_v62  ;;  %v1200_v47 = vrot.slane %v1193_v28, 4 }
 0x19b   : > { %v3790_v16 = vpop.permute.xlu2 %915  ;;  %v3792_v17 = vpop.permute.xlu0 %773  ;;  %v1199_v63 = vsel %vm211_vm0, %v1197_v53, %v1198_v27  ;;  %v1243_v38 = vrot.slane %v1237_v56, 4  ;;  %v1261_v53 = vstv %s3796_s21  ;;  %s2980_s21 = sld [smem:[#allocation7 + $0x22]] }
 0x19c   : > { %5248 = vst [vmem:[#allocation20_spill] sm:$0xff] %v3790_v16  ;;  %v1244_v16 = vrot.slane %v1238_v46, 4  ;;  %v1262_v46 = vmul.f32 %v1261_v53, %v3452_v62 }
 0x19d   : > { %5249 = vst [vmem:[#allocation21_spill] sm:$0xff] %v3792_v17 }
 0x19e   : > { %1223 = vrot.lane.b32.xlu1 %v1220_v30, %s3254_s9  ;;  %v1266_v28 = vrot.slane %v1262_v46, 5 }
 0x1a0   : > { %v3801_v0 = vpop.permute.xlu1 %869 }
 0x1a1   : > { %5250 = vst [vmem:[#allocation22_spill] sm:$0xff] %v3801_v0  ;;  %1202 = vrot.lane.b32.xlu2 %v1199_v63, %s3254_s9  ;;  %1179 = vrot.lane.b32.xlu0 %v1172_v49, %s3254_s9  ;;  %v1245_v0 = vsel %vm211_vm0, %v1243_v38, %v1244_v16  ;;  %v1201_v49 = vsel %vm211_vm0, %v1198_v27, %v1200_v47  ;;  %v1282_v38 = vstv %s2970_s23  ;;  %s2981_s23 = sld [smem:[#allocation7 + $0x29]] }
 0x1a2   : > { %v1239_v63 = vmul.f32 %v1236_v29, %v3511_v60  ;;  %v1284_v9 = vmul.f32 %v1282_v38, %v3487_v42  ;;  %v1283_v47 = vmul.f32 %v1282_v38, %v3452_v62  ;;  %v1263_v27 = vmul.f32 %v1261_v53, %v3487_v42 }
 0x1a3   : > { %v3808_v30 = vpop.permute.xlu2 %940  ;;  %v3810_v11 = vpop.permute.xlu0 %844 }
 0x1a4   : > { %5251 = vst [vmem:[#allocation23_spill] sm:$0xff] %v3808_v30  ;;  %v1303_v30 = vstv %s2971_s27  ;;  %s2982_s27 = sld [smem:[#allocation7 + $0x30]] }
 0x1a5   : > { %5252 = vst [vmem:[#allocation24_spill] sm:$0xff] %v3810_v11  ;;  %v1306_v53 = vmul.f32 %v1303_v30, %v3511_v60 }
 0x1a6   : > { %1248 = vrot.lane.b32.xlu1 %v1245_v0, %s3254_s9  ;;  %v1246_v0 = vrot.slane %v1239_v63, 4 }
 0x1a8   : > { %v3815_v48 = vpop.permute.xlu1 %894 }
 0x1a9   : > { %5253 = vst [vmem:[#allocation25_spill] sm:$0xff] %v3815_v48  ;;  %1225 = vrot.lane.b32.xlu2 %v1222_v1, %s3254_s9  ;;  %1204 = vrot.lane.b32.xlu0 %v1201_v49, %s3254_s9  ;;  %v1247_v1 = vsel %vm211_vm0, %v1244_v16, %v1246_v0  ;;  %v1290_v49 = vrot.slane %v1284_v9, 1  ;;  %v1305_v16 = vmul.f32 %v1303_v30, %v3487_v42 }
 0x1aa   : > { %v1285_v9 = vmul.f32 %v1282_v38, %v3511_v60 }
 0x1ab   : > { %v3823_v56 = vpop.permute.xlu2 %959  ;;  %v3825_v5 = vpop.permute.xlu0 %867 }
 0x1ac   : > { %5254 = vst [vmem:[#allocation26_spill] sm:$0xff] %v3823_v56  ;;  %v1289_v56 = vrot.slane %v1283_v47, 1  ;;  %v1313_v47 = vrot.slane %v1306_v53, 1  ;;  %v1292_v11 = vrot.slane %v1285_v9, 1 }
 0x1ad   : > { %5255 = vst [vmem:[#allocation27_spill] sm:$0xff] %v3825_v5  ;;  %v1267_v5 = vrot.slane %v1263_v27, 5 }
 0x1ae   : > { %1269 = vrot.lane.b32.xlu1 %v1266_v28, %s3255_s28  ;;  %v1291_v48 = vsel %vm374_vm6, %v1289_v56, %v1290_v49 }
 0x1b0   : > { %v3831_v29 = vpop.permute.xlu1 %919 }
 0x1b1   : > { %5256 = vst [vmem:[#allocation28_spill] sm:$0xff] %v3831_v29  ;;  %1250 = vrot.lane.b32.xlu2 %v1247_v1, %s3254_s9  ;;  %1227 = vrot.lane.b32.xlu0 %v1221_v20, %s3254_s9  ;;  %v1268_v20 = vsel %vm367_vm3, %v1266_v28, %v1267_v5  ;;  %v1311_v29 = vrot.slane %v1305_v16, 1  ;;  %v1304_v16 = vmul.f32 %v1303_v30, %v3452_v62 }
 0x1b3   : > { %v3836_v46 = vpop.permute.xlu2 %984  ;;  %v3838_v63 = vpop.permute.xlu0 %892  ;;  %v1314_v25 = vsel %vm374_vm6, %v1311_v29, %v1313_v47 }
 0x1b6   : > { %1294 = vrot.lane.b32.xlu1 %v1291_v48, %s3255_s28  ;;  %v1328_v48 = vstv %s2972_s5  ;;  %s4055_s5 = sld [smem:[#allocation7 + $0x32]] }
 0x1b7   : > { %v1330_v28 = vmul.f32 %v1328_v48, %v3487_v42 }
 0x1b8   : > { %v3844_v1 = vpop.permute.xlu1 %957 }
 0x1b9   : > { %5257 = vst [vmem:[#allocation29_spill] sm:$0xff] %v3844_v1  ;;  %1271 = vrot.lane.b32.xlu2 %v1268_v20, %s3255_s28  ;;  %1252 = vrot.lane.b32.xlu0 %v1246_v0, %s3254_s9  ;;  %v1331_v1 = vmul.f32 %v1328_v48, %v3511_v60  ;;  %v1293_v0 = vsel %vm374_vm6, %v1290_v49, %v1292_v11  ;;  %v1310_v11 = vrot.slane %v1304_v16, 1 }
 0x1ba   : > { %v1355_v49 = vmul.f32 %v1353_v35, %v3487_v42 }
 0x1bb   : > { %v3850_v27 = vpop.permute.xlu2 %1009  ;;  %v3852_v56 = vpop.permute.xlu0 %917  ;;  %v1338_v53 = vrot.slane %v1331_v1, 1  ;;  %v1312_v30 = vsel %vm374_vm6, %v1310_v11, %v1311_v29 }
 0x1bc   : > { %5258 = vst [vmem:[#allocation30_spill] sm:$0xff] %v3850_v27  ;;  %v1336_v27 = vrot.slane %v1330_v28, 1  ;;  %v1329_v28 = vmul.f32 %v1328_v48, %v3452_v62 }
 0x1bd   : > { %5259 = vst [vmem:[#allocation31_spill] sm:$0xff] %v3852_v56 }
 0x1be   : > { %1317 = vrot.lane.b32.xlu1 %v1314_v25, %s3255_s28  ;;  %v1339_v25 = vsel %vm374_vm6, %v1336_v27, %v1338_v53  ;;  %v1335_v29 = vrot.slane %v1329_v28, 1 }
 0x1c0   : > { %v3858_v38 = vpop.permute.xlu1 %982  ;;  %v1337_v48 = vsel %vm374_vm6, %v1335_v29, %v1336_v27 }
 0x1c1   : > { %5260 = vst [vmem:[#allocation32_spill] sm:$0xff] %v3858_v38  ;;  %1296 = vrot.lane.b32.xlu2 %v1293_v0, %s3255_s28  ;;  %1273 = vrot.lane.b32.xlu0 %v1267_v5, %s3255_s28  ;;  %v1356_v38 = vmul.f32 %v1353_v35, %v3511_v60 }
 0x1c3   : > { %v3864_v20 = vpop.permute.xlu2 %1034  ;;  %v3866_v9 = vpop.permute.xlu0 %942  ;;  %v1363_v1 = vrot.slane %v1356_v38, 1 }
 0x1c4   : > { %5261 = vst [vmem:[#allocation33_spill] sm:$0xff] %v3864_v20 }
 0x1c5   : > { %5262 = vst [vmem:[#allocation34_spill] sm:$0xff] %v3866_v9  ;;  %v1361_v9 = vrot.slane %v1355_v49, 1  ;;  %v1354_v49 = vmul.f32 %v1353_v35, %v3452_v62 }
 0x1c6   : > { %1342 = vrot.lane.b32.xlu1 %v1339_v25, %s3255_s28  ;;  %v1378_v25 = vstv %s2974_s8  ;;  %s2992_s8 = sld [smem:[#allocation7 + $0x40]] }
 0x1c7   : > { %v1364_v16 = vsel %vm374_vm6, %v1361_v9, %v1363_v1  ;;  %v1381_v8 = vmul.f32 %v1378_v25, %v3511_v60 }
 0x1c8   : > { %v3872_v5 = vpop.permute.xlu1 %1007 }
 0x1c9   : > { %5263 = vst [vmem:[#allocation35_spill] sm:$0xff] %v3872_v5  ;;  %1319 = vrot.lane.b32.xlu2 %v1313_v47, %s3255_s28  ;;  %1315 = vrot.lane.b32.xlu0 %v1312_v30, %s3255_s28  ;;  %v1380_v47 = vmul.f32 %v1378_v25, %v3487_v42  ;;  %v1388_v38 = vrot.slane %v1381_v8, 5 }
 0x1cb   : > { %v3878_v0 = vpop.permute.xlu2 %1057  ;;  %v3880_v20 = vpop.permute.xlu0 %961 }
 0x1cc   : > { %5264 = vst [vmem:[#allocation36_spill] sm:$0xff] %v3878_v0 }
 0x1cd   : > { %5265 = vst [vmem:[#allocation37_spill] sm:$0xff] %v3880_v20  ;;  %v1360_v20 = vrot.slane %v1354_v49, 1 }
 0x1ce   : > { %1367 = vrot.lane.b32.xlu1 %v1364_v16, %s3255_s28  ;;  %v1386_v16 = vrot.slane %v1380_v47, 5  ;;  %v1379_v47 = vmul.f32 %v1378_v25, %v3452_v62 }
 0x1d0   : > { %v3886_v11 = vpop.permute.xlu1 %1032  ;;  %v1389_v28 = vsel %vm367_vm3, %v1386_v16, %v1388_v38 }
 0x1d1   : > { %5266 = vst [vmem:[#allocation38_spill] sm:$0xff] %v3886_v11  ;;  %1344 = vrot.lane.b32.xlu2 %v1338_v53, %s3255_s28  ;;  %1340 = vrot.lane.b32.xlu0 %v1337_v48, %s3255_s28  ;;  %v1399_v11 = vstv %s2975_s24  ;;  %v1362_v53 = vsel %vm374_vm6, %v1360_v20, %v1361_v9  ;;  %v1385_v9 = vrot.slane %v1379_v47, 5  ;;  %v1445_v47 = vstv %s2977_s11  ;;  %s2995_s24 = sld [smem:[#allocation7 + $0x55]] }
 0x1d2   : > { %v1402_v8 = vmul.f32 %v1399_v11, %v3511_v60  ;;  %v1401_v35 = vmul.f32 %v1399_v11, %v3487_v42  ;;  %v1400_v29 = vmul.f32 %v1399_v11, %v3452_v62  ;;  %s2994_s11 = sld [smem:[#allocation7 + $0x4e]] }
 0x1d3   : > { %v3892_v30 = vpop.permute.xlu2 %1082  ;;  %v3894_v0 = vpop.permute.xlu0 %986  ;;  %v1387_v11 = vsel %vm367_vm3, %v1385_v9, %v1386_v16 }
 0x1d4   : > { %5267 = vst [vmem:[#allocation39_spill] sm:$0xff] %v3892_v30  ;;  %v1409_v49 = vrot.slane %v1402_v8, 5  ;;  %v1406_v20 = vrot.slane %v1400_v29, 5 }
 0x1d5   : > { %5268 = vst [vmem:[#allocation40_spill] sm:$0xff] %v3894_v0  ;;  %v1446_v0 = vmul.f32 %v1445_v47, %v3452_v62 }
 0x1d6   : > { %1392 = vrot.lane.b32.xlu1 %v1389_v28, %s3255_s28  ;;  %v1407_v28 = vrot.slane %v1401_v35, 5 }
 0x1d8   : > { %v3898_v27 = vpop.permute.xlu1 %1055 }
 0x1d9   : > { %5269 = vst [vmem:[#allocation41_spill] sm:$0xff] %v3898_v27  ;;  %1369 = vrot.lane.b32.xlu2 %v1363_v1, %s3255_s28  ;;  %1365 = vrot.lane.b32.xlu0 %v1362_v53, %s3255_s28  ;;  %v1424_v27 = vstv %s2976_s10  ;;  %v1408_v1 = vsel %vm367_vm3, %v1406_v20, %v1407_v28  ;;  %v1447_v20 = vmul.f32 %v1445_v47, %v3487_v42  ;;  %s2993_s10 = sld [smem:[#allocation7 + $0x47]] }
 0x1da   : > { %v1426_v25 = vmul.f32 %v1424_v27, %v3487_v42  ;;  %v1425_v35 = vmul.f32 %v1424_v27, %v3452_v62 }
 0x1db   : > { %v3907_v48 = vpop.permute.xlu2 %1107  ;;  %v3909_v38 = vpop.permute.xlu0 %1011 }
 0x1dc   : > { %5270 = vst [vmem:[#allocation42_spill] sm:$0xff] %v3907_v48  ;;  %v1430_v29 = vrot.slane %v1426_v25, 6  ;;  %v1448_v48 = vmul.f32 %v1445_v47, %v3511_v60  ;;  %v1429_v16 = vrot.slane %v1425_v35, 6  ;;  %v1491_v35 = vstv %s2979_s12  ;;  %s2996_s12 = sld [smem:[#allocation7 + $0x5c]] }
 0x1dd   : > { %5271 = vst [vmem:[#allocation43_spill] sm:$0xff] %v3909_v38  ;;  %v1453_v38 = vrot.slane %v1447_v20, 6 }
 0x1de   : > { %1415 = vrot.lane.b32.xlu1 %v1409_v49, %s3255_s28  ;;  %v1455_v27 = vrot.slane %v1448_v48, 6 }
 0x1e0   : > { %v3912_v30 = vpop.permute.xlu1 %1080  ;;  %v1456_v5 = vsel %vm378_vm8, %v1453_v38, %v1455_v27 }
 0x1e1   : > { %5272 = vst [vmem:[#allocation44_spill] sm:$0xff] %v3912_v30  ;;  %1411 = vrot.lane.b32.xlu2 %v1408_v1, %s3255_s28  ;;  %1390 = vrot.lane.b32.xlu0 %v1387_v11, %s3255_s28  ;;  %v1410_v1 = vsel %vm367_vm3, %v1407_v28, %v1409_v49  ;;  %v1452_v49 = vrot.slane %v1446_v0, 6  ;;  %v1492_v28 = vmul.f32 %v1491_v35, %v3452_v62 }
 0x1e3   : > { %v3919_v53 = vpop.permute.xlu2 %1137  ;;  %v3921_v8 = vpop.permute.xlu0 %1053  ;;  %v1498_v0 = vrot.slane %v1492_v28, 2 }
 0x1e4   : > { %5273 = vst [vmem:[#allocation45_spill] sm:$0xff] %v3919_v53  ;;  %v1493_v53 = vmul.f32 %v1491_v35, %v3487_v42 }
 0x1e5   : > { %5274 = vst [vmem:[#allocation46_spill] sm:$0xff] %v3921_v8 }
 0x1e6   : > { %1436 = vrot.lane.b32.xlu1 %v1430_v29, %s3256_s13  ;;  %v1499_v47 = vrot.slane %v1493_v53, 2  ;;  %v430_v53 = vsel %vm251_vm1, 0.0, %v3614_v33 }
 0x1e8   : > { %v3927_v9 = vpop.permute.xlu1 %1105 }
 0x1e9   : > { %5275 = vst [vmem:[#allocation47_spill] sm:$0xff] %v3927_v9  ;;  %1432 = vrot.lane.b32.xlu2 %v1429_v16, %s3256_s13  ;;  %1413 = vrot.lane.b32.xlu0 %v1410_v1, %s3255_s28  ;;  %v1470_v1 = vstv %s2978_s18  ;;  %v1516_v9 = vstv %s2980_s21  ;;  %s4149_s18 = sld [smem:[#allocation7 + $0x15]] }
 0x1ea   : > { %v1472_v20 = vmul.f32 %v1470_v1, %v3487_v42  ;;  %v1471_v27 = vmul.f32 %v1470_v1, %v3452_v62  ;;  %s4156_s21 = sld [smem:[#allocation7 + $0x33]] }
 0x1eb   : > { %v3932_v11 = vpop.permute.xlu2 %1157  ;;  %v3934_v25 = vpop.permute.xlu0 %1078 }
 0x1ec   : > { %5276 = vst [vmem:[#allocation48_spill] sm:$0xff] %v3932_v11  ;;  %v1431_v11 = vsel %vm378_vm8, %v1429_v16, %v1430_v29  ;;  %v1478_v8 = vrot.slane %v1472_v20, 2  ;;  %v3954_v29 = vmul.f32 %v1516_v9, %v3487_v42  ;;  %v1477_v16 = vrot.slane %v1471_v27, 2 }
 0x1ed   : > { %5277 = vst [vmem:[#allocation49_spill] sm:$0xff] %v3934_v25  ;;  %v1454_v20 = vsel %vm378_vm8, %v1452_v49, %v1453_v38  ;;  %v431_v27 = vsel %vm253_vm2, %v430_v53, 0.0 }
 0x1ee   : > { %1461 = vrot.lane.b32.xlu1 %v1456_v5, %s3256_s13  ;;  %v1479_v28 = vsel %vm372_vm5, %v1477_v16, %v1478_v8  ;;  %v1524_v33 = vrot.slane %v3954_v29, 2  ;;  %v425_v16 = vsel %vm251_vm1, 0.0, %v3634_v54  ;;  %v441_v29 = vsel %vm251_vm1, 0.0, %v3653_v13 }
 0x1f0   : > { %v3941_v48 = vpop.permute.xlu1 %1123 }
 0x1f1   : > { %5278 = vst [vmem:[#allocation50_spill] sm:$0xff] %v3941_v48  ;;  %1457 = vrot.lane.b32.xlu2 %v1452_v49, %s3256_s13  ;;  %1434 = vrot.lane.b32.xlu0 %v1431_v11, %s3256_s13  ;;  %v1500_v48 = vsel %vm372_vm5, %v1498_v0, %v1499_v47  ;;  %v1517_v11 = vmul.f32 %v1516_v9, %v3452_v62 }
 0x1f2   : > { %v1473_v0 = vmul.f32 %v1470_v1, %v3511_v60 }
 0x1f3   : > { %v3948_v25 = vpop.permute.xlu2 %1177  ;;  %v3950_v5 = vpop.permute.xlu0 %1103  ;;  %v1523_v49 = vrot.slane %v1517_v11, 2 }
 0x1f4   : > { %5279 = vst [vmem:[#allocation51_spill] sm:$0xff] %v3948_v25 }
 0x1f5   : > { %5280 = vst [vmem:[#allocation52_spill] sm:$0xff] %v3950_v5  ;;  %v3965_v5 = vmul.f32 %v1491_v35, %v3511_v60  ;;  %v1525_v53 = vsel %vm372_vm5, %v1523_v49, %v1524_v33 }
 0x1f6   : > { %1503 = vrot.lane.b32.xlu1 %v1500_v48, %s3256_s13  ;;  %v435_v48 = vsel %vm251_vm1, 0.0, %v3590_v12 }
 0x1f7   : > { %v436_v1 = vsel %vm253_vm2, %v435_v48, 0.0  ;;  %v1501_v12 = vrot.slane %v3965_v5, 2  ;;  %v446_v5 = vsel %vm251_vm1, 0.0, %v3631_v52  ;;  %v442_v48 = vsel %vm253_vm2, %v441_v29, 0.0 }
 0x1f8   : > { %v3960_v25 = vpop.permute.xlu1 %1141  ;;  %v497_v11 = vrot.slane %v436_v1, 6  ;;  %v400_v29 = vsel %vm251_vm1, 0.0, %v3581_v2 }
 0x1f9   : > { %5281 = vst [vmem:[#allocation53_spill] sm:$0xff] %v3960_v25  ;;  %1482 = vrot.lane.b32.xlu2 %v1479_v28, %s3256_s13  ;;  %1459 = vrot.lane.b32.xlu0 %v1454_v20, %s3256_s13  ;;  %v1480_v25 = vrot.slane %v1473_v0, 2  ;;  %v1541_v28 = vstv %s2981_s23  ;;  %v494_v20 = vrot.slane %v431_v27, 7  ;;  %v1502_v13 = vsel %vm372_vm5, %v1499_v47, %v1501_v12  ;;  %s4158_s23 = sld [smem:[#allocation7]] }
 0x1fa   : > { %v3986_v54 = vmul.f32 %v1541_v28, %v3487_v42  ;;  %v1542_v0 = vmul.f32 %v1541_v28, %v3452_v62  ;;  %v500_v47 = vrot.slane %v442_v48, 5 }
 0x1fb   : > { %v3976_v38 = vpop.permute.xlu2 %1202  ;;  %v3978_v35 = vpop.permute.xlu0 %1121  ;;  %v1481_v49 = vsel %vm372_vm5, %v1478_v8, %v1480_v25  ;;  %v447_v8 = vsel %vm253_vm2, %v446_v5, 0.0  ;;  %v405_v5 = vsel %vm251_vm1, 0.0, %v3558_v51 }
 0x1fc   : > { %5282 = vst [vmem:[#allocation54_spill] sm:$0xff] %v3976_v38  ;;  %v426_v38 = vsel %vm253_vm2, %v425_v16, 0.0  ;;  %v451_v16 = vsel %vm251_vm1, 0.0, %v3605_v26  ;;  %v1549_v52 = vrot.slane %v3986_v54, 2  ;;  %v471_v54 = vsel %vm251_vm1, 0.0, %v3682_v39 }
 0x1fd   : > { %5283 = vst [vmem:[#allocation55_spill] sm:$0xff] %v3978_v35  ;;  %v3999_v35 = vmul.f32 %v1516_v9, %v3511_v60  ;;  %v519_v1 = vsel %vm376_vm7, %v426_v38, %v494_v20  ;;  %v452_v26 = vsel %vm253_vm2, %v451_v16, 0.0 }
 0x1fe   : > { %1528 = vrot.lane.b32.xlu1 %v1525_v53, %s3256_s13  ;;  %v1548_v53 = vrot.slane %v1542_v0, 2  ;;  %v520_v38 = vsel %vm378_vm8, %v519_v1, %v497_v11  ;;  %v456_v0 = vsel %vm251_vm1, 0.0, %v3668_v24  ;;  %v506_v11 = vrot.slane %v452_v26, 3 }
 0x1ff   : > { %v1526_v20 = vrot.slane %v3999_v35, 2  ;;  %v401_v35 = vsel %vm253_vm2, %v400_v29, 0.0  ;;  %v521_v16 = vsel %vm367_vm3, %v520_v38, %v500_v47  ;;  %v472_v1 = vsel %vm253_vm2, %v471_v54, 0.0 }
 0x200   : > { %v3994_v27 = vpop.permute.xlu1 %1161  ;;  %v1550_v2 = vsel %vm372_vm5, %v1548_v53, %v1549_v52  ;;  %v476_v53 = vsel %vm251_vm1, 0.0, %v3660_v19  ;;  %v1544_v24 = vmul.f32 %v1541_v28, %v3511_v60  ;;  %v457_v29 = vsel %vm253_vm2, %v456_v0, 0.0 }
 0x201   : > { %5284 = vst [vmem:[#allocation56_spill] sm:$0xff] %v3994_v27  ;;  %1505 = vrot.lane.b32.xlu2 %v1502_v13, %s3256_s13  ;;  %1484 = vrot.lane.b32.xlu0 %v1481_v49, %s3256_s13  ;;  %v1566_v13 = vstv %s2982_s27  ;;  %v503_v49 = vrot.slane %v447_v8, 4  ;;  %v1527_v51 = vsel %vm372_vm5, %v1524_v33, %v1526_v20  ;;  %v466_v8 = vsel %vm251_vm1, 0.0, %v3625_v45  ;;  %s2938_s27 = sld [smem:[#allocation7 + $0x1c]] }
 0x202   : > { %v4021_v48 = vmul.f32 %v1566_v13, %v3487_v42  ;;  %v1567_v39 = vmul.f32 %v1566_v13, %v3452_v62  ;;  %v461_v47 = vsel %vm251_vm1, 0.0, %v3647_v6  ;;  %v406_v26 = vsel %vm253_vm2, %v405_v5, 0.0 }
 0x203   : > { %v4010_v25 = vpop.permute.xlu2 %1225  ;;  %v4012_v9 = vpop.permute.xlu0 %1139  ;;  %v479_v38 = vrot.slane %v401_v35, 5  ;;  %v522_v33 = vsel %vm211_vm0, %v521_v16, %v503_v49  ;;  %v410_v28 = vsel %vm251_vm1, 0.0, %v3616_v36  ;;  %v527_v45 = vrot.slane %v472_v1, 7 }
 0x204   : > { %5285 = vst [vmem:[#allocation57_spill] sm:$0xff] %v4010_v25  ;;  %v1574_v19 = vrot.slane %v4021_v48, 6  ;;  %v477_v54 = vsel %vm253_vm2, %v476_v53, 0.0  ;;  %v1573_v0 = vrot.slane %v1567_v39, 6  ;;  %v509_v48 = vrot.slane %v457_v29, 2 }
 0x205   : > { %5286 = vst [vmem:[#allocation58_spill] sm:$0xff] %v4012_v9  ;;  %v462_v5 = vsel %vm253_vm2, %v461_v47, 0.0  ;;  %v1551_v35 = vrot.slane %v1544_v24, 2  ;;  %v523_v49 = vsel %vm370_vm4, %v522_v33, %v506_v11  ;;  %v482_v16 = vrot.slane %v406_v26, 4 }
 0x206   : > { %1553 = vrot.lane.b32.xlu1 %v1550_v2, %s3256_s13  ;;  %v1575_v36 = vsel %vm378_vm8, %v1573_v0, %v1574_v19  ;;  %v530_v1 = vrot.slane %v477_v54, 6  ;;  %v411_v53 = vsel %vm253_vm2, %v410_v28, 0.0  ;;  %v415_v39 = vsel %vm251_vm1, 0.0, %v3600_v61 }
 0x207   : > { %v514_v29 = vsel %vm367_vm3, 0.0, %v479_v38  ;;  %v524_v24 = vsel %vm372_vm5, %v523_v49, %v509_v48  ;;  %v1552_v47 = vsel %vm372_vm5, %v1549_v52, %v1551_v35  ;;  %v1569_v26 = vmul.f32 %v1566_v13, %v3511_v60 }
 0x208   : > { %v4034_v25 = vpop.permute.xlu1 %1181  ;;  %v420_v61 = vsel %vm251_vm1, 0.0, %v3575_v59  ;;  %v485_v33 = vrot.slane %v411_v53, 3  ;;  %v416_v28 = vsel %vm253_vm2, %v415_v39, 0.0  ;;  %v1714_v0 = vstv %s4055_s5  ;;  %s2939_s5 = sld [smem:[#allocation7 + $0x23]] }
 0x209   : > { %5287 = vst [vmem:[#allocation59_spill] sm:$0xff] %v4034_v25  ;;  %1530 = vrot.lane.b32.xlu2 %v1527_v51, %s3256_s13  ;;  %1507 = vrot.lane.b32.xlu0 %v1501_v12, %s3256_s13  ;;  %v467_v12 = vsel %vm253_vm2, %v466_v8, 0.0  ;;  %v512_v51 = vrot.slane %v462_v5, 1  ;;  %v421_v59 = vsel %vm253_vm2, %v420_v61, 0.0  ;;  %v488_v48 = vrot.slane %v416_v28, 2 }
 0x20a   : > { %v532_v8 = vsel %vm376_vm7, %v467_v12, %v527_v45  ;;  %v515_v45 = vsel %vm211_vm0, %v514_v29, %v482_v16  ;;  %v1576_v12 = vrot.slane %v1569_v26, 6  ;;  %v1834_v9 = vstv %s2996_s12  ;;  %s4261_s12 = sld [smem:[#allocation7 + $0x48]] }
 0x20b   : > { %v4051_v2 = vpop.permute.xlu2 %1250  ;;  %v4053_v6 = vpop.permute.xlu0 %1159  ;;  %v533_v38 = vsel %vm378_vm8, %v532_v8, %v530_v1  ;;  %v4080_v54 = vsel %vm374_vm6, %v524_v24, %v512_v51  ;;  %v516_v49 = vsel %vm370_vm4, %v515_v45, %v485_v33  ;;  %v1728_v24 = vstv %s2991_s7  ;;  %s2940_s7 = sld [smem:[#allocation7 + $0x2a]] }
 0x20c   : > { %5288 = vst [vmem:[#allocation60_spill] sm:$0xff] %v4051_v2  ;;  %v534_v5 = vsel %vm367_vm3, %v533_v38, 0.0  ;;  %v1577_v53 = vsel %vm378_vm8, %v1574_v19, %v1576_v12  ;;  %v517_v39 = vsel %vm372_vm5, %v516_v49, %v488_v48  ;;  %v1748_v38 = vstv %s2992_s8  ;;  %s2998_s8 = sld [smem:[#allocation7 + $0x3a]] }
 0x20d   : > { %5289 = vst [vmem:[#allocation61_spill] sm:$0xff] %v4053_v6  ;;  %v535_v16 = vsel %vm211_vm0, %v534_v5, 0.0  ;;  %v1768_v49 = vstv %s2993_s10  ;;  %s4180_s10 = sld [smem:[#allocation7 + $0xe]]  ;;  %vm2795_vm2 = vcmask 130048  }
 0x20e   : > { %1578 = vrot.lane.b32.xlu1 %v1575_v36, %s3256_s13  ;;  %v491_v36 = vrot.slane %v421_v59, 1  ;;  %v4100_v51 = vsel %vm370_vm4, %v535_v16, 0.0  ;;  %v1809_v59 = vstv %s2995_s24  ;;  %s2935_s24 = sld [smem:[#allocation7 + $0x7]] }
 0x20f   : > { %v1731_v19 = vmul.f32 %v1728_v24, %v4100_v51  ;;  %v1751_v45 = vmul.f32 %v1748_v38, %v4100_v51 }
 0x210   : > { %v4068_v11 = vpop.permute.xlu1 %1223 }
 0x211   : > { %5290 = vst [vmem:[#allocation62_spill] sm:$0xff] %v4068_v11  ;;  %1555 = vrot.lane.b32.xlu2 %v1552_v47, %s3256_s13  ;;  %1532 = vrot.lane.b32.xlu0 %v1526_v20, %s3256_s13  ;;  %v1716_v20 = vmul.f32 %v1714_v0, %v4080_v54  ;;  %v4107_v47 = vsel %vm374_vm6, %v517_v39, %v491_v36  ;;  %v1788_v39 = vstv %s2994_s11  ;;  %s4212_s11 = sld [smem:[#allocation7 + $0x41]] }
 0x212   : > { %v1729_v26 = vmul.f32 %v1728_v24, %v4107_v47  ;;  %v1771_v36 = vmul.f32 %v1768_v49, %v4100_v51  ;;  %v1810_v16 = vmul.f32 %v1809_v59, %v4107_v47 }
 0x213   : > { %v4082_v52 = vpop.permute.xlu2 %1271  ;;  %v4084_v13 = vpop.permute.xlu0 %1179  ;;  %v552_v11 = vstv %s4180_s10  ;;  %s4494_s10 = sld [smem:[#allocation7 + $0x3b]] }
 0x214   : > { %5291 = vst [vmem:[#allocation63_spill] sm:$0xff] %v4082_v52  ;;  %v544_v27 = vstv %s2935_s24  ;;  %v555_v57 = vmul.f32 %v552_v11, %v3511_v60  ;;  %s4480_s24 = sld [smem:[#allocation7 + $0x54]] }
 0x215   : > { %5292 = vst [vmem:[#allocation64_spill] sm:$0xff] %v4084_v13  ;;  %v547_v7 = vmul.f32 %v544_v27, %v3511_v60 }
 0x216   : > { %1721 = vrot.lane.b32.xlu1 %v1716_v20, %s3251_s22  ;;  %v1730_v20 = vmul.f32 %v1728_v24, %v4080_v54  ;;  %v1769_v24 = vmul.f32 %v1768_v49, %v4107_v47 }
 0x218   : > { %v4093_v1 = vpop.permute.xlu1 %1248 }
 0x219   : > { %5293 = vst [vmem:[#allocation65_spill] sm:$0xff] %v4093_v1  ;;  %1580 = vrot.lane.b32.xlu2 %v1577_v53, %s3256_s13  ;;  %1557 = vrot.lane.b32.xlu0 %v1551_v35, %s3256_s13  ;;  %v1715_v35 = vmul.f32 %v1714_v0, %v4107_v47  ;;  %v1749_v0 = vmul.f32 %v1748_v38, %v4107_v47 }
 0x21a   : > { %v1811_v53 = vmul.f32 %v1809_v59, %v4080_v54 }
 0x21b   : > { %v4102_v8 = vpop.permute.xlu2 %1296  ;;  %v4104_v29 = vpop.permute.xlu0 %1204 }
 0x21c   : > { %5294 = vst [vmem:[#allocation66_spill] sm:$0xff] %v4102_v8 }
 0x21d   : > { %5295 = vst [vmem:[#allocation67_spill] sm:$0xff] %v4104_v29 }
 0x21e   : > { %1739 = vrot.lane.b32.xlu1 %v1731_v19, %s3251_s22  ;;  %v1750_v19 = vmul.f32 %v1748_v38, %v4080_v54 }
 0x220   : > { %v4113_v61 = vpop.permute.xlu1 %1269 }
 0x221   : > { %5296 = vst [vmem:[#allocation68_spill] sm:$0xff] %v4113_v61  ;;  %1735 = vrot.lane.b32.xlu2 %v1729_v26, %s3251_s22  ;;  %1719 = vrot.lane.b32.xlu0 %v1715_v35, %s3251_s22  ;;  %v1789_v35 = vmul.f32 %v1788_v39, %v4107_v47 }
 0x223   : > { %v4117_v33 = vpop.permute.xlu2 %1319  ;;  %v4119_v28 = vpop.permute.xlu0 %1227  ;;  %v1795_v38 = vrot.slane %v1789_v35, 4  ;;  %v1791_v35 = vmul.f32 %v1788_v39, %v4100_v51 }
 0x224   : > { %5297 = vst [vmem:[#allocation69_spill] sm:$0xff] %v4117_v33 }
 0x225   : > { %5298 = vst [vmem:[#allocation70_spill] sm:$0xff] %v4119_v28  ;;  %v4154_v28 = vmul.f32 %v1834_v9, %v4080_v54 }
 0x226   : > { %1759 = vrot.lane.b32.xlu1 %v1751_v45, %s3251_s22  ;;  %v1790_v45 = vmul.f32 %v1788_v39, %v4080_v54  ;;  %v4178_v39 = vstv %s4149_s18  ;;  %s4291_s18 = sld [smem:[#allocation7 + $0x4f]] }
 0x228   : > { %v4125_v12 = vpop.permute.xlu1 %1294  ;;  %v1796_v25 = vrot.slane %v1790_v45, 4  ;;  %v1842_v45 = vrot.slane %v4154_v28, 4 }
 0x229   : > { %5299 = vst [vmem:[#allocation71_spill] sm:$0xff] %v4125_v12  ;;  %1755 = vrot.lane.b32.xlu2 %v1749_v0, %s3251_s22  ;;  %1737 = vrot.lane.b32.xlu0 %v1730_v20, %s3251_s22  ;;  %v1816_v0 = vrot.slane %v1810_v16, 4  ;;  %v1817_v20 = vrot.slane %v1811_v53, 4  ;;  %v1770_v16 = vmul.f32 %v1768_v49, %v4080_v54 }
 0x22b   : > { %v4129_v48 = vpop.permute.xlu2 %1344  ;;  %v4131_v5 = vpop.permute.xlu0 %1252 }
 0x22c   : > { %5300 = vst [vmem:[#allocation72_spill] sm:$0xff] %v4129_v48  ;;  %v1835_v48 = vmul.f32 %v1834_v9, %v4107_v47 }
 0x22d   : > { %5301 = vst [vmem:[#allocation73_spill] sm:$0xff] %v4131_v5 }
 0x22e   : > { %1779 = vrot.lane.b32.xlu1 %v1771_v36, %s3251_s22 }
 0x230   : > { %v4139_v26 = vpop.permute.xlu1 %1317 }
 0x231   : > { %5302 = vst [vmem:[#allocation74_spill] sm:$0xff] %v4139_v26  ;;  %1775 = vrot.lane.b32.xlu2 %v1769_v24, %s3251_s22  ;;  %1757 = vrot.lane.b32.xlu0 %v1750_v19, %s3251_s22  ;;  %v1818_v26 = vsel %vm211_vm0, %v1816_v0, %v1817_v20  ;;  %v1797_v24 = vsel %vm211_vm0, %v1795_v38, %v1796_v25 }
 0x232   : > { %v1812_v19 = vmul.f32 %v1809_v59, %v4100_v51 }
 0x233   : > { %v4145_v33 = vpop.permute.xlu2 %1369  ;;  %v4147_v36 = vpop.permute.xlu0 %1273 }
 0x234   : > { %5303 = vst [vmem:[#allocation75_spill] sm:$0xff] %v4145_v33  ;;  %v1819_v38 = vrot.slane %v1812_v19, 4  ;;  %v1798_v33 = vrot.slane %v1791_v35, 4  ;;  %v4190_v19 = vmul.f32 %v1834_v9, %v4100_v51  ;;  %v568_v35 = vstv %s2938_s27  ;;  %s4359_s27 = sld [smem:[#allocation7 + $0x5d]] }
 0x235   : > { %5304 = vst [vmem:[#allocation76_spill] sm:$0xff] %v4147_v36  ;;  %v1859_v36 = vstv %s4156_s21  ;;  %s4300_s21 = sld [smem:[#allocation7 + $0x31]] }
 0x236   : > { %1821 = vrot.lane.b32.xlu1 %v1818_v26, %s3251_s22  ;;  %v1841_v26 = vrot.slane %v1835_v48, 4  ;;  %v1820_v28 = vsel %vm211_vm0, %v1817_v20, %v1819_v38  ;;  %v604_v20 = vstv %s2940_s7  ;;  %s4420_s7 = sld [smem:[#allocation7 + $0x4d]] }
 0x237   : > { %v4202_v9 = vmul.f32 %v604_v20, %v3511_v60  ;;  %v606_v8 = vmul.f32 %v604_v20, %v3487_v42  ;;  %v605_v52 = vmul.f32 %v604_v20, %v3452_v62 }
 0x238   : > { %v4162_v53 = vpop.permute.xlu1 %1342  ;;  %v1843_v59 = vsel %vm211_vm0, %v1841_v26, %v1842_v45  ;;  %v585_v26 = vstv %s2939_s5  ;;  %s4369_s5 = sld [smem:[#allocation7 + $0x3f]] }
 0x239   : > { %5305 = vst [vmem:[#allocation77_spill] sm:$0xff] %v4162_v53  ;;  %1800 = vrot.lane.b32.xlu2 %v1797_v24, %s3251_s22  ;;  %1777 = vrot.lane.b32.xlu0 %v1770_v16, %s3251_s22  ;;  %v1799_v16 = vsel %vm211_vm0, %v1796_v25, %v1798_v33  ;;  %v4187_v24 = vmul.f32 %v1859_v36, %v4107_v47  ;;  %v4198_v25 = vstv %s2998_s8  ;;  %v614_v13 = vrot.slane %v4202_v9, 4  ;;  %s4447_s8 = sld [smem:[#allocation7 + $0x34]] }
 0x23a   : > { %v587_v5 = vmul.f32 %v585_v26, %v3487_v42  ;;  %v586_v1 = vmul.f32 %v585_v26, %v3452_v62  ;;  %v4216_v33 = vmul.f32 %v4178_v39, %v3452_v62  ;;  %v571_v53 = vmul.f32 %v568_v35, %v3511_v60 }
 0x23b   : > { %v4170_v49 = vpop.permute.xlu2 %1411  ;;  %v4172_v0 = vpop.permute.xlu0 %1315  ;;  %v1864_v61 = vrot.slane %v4187_v24, 5  ;;  %v612_v17 = vrot.slane %v606_v8, 4 }
 0x23c   : > { %5306 = vst [vmem:[#allocation78_spill] sm:$0xff] %v4170_v49  ;;  %v593_v29 = vrot.slane %v587_v5, 4  ;;  %v592_v6 = vrot.slane %v586_v1, 4  ;;  %v4241_v5 = vmul.f32 %v1859_v36, %v4080_v54  ;;  %v563_v36 = vmul.f32 %v4178_v39, %v3511_v60 }
 0x23d   : > { %5307 = vst [vmem:[#allocation79_spill] sm:$0xff] %v4172_v0  ;;  %v5311_v0 = vstv %s4158_s23  ;;  %v615_v8 = vsel %vm211_vm0, %v612_v17, %v614_v13 }
 0x23e   : > { %1846 = vrot.lane.b32.xlu1 %v1843_v59, %s3251_s22  ;;  %v4195_v59 = vmul.f32 %v568_v35, %v3487_v42  ;;  %v539_v24 = vmul.f32 %v5311_v0, %v3452_v62  ;;  %v5313_v0 = vrot.slane %v4190_v19, 4  ;;  %v594_v9 = vsel %vm211_vm0, %v592_v6, %v593_v29 }
 0x240   : > { %v4182_v48 = vpop.permute.xlu1 %1367  ;;  %v576_v49 = vrot.slane %v4195_v59, 4  ;;  %v1845_v59 = vsel %vm211_vm0, %v1842_v45, %v5313_v0  ;;  %v553_v45 = vmul.f32 %v552_v11, %v3452_v62  ;;  %v611_v0 = vrot.slane %v605_v52, 4 }
 0x241   : > { %5308 = vst [vmem:[#allocation80_spill] sm:$0xff] %v4182_v48  ;;  %1823 = vrot.lane.b32.xlu2 %v1820_v28, %s3251_s22  ;;  %1802 = vrot.lane.b32.xlu0 %v1799_v16, %s3251_s22  ;;  %v569_v16 = vmul.f32 %v568_v35, %v3452_v62  ;;  %v588_v48 = vmul.f32 %v585_v26, %v3511_v60 }
 0x242   : > { %v545_v26 = vmul.f32 %v544_v27, %v3452_v62  ;;  %v613_v30 = vsel %vm211_vm0, %v611_v0, %v612_v17  ;;  %v5318_v17 = vrot.slane %v4241_v5, 5  ;;  %v1883_v60 = vmul.f32 %v4198_v25, %v4100_v51 }
 0x243   : > { %v4204_v12 = vpop.permute.xlu2 %1432  ;;  %v4206_v28 = vpop.permute.xlu0 %1340  ;;  %v575_v2 = vrot.slane %v569_v16, 4  ;;  %v595_v16 = vrot.slane %v588_v48, 4  ;;  %v1901_v48 = vstv %s4212_s11  ;;  %s4544_s11 = sld [smem:[#allocation7 + $0x46]] }
 0x244   : > { %5309 = vst [vmem:[#allocation81_spill] sm:$0xff] %v4204_v12  ;;  %v1881_v12 = vmul.f32 %v4198_v25, %v4107_v47  ;;  %v600_v1 = vadd.f32 %v594_v9, %v545_v26  ;;  %v1866_v0 = vsel %vm367_vm3, %v1864_v61, %v5318_v17 }
 0x245   : > { %5310 = vst [vmem:[#allocation82_spill] sm:$0xff] %v4206_v28  ;;  %v4223_v28 = vmul.f32 %v4198_v25, %v4080_v54  ;;  %v577_v20 = vsel %vm211_vm0, %v575_v2, %v576_v49  ;;  %v554_v2 = vmul.f32 %v552_v11, %v3487_v42 }
 0x246   : > { %1867 = vrot.lane.b32.xlu1 %v1864_v61, %s3252_s19  ;;  %v1887_v35 = vrot.slane %v1881_v12, 1  ;;  %v546_v12 = vmul.f32 %v544_v27, %v3487_v42  ;;  %v582_v62 = vadd.f32 %v577_v20, %v539_v24  ;;  %v562_v24 = vmul.f32 %v4178_v39, %v3487_v42 }
 0x247   : > { %v5316_v52 = vrot.slane %v4223_v28, 1  ;;  %v620_v6 = vadd.f32 %v615_v8, %v554_v2  ;;  %v619_v39 = vadd.f32 %v613_v30, %v553_v45  ;;  %v621_v8 = vadd.f32 %v614_v13, %v555_v57 }
 0x248   : > { %v4235_v56 = vpop.permute.xlu1 %1392  ;;  %v642_v30 = vadd.f32 %v3675_v32, %v563_v36  ;;  %v1890_v13 = vrot.slane %v1883_v60, 1  ;;  %v1902_v2 = vmul.f32 %v1901_v48, %v4107_v47  ;;  %v5326_v60 = vld [vmem:[#allocation31_spill] sm:$0xff] }
 0x249   : > { %5312 = vst [vmem:[#allocation83_spill] sm:$0xff] %v4235_v56  ;;  %1848 = vrot.lane.b32.xlu2 %v1845_v59, %s3251_s22  ;;  %1825 = vrot.lane.b32.xlu0 %v1819_v38, %s3251_s22  ;;  %v578_v59 = vrot.slane %v571_v53, 4  ;;  %v1889_v53 = vsel %vm374_vm6, %v1887_v35, %v5316_v52  ;;  %v4278_v35 = vmul.f32 %v1901_v48, %v4080_v54 }
 0x24a   : > { %v712_v20 = vadd.f32 %v3713_v21, %v620_v6  ;;  %v5319_v21 = vrot.slane %v4190_v19, 4  ;;  %v1908_v5 = vrot.slane %v1902_v2, 1 }
 0x24b   : > { %v4253_v56 = vpop.permute.xlu2 %1457  ;;  %v4255_v38 = vpop.permute.xlu0 %1365  ;;  %v579_v26 = vsel %vm211_vm0, %v576_v49, %v578_v59  ;;  %v602_v49 = vadd.f32 %v595_v16, %v547_v7  ;;  %v641_v59 = vadd.f32 %v3764_v23, %v562_v24  ;;  %v640_v7 = vadd.f32 %v3643_v44, %v4216_v33  ;;  %v5323_v24 = vld [vmem:[#allocation44_spill] sm:$0xff] }
 0x24c   : > { %5314 = vst [vmem:[#allocation84_spill] sm:$0xff] %v4253_v56  ;;  %v4267_v56 = vmul.f32 %v1901_v48, %v4100_v51  ;;  %v804_v61 = vadd.f32 %v3758_v18, %v712_v20  ;;  %v1909_v57 = vrot.slane %v4278_v35, 1  ;;  %v686_v18 = vadd.f32 %v3690_v55, %v600_v1  ;;  %v5322_v48 = vld [vmem:[#allocation14_spill] sm:$0xff] }
 0x24d   : > { %5315 = vst [vmem:[#allocation85_spill] sm:$0xff] %v4255_v38  ;;  %v596_v38 = vsel %vm211_vm0, %v593_v29, %v595_v16  ;;  %v5317_v29 = vstv %s4158_s23  ;;  %v662_v16 = vadd.f32 %v3684_v40, %v582_v62  ;;  %v688_v44 = vadd.f32 %v3700_v10, %v602_v49  ;;  %s4329_s23 = sld [smem:[#allocation7 + $0x38]]  ;;  %v5327_v49 = vld [vmem:[#allocation61_spill] sm:$0xff] }
 0x24e   : > { %1892 = vrot.lane.b32.xlu1 %v1889_v53, %s3252_s19  ;;  %v540_v27 = vmul.f32 %v5317_v29, %v3487_v42  ;;  %v601_v11 = vadd.f32 %v596_v38, %v546_v12  ;;  %v1911_v42 = vrot.slane %v4267_v56, 1  ;;  %v900_v23 = vadd.f32 %v3838_v63, %v804_v61  ;;  %v5324_v29 = vld [vmem:[#allocation15_spill] sm:$0xff] }
 0x24f   : > { %v1926_v38 = vstv %s4261_s12  ;;  %v711_v55 = vadd.f32 %v3706_v15, %v619_v39  ;;  %v713_v63 = vadd.f32 %v3715_v22, %v621_v8  ;;  %v737_v33 = vadd.f32 %v3727_v41, %v641_v59  ;;  %s4554_s12 = sld [smem:[#allocation7 + $0x5b]] }
 0x250   : > { %v4284_v9 = vpop.permute.xlu1 %1415  ;;  %v583_v25 = vadd.f32 %v579_v26, %v540_v27  ;;  %v687_v12 = vadd.f32 %v3698_v4, %v601_v11  ;;  %v1912_v32 = vsel %vm374_vm6, %v1909_v57, %v1911_v42  ;;  %v4320_v40 = vmul.f32 %v1926_v38, %v4100_v51 }
 0x251   : > { %1869 = vrot.lane.b32.xlu2 %v1866_v0, %s3252_s19  ;;  %1850 = vrot.lane.b32.xlu0 %v5319_v21, %s3251_s22  ;;  %s4322_s22 = sld [smem:[#allocation7 + $0x56]]  ;;  %v736_v10 = vadd.f32 %v3721_v34, %v640_v7  ;;  %v738_v1 = vadd.f32 %v3729_v43, %v642_v30  ;;  %v1928_v36 = vmul.f32 %v1926_v38, %v4080_v54  ;;  %v1951_v62 = vstv %s4291_s18  ;;  %v5329_v30 = vld [vmem:[#allocation18_spill] sm:$0xff] }
 0x252   : > { %v663_v4 = vadd.f32 %v3776_v37, %v583_v25  ;;  %v4336_v15 = vadd.f32 %v3733_v50, %v662_v16  ;;  %v992_v22 = vadd.f32 %v3836_v46, %v900_v23  ;;  %v5320_v37 = vmov %v5316_v52  ;;  %v5328_v25 = vld [vmem:[#allocation16_spill] sm:$0xff]  ;;  %s4568_s18 = sld [smem:[#allocation7 + $0x49]] }
 0x253   : > { %v4306_v19 = vpop.permute.xlu2 %1482  ;;  %v4308_v45 = vpop.permute.xlu0 %1390  ;;  %v1891_v6 = vsel %vm374_vm6, %v5320_v37, %v1890_v13  ;;  %v803_v34 = vadd.f32 %v3741_v58, %v711_v55  ;;  %v4347_v43 = vadd.f32 %v3745_v3, %v687_v12  ;;  %v784_v52 = vadd.f32 %v3657_v14, %v688_v44  ;;  %v5335_v37 = vld [vmem:[#allocation20_spill] sm:$0xff] }
 0x254   : > { %v5321_v50 = vmov %v5318_v17  ;;  %v1936_v46 = vrot.slane %v4320_v40, 1  ;;  %v829_v28 = vadd.f32 %v3770_v31, %v737_v33  ;;  %v759_v53 = vadd.f32 %v5322_v48, %v663_v4  ;;  %v5325_v17 = vld [vmem:[#allocation21_spill] sm:$0xff]  ;;  %v5352_v40 = vld [vmem:[#allocation52_spill] sm:$0xff] }
 0x255   : > { %v1088_v26 = vadd.f32 %v5323_v24, %v992_v22  ;;  %v1587_v58 = vstv %s4300_s21  ;;  %v1934_v35 = vrot.slane %v1928_v36, 1  ;;  %v4366_v20 = vmul.f32 %v1951_v62, %v4080_v54  ;;  %v5332_v33 = vld [vmem:[#allocation17_spill] sm:$0xff]  ;;  %v5334_v36 = vld [vmem:[#allocation60_spill] sm:$0xff]  ;;  %s4601_s21 = sld [smem:[#allocation7 + $0x42]] }
 0x256   : > { %1915 = vrot.lane.b32.xlu1 %v1912_v32, %s3252_s19  ;;  %v1927_v31 = vmul.f32 %v1926_v38, %v4107_v47  ;;  %v4372_v27 = vadd.f32 %v5324_v29, %v738_v1  ;;  %v782_v0 = vadd.f32 %v5325_v17, %v686_v18  ;;  %v925_v11 = vadd.f32 %v5326_v60, %v829_v28  ;;  %v5330_v18 = vld [vmem:[#allocation13_spill] sm:$0xff]  ;;  %v5331_v38 = vld [vmem:[#allocation19_spill] sm:$0xff] }
 0x257   : > { %v1167_v39 = vadd.f32 %v5327_v49, %v1088_v26  ;;  %v1937_v21 = vsel %vm374_vm6, %v1934_v35, %v1936_v46  ;;  %v4381_v8 = vmul.f32 %v1951_v62, %v4100_v51  ;;  %v4386_v61 = vmul.f32 %v1587_v58, %v4107_v47  ;;  %v5336_v28 = vld [vmem:[#allocation29_spill] sm:$0xff] }
 0x258   : > { %v4339_v41 = vpop.permute.xlu1 %1436  ;;  %v1976_v59 = vstv %s4322_s22  ;;  %v828_v7 = vadd.f32 %v5328_v25, %v736_v10  ;;  %v899_v16 = vadd.f32 %v5329_v30, %v803_v34  ;;  %v4392_v23 = vadd.f32 %v5330_v18, %v713_v63  ;;  %v5333_v10 = vld [vmem:[#allocation30_spill] sm:$0xff]  ;;  %v5338_v26 = vld [vmem:[#allocation77_spill] sm:$0xff]  ;;  %v5341_v25 = vld [vmem:[#allocation64_spill] sm:$0xff]  ;;  %s4659_s22 = sld [smem:[#allocation7 + $0x50]] }
 0x259   : > { %1894 = vrot.lane.b32.xlu2 %v1891_v6, %s3252_s19  ;;  %1871 = vrot.lane.b32.xlu0 %v5321_v50, %s3252_s19  ;;  %v4396_v13 = vstv %s4329_s23  ;;  %v851_v12 = vadd.f32 %v5331_v38, %v759_v53  ;;  %v1910_v44 = vsel %vm374_vm6, %v1908_v5, %v1909_v57  ;;  %v1959_v32 = vrot.slane %v4366_v20, 1  ;;  %v5337_v53 = vld [vmem:[#allocation47_spill] sm:$0xff]  ;;  %v5342_v18 = vld [vmem:[#allocation22_spill] sm:$0xff]  ;;  %s4768_s23 = sld [smem:[#allocation7 + $0x5e]] }
 0x25a   : > { %v1933_v55 = vrot.slane %v1927_v31, 1  ;;  %v874_v4 = vadd.f32 %v5332_v33, %v782_v0  ;;  %v1017_v1 = vadd.f32 %v5333_v10, %v925_v11  ;;  %v1258_v2 = vadd.f32 %v5334_v36, %v1167_v39  ;;  %v5339_v11 = vld [vmem:[#allocation34_spill] sm:$0xff] }
 0x25b   : > { %v4361_v14 = vpop.permute.xlu2 %1505  ;;  %v4363_v3 = vpop.permute.xlu0 %1413  ;;  %v4407_v22 = vmul.f32 %v1976_v59, %v4080_v54  ;;  %v924_v6 = vadd.f32 %v5335_v37, %v828_v7  ;;  %v1961_v57 = vrot.slane %v4381_v8, 1  ;;  %v5234_v34 = vrot.slane %v4386_v61, 7  ;;  %v5340_v39 = vld [vmem:[#allocation46_spill] sm:$0xff]  ;;  %v5367_v8 = vld [vmem:[#allocation55_spill] sm:$0xff] }
 0x25c   : > { %v4418_v50 = vmul.f32 %v4396_v13, %v4107_v47  ;;  %v966_v48 = vadd.f32 %v5336_v28, %v874_v4  ;;  %v1113_v24 = vadd.f32 %v5337_v53, %v1017_v1  ;;  %v1350_v56 = vadd.f32 %v5338_v26, %v1258_v2  ;;  %v5345_v28 = vld [vmem:[#allocation45_spill] sm:$0xff]  ;;  %v5346_v53 = vld [vmem:[#allocation63_spill] sm:$0xff] }
 0x25d   : > { %v1997_v5 = vstv %s4359_s27  ;;  %v1935_v29 = vsel %vm374_vm6, %v1933_v55, %v1934_v35  ;;  %v1979_v17 = vmul.f32 %v1976_v59, %v4100_v51  ;;  %v1952_v0 = vmul.f32 %v1951_v62, %v4107_v47  ;;  %s4803_s27 = sld [smem:[#allocation7 + $0x35]] }
 0x25e   : > { %1940 = vrot.lane.b32.xlu1 %v1937_v21, %s3252_s19  ;;  %v4430_v60 = vstv %s4369_s5  ;;  %v947_v49 = vadd.f32 %v5339_v11, %v851_v12  ;;  %v1062_v21 = vadd.f32 %v5340_v39, %v966_v48  ;;  %v1187_v7 = vadd.f32 %v5341_v25, %v1113_v24  ;;  %v5343_v12 = vld [vmem:[#allocation24_spill] sm:$0xff]  ;;  %s3012_s5 = sld [smem:[#allocation7 + $0x3c]] }
 0x25f   : > { %v4436_v38 = vadd.f32 %v5342_v18, %v784_v52  ;;  %v1962_v35 = vsel %vm374_vm6, %v1959_v32, %v1961_v57  ;;  %v1998_v62 = vmul.f32 %v1997_v5, %v4107_v47  ;;  %v850_v55 = vadd.f32 %v5343_v12, %v4336_v15  ;;  %v5344_v15 = vld [vmem:[#allocation33_spill] sm:$0xff]  ;;  %v5354_v12 = vld [vmem:[#allocation67_spill] sm:$0xff] }
 0x260   : > { %v4404_v63 = vpop.permute.xlu1 %1461  ;;  %v1984_v52 = vrot.slane %v4407_v22, 5  ;;  %v5232_v4 = vrot.slane %v4418_v50, 7  ;;  %v1986_v10 = vrot.slane %v1979_v17, 5  ;;  %v4457_v1 = vmul.f32 %v1997_v5, %v4100_v51  ;;  %v5348_v17 = vld [vmem:[#allocation32_spill] sm:$0xff] }
 0x261   : > { %1917 = vrot.lane.b32.xlu2 %v1911_v42, %s3252_s19  ;;  %1913 = vrot.lane.b32.xlu0 %v1910_v44, %s3252_s19  ;;  %v4445_v44 = vmul.f32 %v1997_v5, %v4080_v54  ;;  %v4461_v36 = vmul.f32 %v4430_v60, %v4107_v47  ;;  %v1977_v2 = vmul.f32 %v1976_v59, %v4107_v47  ;;  %v1958_v26 = vrot.slane %v1952_v0, 1  ;;  %v5351_v0 = vld [vmem:[#allocation80_spill] sm:$0xff] }
 0x262   : > { %v1039_v37 = vadd.f32 %v5344_v15, %v947_v49  ;;  %v1146_v48 = vadd.f32 %v5345_v28, %v1062_v21  ;;  %v1279_v24 = vadd.f32 %v5346_v53, %v1187_v7  ;;  %v2004_v5 = vrot.slane %v1998_v62, 5  ;;  %v5349_v49 = vld [vmem:[#allocation50_spill] sm:$0xff]  ;;  %v5353_v62 = vld [vmem:[#allocation49_spill] sm:$0xff] }
 0x263   : > { %v1531_v42 = vpop.permute.xlu2 %1530  ;;  %v1435_v31 = vpop.permute.xlu0 %1434  ;;  %v4474_v59 = vstv %s4420_s7  ;;  %v991_v11 = vadd.f32 %v5348_v17, %v899_v16  ;;  %v5350_v21 = vld [vmem:[#allocation62_spill] sm:$0xff]  ;;  %v2007_v18 = vrot.slane %v4457_v1, 5  ;;  %v5356_v53 = vld [vmem:[#allocation25_spill] sm:$0xff]  ;;  %v4515_v20 = vmul.f32 %v1587_v58, %v4080_v54  ;;  %s3013_s7 = sld [smem:[#allocation7 + $0x43]] }
 0x264   : > { %v1442_v30 = vadd.f32 %v1435_v31, %v1350_v56  ;;  %v5347_v56 = vld [vmem:[#allocation35_spill] sm:$0xff]  ;;  %v2005_v31 = vrot.slane %v4445_v44, 5  ;;  %v1128_v39 = vadd.f32 %v5349_v49, %v1039_v37  ;;  %v1232_v25 = vadd.f32 %v5350_v21, %v1146_v48 }
 0x265   : > { %v1087_v16 = vadd.f32 %v5353_v62, %v991_v11  ;;  %v5355_v37 = vld [vmem:[#allocation79_spill] sm:$0xff]  ;;  %v4507_v17 = vmul.f32 %v4474_v59, %v4080_v54 }
 0x266   : > { %v4451_v33 = vadd.f32 %v1531_v42, %v1442_v30  ;;  %1965 = vrot.lane.b32.xlu1 %v1962_v35, %s3252_s19  ;;  %v1016_v42 = vadd.f32 %v5347_v56, %v924_v6  ;;  %v1375_v6 = vadd.f32 %v5351_v0, %v1279_v24  ;;  %v1987_v30 = vsel %vm367_vm3, %v1984_v52, %v1986_v10  ;;  %v5357_v11 = vld [vmem:[#allocation23_spill] sm:$0xff]  ;;  %v5360_v0 = vld [vmem:[#allocation66_spill] sm:$0xff] }
 0x267   : > { %v1983_v35 = vrot.slane %v1977_v2, 5  ;;  %v1209_v15 = vadd.f32 %v5354_v12, %v1128_v39  ;;  %v1324_v28 = vadd.f32 %v5355_v37, %v1232_v25  ;;  %v901_v24 = vadd.f32 %v5356_v53, %v4392_v23  ;;  %v5358_v39 = vld [vmem:[#allocation51_spill] sm:$0xff] }
 0x268   : > { %v1504_v22 = vpop.permute.xlu1 %1503  ;;  %v1628_v56 = vrot.slane %v4461_v36, 7  ;;  %v2022_v10 = vstv %s4447_s8  ;;  %v1960_v2 = vsel %vm374_vm6, %v1958_v26, %v1959_v32  ;;  %v2006_v23 = vsel %vm367_vm3, %v2004_v5, %v2005_v31  ;;  %v5359_v32 = vld [vmem:[#allocation48_spill] sm:$0xff]  ;;  %v5361_v5 = vld [vmem:[#allocation78_spill] sm:$0xff]  ;;  %v5365_v12 = vld [vmem:[#allocation83_spill] sm:$0xff]  ;;  %s3014_s8 = sld [smem:[#allocation7 + $0x4a]] }
 0x269   : > { %1942 = vrot.lane.b32.xlu2 %v1936_v46, %s3252_s19  ;;  %1938 = vrot.lane.b32.xlu0 %v1935_v29, %s3252_s19  ;;  %v1112_v46 = vadd.f32 %v5352_v40, %v1016_v42  ;;  %v1658_v42 = vmul.f32 %v4474_v59, %v4107_v47  ;;  %v946_v49 = vadd.f32 %v5357_v11, %v850_v55  ;;  %v5362_v55 = vld [vmem:[#allocation38_spill] sm:$0xff]  ;;  %v5368_v11 = vld [vmem:[#allocation85_spill] sm:$0xff]  ;;  %v5374_v44 = vld [vmem:[#allocation39_spill] sm:$0xff] }
 0x26a   : > { %v1985_v25 = vsel %vm367_vm3, %v1983_v35, %v1984_v52  ;;  %v1166_v26 = vadd.f32 %v5359_v32, %v1087_v16  ;;  %v1420_v40 = vadd.f32 %v5361_v5, %v1324_v28  ;;  %v4530_v52 = vmul.f32 %v2022_v10, %v4107_v47  ;;  %v5364_v35 = vld [vmem:[#allocation65_spill] sm:$0xff] }
 0x26b   : > { %v1556_v7 = vpop.permute.xlu2 %1555  ;;  %v1460_v29 = vpop.permute.xlu0 %1459  ;;  %v1186_v21 = vadd.f32 %v5358_v39, %v1112_v46  ;;  %v5363_v46 = vld [vmem:[#allocation68_spill] sm:$0xff]  ;;  %v1664_v58 = vrot.slane %v1658_v42, 3  ;;  %v4535_v28 = vstv %s4480_s24  ;;  %s3016_s24 = sld [smem:[#allocation7 + $0x58]] }
 0x26c   : > { %v1467_v48 = vadd.f32 %v1460_v29, %v1375_v6  ;;  %v1301_v6 = vadd.f32 %v5360_v0, %v1209_v15  ;;  %v4521_v29 = vmul.f32 %v2022_v10, %v4080_v54  ;;  %v1257_v16 = vadd.f32 %v5364_v35, %v1166_v26  ;;  %v5369_v39 = vld [vmem:[#allocation40_spill] sm:$0xff]  ;;  %v5389_v0 = vld [vmem:[#allocation41_spill] sm:$0xff] }
 0x26d   : > { %v1278_v62 = vadd.f32 %v5363_v46, %v1186_v21  ;;  %v1512_v37 = vadd.f32 %v1504_v22, %v1420_v40  ;;  %v5233_v10 = vrot.slane %v4507_v17, 3  ;;  %v993_v21 = vadd.f32 %v5369_v39, %v901_v24  ;;  %v5370_v22 = vld [vmem:[#allocation82_spill] sm:$0xff] }
 0x26e   : > { %v4496_v1 = vadd.f32 %v1556_v7, %v1467_v48  ;;  %1990 = vrot.lane.b32.xlu1 %v1987_v30, %s3252_s19  ;;  %v1038_v30 = vadd.f32 %v5362_v55, %v946_v49  ;;  %v1397_v15 = vadd.f32 %v5365_v12, %v1301_v6  ;;  %v5366_v48 = vld [vmem:[#allocation27_spill] sm:$0xff]  ;;  %v1349_v32 = vadd.f32 %v5370_v22, %v1257_v16  ;;  %v5372_v16 = vld [vmem:[#allocation54_spill] sm:$0xff] }
 0x26f   : > { %v4539_v53 = vadd.f32 %v5366_v48, %v4347_v43  ;;  %v2028_v43 = vrot.slane %v4521_v29, 6  ;;  %v2027_v6 = vrot.slane %v4530_v52, 6  ;;  %v1677_v5 = vmul.f32 %v4535_v28, %v4107_v47  ;;  %v5394_v52 = vld [vmem:[#allocation57_spill] sm:$0xff] }
 0x270   : > { %v1529_v7 = vpop.permute.xlu1 %1528  ;;  %v2043_v40 = vstv %s4494_s10  ;;  %v1598_v55 = vadd.f32 %v5234_v34, %v1512_v37  ;;  %v2008_v24 = vsel %vm367_vm3, %v2005_v31, %v2007_v18  ;;  %v4566_v46 = vmul.f32 %v4535_v28, %v4080_v54  ;;  %v5375_v31 = vld [vmem:[#allocation81_spill] sm:$0xff]  ;;  %s3017_s10 = sld [smem:[#allocation7 + $0x5f]] }
 0x271   : > { %1967 = vrot.lane.b32.xlu2 %v1961_v57, %s3252_s19  ;;  %1963 = vrot.lane.b32.xlu0 %v1960_v2, %s3252_s19  ;;  %v1127_v57 = vadd.f32 %v5367_v8, %v1038_v30  ;;  %v1374_v2 = vadd.f32 %v5368_v11, %v1278_v62  ;;  %v5371_v62 = vld [vmem:[#allocation37_spill] sm:$0xff]  ;;  %v4576_v48 = vmul.f32 %v4396_v13, %v4080_v54  ;;  %v2068_v34 = vstv %s4601_s21  ;;  %s3021_s21 = sld [smem:[#allocation7 + $0x4b]] }
 0x272   : > { %v968_v35 = vadd.f32 %v5371_v62, %v4436_v38  ;;  %v1089_v8 = vadd.f32 %v5374_v44, %v993_v21  ;;  %v5376_v38 = vld [vmem:[#allocation28_spill] sm:$0xff]  ;;  %v1683_v21 = vrot.slane %v1677_v5, 3 }
 0x273   : > { %v1581_v42 = vpop.permute.xlu2 %1580  ;;  %v1485_v49 = vpop.permute.xlu0 %1484  ;;  %v1208_v12 = vadd.f32 %v5372_v16, %v1127_v57  ;;  %v926_v57 = vadd.f32 %v5376_v38, %v4372_v27  ;;  %v5231_v16 = vrot.slane %v4566_v46, 3  ;;  %v4618_v38 = vstv %s4554_s12  ;;  %s4930_s12 = sld [smem:[#allocation7 + $0x36]] }
 0x274   : > { %v1489_v26 = vadd.f32 %v1485_v49, %v1397_v15  ;;  %v5373_v15 = vld [vmem:[#allocation84_spill] sm:$0xff]  ;;  %v4584_v49 = vmul.f32 %v2043_v40, %v4080_v54 }
 0x275   : > { %v1466_v37 = vadd.f32 %v5373_v15, %v1374_v2  ;;  %v5377_v2 = vld [vmem:[#allocation71_spill] sm:$0xff]  ;;  %v5379_v15 = vld [vmem:[#allocation36_spill] sm:$0xff] }
 0x276   : > { %v4558_v30 = vadd.f32 %v1581_v42, %v1489_v26  ;;  %2013 = vrot.lane.b32.xlu1 %v2007_v18, %s3252_s19  ;;  %v1441_v18 = vadd.f32 %v5375_v31, %v1349_v32  ;;  %v1666_v42 = vsel %vm370_vm4, %v1664_v58, %v5233_v10  ;;  %v1300_v39 = vadd.f32 %v5377_v2, %v1208_v12  ;;  %v5378_v32 = vld [vmem:[#allocation56_spill] sm:$0xff] }
 0x277   : > { %v1168_v26 = vadd.f32 %v5378_v32, %v1089_v8  ;;  %v1672_v58 = vadd.f32 %v1666_v42, %v1598_v55  ;;  %v1064_v44 = vadd.f32 %v5379_v15, %v968_v35  ;;  %v5382_v35 = vld [vmem:[#allocation53_spill] sm:$0xff]  ;;  %v2051_v2 = vrot.slane %v4584_v49, 6  ;;  %v5384_v15 = vld [vmem:[#allocation42_spill] sm:$0xff] }
 0x278   : > { %v1554_v11 = vpop.permute.xlu1 %1553  ;;  %v1537_v62 = vadd.f32 %v1529_v7, %v1441_v18  ;;  %v1396_v27 = vadd.f32 %v4308_v45, %v1300_v39  ;;  %v5381_v7 = vld [vmem:[#allocation73_spill] sm:$0xff]  ;;  %v4608_v18 = vmul.f32 %v2043_v40, %v4107_v47  ;;  %v5383_v39 = vld [vmem:[#allocation70_spill] sm:$0xff] }
 0x279   : > { %v4589_v22 = vadd.f32 %v1554_v11, %v1466_v37  ;;  %2009 = vrot.lane.b32.xlu2 %v2006_v23, %s3252_s19  ;;  %1988 = vrot.lane.b32.xlu0 %v1985_v25, %s3252_s19  ;;  %v2046_v37 = vmul.f32 %v2043_v40, %v4100_v51  ;;  %v4599_v23 = vstv %s4544_s11  ;;  %v5380_v25 = vld [vmem:[#allocation43_spill] sm:$0xff]  ;;  %v1259_v55 = vadd.f32 %v5381_v7, %v1168_v26  ;;  %s3019_s11 = sld [smem:[#allocation7 + $0x3d]] }
 0x27a   : > { %v1018_v5 = vadd.f32 %v5380_v25, %v926_v57  ;;  %v1148_v45 = vadd.f32 %v5382_v35, %v1064_v44  ;;  %v4613_v11 = vmul.f32 %v4396_v13, %v4100_v51  ;;  %v1643_v42 = vmul.f32 %v4599_v23, %v4100_v51 }
 0x27b   : > { %v1736_v31 = vpop.permute.xlu2 %1735  ;;  %v1508_v12 = vpop.permute.xlu0 %1507  ;;  %v1617_v57 = vadd.f32 %v5232_v4, %v1537_v62  ;;  %v1685_v40 = vsel %vm370_vm4, %v1683_v21, %v5231_v16  ;;  %v4630_v13 = vstv %s4568_s18  ;;  %v1488_v26 = vadd.f32 %v4306_v19, %v1396_v27  ;;  %s3025_s18 = sld [smem:[#allocation7 + $0x37]] }
 0x27c   : > { %v4605_v8 = vadd.f32 %v1736_v31, %v1672_v58  ;;  %v1234_v32 = vadd.f32 %v5383_v39, %v1148_v45  ;;  %v2053_v58 = vrot.slane %v2046_v37, 6  ;;  %v4636_v62 = vmul.f32 %v4599_v23, %v4080_v54  ;;  %v5385_v31 = vld [vmem:[#allocation72_spill] sm:$0xff]  ;;  %v5387_v45 = vld [vmem:[#allocation59_spill] sm:$0xff] }
 0x27d   : > { %v1114_v44 = vadd.f32 %v5384_v15, %v1018_v5  ;;  %v1351_v25 = vadd.f32 %v5385_v31, %v1259_v55  ;;  %v1696_v35 = vmul.f32 %v4618_v38, %v4107_v47  ;;  %v1650_v19 = vrot.slane %v1643_v42, 3  ;;  %v5386_v5 = vld [vmem:[#allocation26_spill] sm:$0xff]  ;;  %v5388_v31 = vld [vmem:[#allocation69_spill] sm:$0xff] }
 0x27e   : > { %2034 = vrot.lane.b32.xlu1 %v2028_v43, %s3253_s26  ;;  %v4651_v27 = vmul.f32 %v4618_v38, %v4080_v54  ;;  %v2090_v37 = vmul.f32 %v4630_v13, %v4107_v47  ;;  %v967_v55 = vadd.f32 %v5386_v5, %v4539_v53  ;;  %v1691_v15 = vadd.f32 %v1685_v40, %v1617_v57  ;;  %v5390_v5 = vld [vmem:[#allocation76_spill] sm:$0xff] }
 0x27f   : > { %v1188_v39 = vadd.f32 %v5387_v45, %v1114_v44  ;;  %v1648_v4 = vrot.slane %v4636_v62, 3  ;;  %v4665_v10 = vmul.f32 %v4630_v13, %v4080_v54  ;;  %v2054_v40 = vsel %vm378_vm8, %v2051_v2, %v2053_v58 }
 0x280   : > { %v1579_v7 = vpop.permute.xlu1 %1578  ;;  %v1063_v53 = vadd.f32 %v5389_v0, %v967_v55  ;;  %v1636_v0 = vadd.f32 %v1628_v56, %v4589_v22  ;;  %v2029_v22 = vsel %vm378_vm8, %v2027_v6, %v2028_v43  ;;  %v4773_v62 = vmul.f32 %v4430_v60, %v4080_v54 }
 0x281   : > { %v4643_v16 = vadd.f32 %v1579_v7, %v1488_v26  ;;  %2030 = vrot.lane.b32.xlu2 %v2027_v6, %s3253_s26  ;;  %2011 = vrot.lane.b32.xlu0 %v2008_v24, %s3252_s19  ;;  %v1443_v26 = vadd.f32 %v4339_v41, %v1351_v25  ;;  %v1326_v24 = vadd.f32 %v5388_v31, %v1234_v32  ;;  %v1702_v32 = vrot.slane %v1696_v35, 3  ;;  %v5391_v31 = vld [vmem:[#allocation58_spill] sm:$0xff]  ;;  %s4718_s19 = sld [smem:[#allocation7 + $0x57]] }
 0x282   : > { %v1280_v44 = vadd.f32 %v5390_v5, %v1188_v39  ;;  %v1703_v25 = vrot.slane %v4651_v27, 3  ;;  %v1147_v21 = vadd.f32 %v5391_v31, %v1063_v53  ;;  %v1651_v55 = vsel %vm370_vm4, %v1648_v4, %v1650_v19 }
 0x283   : > { %v1756_v42 = vpop.permute.xlu2 %1755  ;;  %v1533_v7 = vpop.permute.xlu0 %1532  ;;  %v1422_v57 = vadd.f32 %v4284_v9, %v1326_v24  ;;  %v2096_v9 = vrot.slane %v2090_v37, 2  ;;  %v2097_v58 = vrot.slane %v4665_v10, 2  ;;  %v2069_v35 = vmul.f32 %v2068_v34, %v4107_v47 }
 0x284   : > { %v4670_v45 = vadd.f32 %v1756_v42, %v1691_v15  ;;  %v4672_v41 = vadd.f32 %v1533_v7, %v1443_v26  ;;  %v1655_v26 = vadd.f32 %v1651_v55, %v4558_v30  ;;  %v5392_v15 = vld [vmem:[#allocation75_spill] sm:$0xff]  ;;  %v4698_v19 = vmul.f32 %v4474_v59, %v4100_v51 }
 0x285   : > { %v1514_v39 = vadd.f32 %v1508_v12, %v1422_v57  ;;  %v1376_v24 = vadd.f32 %v5392_v15, %v1280_v44  ;;  %v4701_v30 = vmul.f32 %v2068_v34, %v4080_v54  ;;  %v1610_v12 = vrot.slane %v4576_v48, 7 }
 0x286   : > { %2059 = vrot.lane.b32.xlu1 %v2054_v40, %s3253_s26  ;;  %v5393_v7 = vrot.slane %v4608_v18, 6  ;;  %v1704_v29 = vsel %vm370_vm4, %v1702_v32, %v1703_v25  ;;  %v1641_v59 = vmul.f32 %v4599_v23, %v4107_v47  ;;  %v1233_v43 = vadd.f32 %v5394_v52, %v1147_v21 }
 0x287   : > { %v1468_v6 = vadd.f32 %v4404_v63, %v1376_v24  ;;  %v1710_v53 = vadd.f32 %v1704_v29, %v1636_v0  ;;  %v2114_v5 = vstv %s4659_s22  ;;  %v5395_v44 = vrot.slane %v4515_v20, 7  ;;  %s3023_s22 = sld [smem:[#allocation7 + $0x59]] }
 0x288   : > { %v1722_v42 = vpop.permute.xlu1 %1721  ;;  %v1612_v40 = vrot.slane %v4613_v11, 7  ;;  %v2098_v32 = vsel %vm372_vm5, %v2096_v9, %v2097_v58  ;;  %v2075_v23 = vrot.slane %v2069_v35, 2  ;;  %v2076_v0 = vrot.slane %v4701_v30, 2 }
 0x289   : > { %v4704_v37 = vadd.f32 %v1722_v42, %v1655_v26  ;;  %2055 = vrot.lane.b32.xlu2 %v5393_v7, %s3253_s26  ;;  %2032 = vrot.lane.b32.xlu0 %v2029_v22, %s3253_s26  ;;  %v1600_v57 = vadd.f32 %v5395_v44, %v1514_v39  ;;  %v5396_v26 = vld [vmem:[#allocation74_spill] sm:$0xff]  ;;  %v1667_v24 = vrot.slane %v4698_v19, 3  ;;  %v1647_v42 = vrot.slane %v1641_v59, 3 }
 0x28a   : > { %v1325_v21 = vadd.f32 %v5396_v26, %v1233_v43  ;;  %v2115_v39 = vmul.f32 %v2114_v5, %v4107_v47  ;;  %v4733_v11 = vmul.f32 %v2114_v5, %v4080_v54  ;;  %v1613_v9 = vsel %vm376_vm7, %v1610_v12, %v1612_v40 }
 0x28b   : > { %v1776_v31 = vpop.permute.xlu2 %1775  ;;  %v1558_v55 = vpop.permute.xlu0 %1557  ;;  %v1674_v35 = vadd.f32 %v1667_v24, %v1600_v57  ;;  %v5397_v30 = vmov %v5393_v7  ;;  %v2077_v29 = vsel %vm372_vm5, %v2075_v23, %v2076_v0  ;;  %v4752_v59 = vmul.f32 %v4630_v13, %v4100_v51 }
 0x28c   : > { %v4727_v15 = vadd.f32 %v1776_v31, %v1710_v53  ;;  %v1564_v63 = vadd.f32 %v1558_v55, %v1468_v6  ;;  %v1421_v22 = vadd.f32 %v4363_v3, %v1325_v21  ;;  %v2052_v19 = vsel %vm378_vm8, %v5397_v30, %v2051_v2 }
 0x28d   : > { %v4748_v3 = vmul.f32 %v4535_v28, %v4100_v51  ;;  %v2071_v52 = vmul.f32 %v2068_v34, %v4100_v51  ;;  %v1649_v49 = vsel %vm370_vm4, %v1647_v42, %v1648_v4  ;;  %v2121_v18 = vrot.slane %v2115_v39, 2 }
 0x28e   : > { %2101 = vrot.lane.b32.xlu1 %v2098_v32, %s3253_s26  ;;  %v2122_v28 = vrot.slane %v4733_v11, 2  ;;  %v1513_v2 = vadd.f32 %v4361_v14, %v1421_v22  ;;  %v1624_v13 = vmul.f32 %v4430_v60, %v4100_v51  ;;  %v1654_v34 = vadd.f32 %v1649_v49, %v4643_v16 }
 0x28f   : > { %v2139_v6 = vstv %s4718_s19  ;;  %v1619_v53 = vadd.f32 %v1613_v9, %v4672_v41  ;;  %v1686_v40 = vrot.slane %v4748_v3, 3  ;;  %v2099_v14 = vrot.slane %v4752_v59, 2  ;;  %s3029_s19 = sld [smem:[#allocation7 + $0x53]] }
 0x290   : > { %v1740_v7 = vpop.permute.xlu1 %1739  ;;  %v2078_v31 = vrot.slane %v2071_v52, 2  ;;  %v2123_v55 = vsel %vm372_vm5, %v2121_v18, %v2122_v28  ;;  %v5398_v16 = vrot.slane %v4515_v20, 7  ;;  %v5399_v32 = vrot.slane %v4386_v61, 7 }
 0x291   : > { %v4755_v43 = vadd.f32 %v1740_v7, %v1674_v35  ;;  %2080 = vrot.lane.b32.xlu2 %v2077_v29, %s3253_s26  ;;  %2057 = vrot.lane.b32.xlu0 %v2052_v19, %s3253_s26  ;;  %v2140_v23 = vmul.f32 %v2139_v6, %v4107_v47  ;;  %v2141_v60 = vmul.f32 %v2139_v6, %v4080_v54  ;;  %v1631_v26 = vrot.slane %v1624_v13, 7 }
 0x292   : > { %v1594_v41 = vsel %vm376_vm7, %v5399_v32, %v5398_v16  ;;  %v1629_v42 = vrot.slane %v4773_v62, 7  ;;  %v1693_v39 = vadd.f32 %v1686_v40, %v1619_v53  ;;  %v2100_v20 = vsel %vm372_vm5, %v2097_v58, %v2099_v14 }
 0x293   : > { %v1801_v4 = vpop.permute.xlu2 %1800  ;;  %v1720_v44 = vpop.permute.xlu0 %1719  ;;  %v1599_v21 = vadd.f32 %v1594_v41, %v1513_v2  ;;  %v2079_v61 = vsel %vm372_vm5, %v2076_v0, %v2078_v31  ;;  %v5400_v22 = vrot.slane %v4507_v17, 3  ;;  %v2117_v35 = vmul.f32 %v2114_v5, %v4100_v51 }
 0x294   : > { %v1725_v57 = vadd.f32 %v1720_v44, %v1654_v34  ;;  %v2146_v19 = vrot.slane %v2140_v23, 2  ;;  %v2147_v7 = vrot.slane %v2141_v60, 2  ;;  %v1698_v10 = vmul.f32 %v4618_v38, %v4100_v51 }
 0x295   : > { %v1668_v9 = vsel %vm370_vm4, %v5400_v22, %v1667_v24  ;;  %v1632_v58 = vsel %vm376_vm7, %v1629_v42, %v1631_v26  ;;  %v2164_v29 = vstv %s4768_s23  ;;  %v2124_v59 = vrot.slane %v2117_v35, 2  ;;  %s3024_s23 = sld [smem:[#allocation7 + $0x60]] }
 0x296   : > { %2126 = vrot.lane.b32.xlu1 %v2123_v55, %s3253_s26  ;;  %v1673_v0 = vadd.f32 %v1668_v9, %v1599_v21  ;;  %v1638_v17 = vadd.f32 %v1632_v58, %v1564_v63  ;;  %v5401_v52 = vrot.slane %v4418_v50, 7  ;;  %v2148_v18 = vsel %vm372_vm5, %v2146_v19, %v2147_v7 }
 0x297   : > { %v1705_v38 = vrot.slane %v1698_v10, 3  ;;  %v2165_v2 = vmul.f32 %v2164_v29, %v4107_v47  ;;  %v2166_v13 = vmul.f32 %v2164_v29, %v4080_v54  ;;  %v2125_v48 = vsel %vm372_vm5, %v2122_v28, %v2124_v59 }
 0x298   : > { %v1760_v11 = vpop.permute.xlu1 %1759  ;;  %v1611_v49 = vsel %vm376_vm7, %v5401_v52, %v1610_v12  ;;  %v2142_v50 = vmul.f32 %v2139_v6, %v4100_v51  ;;  %v4817_v62 = vadd.f32 %v1801_v4, %v1725_v57  ;;  %v5402_v44 = vrot.slane %v4566_v46, 3 }
 0x299   : > { %v4795_v30 = vadd.f32 %v1760_v11, %v1693_v39  ;;  %2103 = vrot.lane.b32.xlu2 %v2100_v20, %s3253_s26  ;;  %2082 = vrot.lane.b32.xlu0 %v2079_v61, %s3253_s26  ;;  %v1618_v63 = vadd.f32 %v1611_v49, %v4451_v33  ;;  %v1712_v34 = vadd.f32 %v1705_v38, %v1638_v17  ;;  %v2171_v55 = vrot.slane %v2165_v2, 6 }
 0x29a   : > { %v1687_v31 = vsel %vm370_vm4, %v5402_v44, %v1686_v40  ;;  %v2172_v33 = vrot.slane %v2166_v13, 6  ;;  %v2185_v32 = vstv %s4803_s27  ;;  %v2149_v4 = vrot.slane %v2142_v50, 2  ;;  %s3022_s27 = sld [smem:[#allocation7 + $0x52]] }
 0x29b   : > { %v1824_v24 = vpop.permute.xlu2 %1823  ;;  %v1738_v5 = vpop.permute.xlu0 %1737  ;;  %v1692_v16 = vadd.f32 %v1687_v31, %v1618_v63  ;;  %v1630_v23 = vsel %vm376_vm7, %v1628_v56, %v1629_v42  ;;  %v2187_v46 = vmul.f32 %v2185_v32, %v4080_v54  ;;  %v2167_v21 = vmul.f32 %v2164_v29, %v4100_v51 }
 0x29c   : > { %v1745_v3 = vadd.f32 %v1738_v5, %v1673_v0  ;;  %v2173_v57 = vsel %vm378_vm8, %v2171_v55, %v2172_v33  ;;  %v1637_v40 = vadd.f32 %v1630_v23, %v4496_v1  ;;  %v2150_v26 = vsel %vm372_vm5, %v2147_v7, %v2149_v4 }
 0x29d   : > { %v1706_v36 = vsel %vm370_vm4, %v1703_v25, %v1705_v38  ;;  %v2191_v1 = vrot.slane %v2187_v46, 7  ;;  %v2206_v20 = vstv %s3012_s5  ;;  %v2174_v35 = vrot.slane %v2167_v21, 6  ;;  %s3027_s5 = sld [smem:[#allocation7 + $0x45]] }
 0x29e   : > { %2151 = vrot.lane.b32.xlu1 %v2148_v18, %s3253_s26  ;;  %v4837_v39 = vadd.f32 %v1824_v24, %v1745_v3  ;;  %v1711_v42 = vadd.f32 %v1706_v36, %v1637_v40  ;;  %v2207_v19 = vmul.f32 %v2206_v20, %v4107_v47  ;;  %v2208_v7 = vmul.f32 %v2206_v20, %v4080_v54 }
 0x29f   : > { %v2175_v25 = vsel %vm378_vm8, %v2172_v33, %v2174_v35  ;;  %v2231_v17 = vstv %s3013_s7  ;;  %v2209_v18 = vmul.f32 %v2206_v20, %v4100_v51  ;;  %v2256_v50 = vstv %s3014_s8  ;;  %s3031_s7 = sld [smem:[#allocation7 + $0x61]] }
 0x2a0   : > { %v1780_v53 = vpop.permute.xlu1 %1779  ;;  %v2213_v0 = vrot.slane %v2207_v19, 7  ;;  %v2214_v29 = vrot.slane %v2208_v7, 7  ;;  %v2232_v52 = vmul.f32 %v2231_v17, %v4107_v47  ;;  %v2233_v49 = vmul.f32 %v2231_v17, %v4080_v54  ;;  %s3028_s8 = sld [smem:[#allocation7 + $0x4c]] }
 0x2a1   : > { %v4819_v12 = vadd.f32 %v1780_v53, %v1712_v34  ;;  %2128 = vrot.lane.b32.xlu2 %v2125_v48, %s3253_s26  ;;  %2105 = vrot.lane.b32.xlu0 %v2099_v14, %s3253_s26  ;;  %v2186_v14 = vmul.f32 %v2185_v32, %v4107_v47  ;;  %v2216_v48 = vrot.slane %v2209_v18, 7  ;;  %v2259_v31 = vmul.f32 %v2256_v50, %v4100_v51 }
 0x2a2   : > { %v2239_v13 = vrot.slane %v2233_v49, 7  ;;  %v2257_v36 = vmul.f32 %v2256_v50, %v4107_v47  ;;  %v2327_v49 = vstv %s3017_s10  ;;  %s3258_s10 = smov 16   ;;  %vm2807_vm8 = vcmask 916480  }
 0x2a3   : > { %v1849_v28 = vpop.permute.xlu2 %1848  ;;  %v1758_v41 = vpop.permute.xlu0 %1757  ;;  %v2190_v56 = vrot.slane %v2186_v14, 7  ;;  %v2217_v33 = vsel %vm376_vm7, %v2214_v29, %v2216_v48  ;;  %v2330_v18 = vmul.f32 %v2327_v49, %v4100_v51 }
 0x2a4   : > { %v1765_v6 = vadd.f32 %v1758_v41, %v1692_v16  ;;  %v2234_v16 = vmul.f32 %v2231_v17, %v4100_v51  ;;  %v2263_v35 = vrot.slane %v2257_v36, 3 }
 0x2a6   : > { %2176 = vrot.lane.b32.xlu1 %v2173_v57, %s3253_s26  ;;  %v4852_v10 = vadd.f32 %v1849_v28, %v1765_v6  ;;  %v2266_v28 = vrot.slane %v2259_v31, 3  ;;  %v2241_v23 = vrot.slane %v2234_v16, 7 }
 0x2a8   : > { %v1822_v60 = vpop.permute.xlu1 %1821 }
 0x2a9   : > { %v4840_v11 = vadd.f32 %v1822_v60, %v4605_v8  ;;  %2153 = vrot.lane.b32.xlu2 %v2150_v26, %s3253_s26  ;;  %2130 = vrot.lane.b32.xlu0 %v2124_v59, %s3253_s26  ;;  %v2192_v8 = vsel %vm376_vm7, %v2190_v56, %v2191_v1  ;;  %v2215_v59 = vsel %vm376_vm7, %v2213_v0, %v2214_v29 }
 0x2aa   : > { %v2242_v26 = vsel %vm376_vm7, %v2239_v13, %v2241_v23  ;;  %v2352_v23 = vstv %s4930_s12  ;;  %s3260_s12 = smov 96  }
 0x2ab   : > { %v1870_v61 = vpop.permute.xlu2 %1869  ;;  %v1778_v22 = vpop.permute.xlu0 %1777 }
 0x2ac   : > { %v1785_v9 = vadd.f32 %v1778_v22, %v1711_v42 }
 0x2ae   : > { %2195 = vrot.lane.b32.xlu1 %v2192_v8, %s3254_s9  ;;  %v4865_v38 = vadd.f32 %v1870_v61, %v1785_v9  ;;  %v2302_v8 = vstv %s3016_s24  ;;  %s3030_s24 = sld [smem:[#allocation7 + $0x5a]] }
 0x2af   : > { %v2305_v19 = vmul.f32 %v2302_v8, %v4100_v51 }
 0x2b0   : > { %v1847_v27 = vpop.permute.xlu1 %1846 }
 0x2b1   : > { %v4855_v58 = vadd.f32 %v1847_v27, %v4670_v45  ;;  %2178 = vrot.lane.b32.xlu2 %v2175_v25, %s3253_s26  ;;  %2155 = vrot.lane.b32.xlu0 %v2149_v4, %s3253_s26  ;;  %s3015_s26 = sld [smem:[#allocation7 + $0x51]] }
 0x2b3   : > { %v1895_v24 = vpop.permute.xlu2 %1894  ;;  %v1803_v5 = vpop.permute.xlu0 %1802 }
 0x2b4   : > { %v1807_v3 = vadd.f32 %v1803_v5, %v4704_v37  ;;  %v2238_v37 = vrot.slane %v2232_v52, 7 }
 0x2b6   : > { %2220 = vrot.lane.b32.xlu1 %v2215_v59, %s3254_s9  ;;  %v2240_v44 = vsel %vm376_vm7, %v2238_v37, %v2239_v13  ;;  %v4879_v32 = vadd.f32 %v1895_v24, %v1807_v3  ;;  %v2312_v3 = vrot.slane %v2305_v19, 3  ;;  %v2328_v13 = vmul.f32 %v2327_v49, %v4107_v47 }
 0x2b7   : > { %v2277_v14 = vstv %s3015_s26  ;;  %s3026_s26 = sld [smem:[#allocation7 + $0x3e]]  ;;  %vm2805_vm7 = vcmask 785408  }
 0x2b8   : > { %v1868_v45 = vpop.permute.xlu1 %1867  ;;  %v2278_v40 = vmul.f32 %v2277_v14, %v4107_v47  ;;  %v2279_v21 = vmul.f32 %v2277_v14, %v4080_v54  ;;  %v2334_v31 = vrot.slane %v2328_v13, 3 }
 0x2b9   : > { %v4868_v2 = vadd.f32 %v1868_v45, %v4727_v15  ;;  %2197 = vrot.lane.b32.xlu2 %v2191_v1, %s3254_s9  ;;  %2193 = vrot.lane.b32.xlu0 %v2190_v56, %s3254_s9  ;;  %v2258_v15 = vmul.f32 %v2256_v50, %v4080_v54 }
 0x2ba   : > { %v2284_v61 = vrot.slane %v2278_v40, 3  ;;  %v2285_v9 = vrot.slane %v2279_v21, 3  ;;  %v2406_v21 = vstv %s3021_s21  ;;  %s3262_s21 = smov 64  }
 0x2bb   : > { %v1918_v63 = vpop.permute.xlu2 %1917  ;;  %v1826_v34 = vpop.permute.xlu0 %1825  ;;  %v2264_v4 = vrot.slane %v2258_v15, 3 }
 0x2bc   : > { %v1832_v53 = vadd.f32 %v1826_v34, %v4755_v43  ;;  %v2286_v27 = vsel %vm370_vm4, %v2284_v61, %v2285_v9  ;;  %v2354_v61 = vmul.f32 %v2352_v23, %v4080_v54 }
 0x2bd   : > { %v2267_v46 = vsel %vm370_vm4, %v2264_v4, %v2266_v28  ;;  %v2265_v25 = vsel %vm370_vm4, %v2263_v35, %v2264_v4 }
 0x2be   : > { %2245 = vrot.lane.b32.xlu1 %v2240_v44, %s3254_s9  ;;  %v4894_v56 = vadd.f32 %v1918_v63, %v1832_v53  ;;  %v2329_v63 = vmul.f32 %v2327_v49, %v4080_v54  ;;  %v2337_v44 = vrot.slane %v2330_v18, 3  ;;  %v2407_v49 = vmul.f32 %v2406_v21, %v4107_v47 }
 0x2c0   : > { %v1893_v55 = vpop.permute.xlu1 %1892  ;;  %v2335_v15 = vrot.slane %v2329_v63, 3 }
 0x2c1   : > { %v4882_v43 = vadd.f32 %v1893_v55, %v4817_v62  ;;  %2222 = vrot.lane.b32.xlu2 %v2217_v33, %s3254_s9  ;;  %2218 = vrot.lane.b32.xlu0 %v2213_v0, %s3254_s9  ;;  %v2280_v62 = vmul.f32 %v2277_v14, %v4100_v51  ;;  %v2304_v0 = vmul.f32 %v2302_v8, %v4080_v54 }
 0x2c2   : > { %v2353_v14 = vmul.f32 %v2352_v23, %v4107_v47 }
 0x2c3   : > { %v1943_v41 = vpop.permute.xlu2 %1942  ;;  %v1851_v6 = vpop.permute.xlu0 %1850  ;;  %v2287_v20 = vrot.slane %v2280_v62, 3  ;;  %v2310_v52 = vrot.slane %v2304_v0, 3 }
 0x2c4   : > { %v1857_v57 = vadd.f32 %v1851_v6, %v4795_v30 }
 0x2c5   : > { %v2288_v45 = vsel %vm370_vm4, %v2285_v9, %v2287_v20  ;;  %v2313_v33 = vsel %vm370_vm4, %v2310_v52, %v2312_v3 }
 0x2c6   : > { %2270 = vrot.lane.b32.xlu1 %v2267_v46, %s3254_s9  ;;  %v4908_v29 = vadd.f32 %v1943_v41, %v1857_v57  ;;  %v2338_v46 = vsel %vm370_vm4, %v2335_v15, %v2337_v44 }
 0x2c8   : > { %v1916_v60 = vpop.permute.xlu1 %1915 }
 0x2c9   : > { %v4897_v30 = vadd.f32 %v1916_v60, %v4837_v39  ;;  %2247 = vrot.lane.b32.xlu2 %v2242_v26, %s3254_s9  ;;  %2243 = vrot.lane.b32.xlu0 %v2238_v37, %s3254_s9  ;;  %v2303_v39 = vmul.f32 %v2302_v8, %v4107_v47 }
 0x2cb   : > { %v1968_v1 = vpop.permute.xlu2 %1967  ;;  %v1872_v42 = vpop.permute.xlu0 %1871  ;;  %v2309_v59 = vrot.slane %v2303_v39, 3 }
 0x2cc   : > { %v1878_v22 = vadd.f32 %v1872_v42, %v4819_v12 }
 0x2cd   : > { %v2311_v37 = vsel %vm370_vm4, %v2309_v59, %v2310_v52 }
 0x2ce   : > { %2293 = vrot.lane.b32.xlu1 %v2287_v20, %s3254_s9  ;;  %v4922_v34 = vadd.f32 %v1968_v1, %v1878_v22  ;;  %v2408_v1 = vmul.f32 %v2406_v21, %v4080_v54 }
 0x2d0   : > { %v1941_v7 = vpop.permute.xlu1 %1940 }
 0x2d1   : > { %v4911_v12 = vadd.f32 %v1941_v7, %v4852_v10  ;;  %2289 = vrot.lane.b32.xlu2 %v2286_v27, %s3254_s9  ;;  %2268 = vrot.lane.b32.xlu0 %v2265_v25, %s3254_s9  ;;  %v2409_v25 = vmul.f32 %v2406_v21, %v4100_v51 }
 0x2d3   : > { %v2010_v17 = vpop.permute.xlu2 %2009  ;;  %v1914_v24 = vpop.permute.xlu0 %1913 }
 0x2d4   : > { %v1922_v5 = vadd.f32 %v1914_v24, %v4840_v11 }
 0x2d6   : > { %2318 = vrot.lane.b32.xlu1 %v2312_v3, %s3254_s9  ;;  %v4935_v16 = vadd.f32 %v2010_v17, %v1922_v5 }
 0x2d8   : > { %v1966_v10 = vpop.permute.xlu1 %1965 }
 0x2d9   : > { %v4925_v11 = vadd.f32 %v1966_v10, %v4865_v38  ;;  %2314 = vrot.lane.b32.xlu2 %v2311_v37, %s3254_s9  ;;  %2291 = vrot.lane.b32.xlu0 %v2288_v45, %s3254_s9  ;;  %v2336_v38 = vsel %vm370_vm4, %v2334_v31, %v2335_v15  ;;  %v2447_v45 = vstv %s3023_s22  ;;  %v4997_v31 = vstv %s3029_s19  ;;  %s3038_s22 = sshll.u32 %s3308_s2, 3  ;;  %s2826_s2 = scalar_lea.sflag [#allocation5], %s3380_s4 }
 0x2da   : > { %v2450_v10 = vmul.f32 %v2447_v45, %v4100_v51  ;;  %vm2799_vm4 = vcmask 392192  }
 0x2db   : > { %v2031_v53 = vpop.permute.xlu2 %2030  ;;  %v1939_v48 = vpop.permute.xlu0 %1938 }
 0x2dc   : > { %v1947_v50 = vadd.f32 %v1939_v48, %v4855_v58  ;;  %v2366_v58 = vstv %s3019_s11  ;;  %v2457_v48 = vrot.slane %v2450_v10, 4  ;;  %s3259_s11 = smov 48  }
 0x2dd   : > { %v2367_v57 = vmul.f32 %v2366_v58, %v4107_v47  ;;  %v2369_v0 = vmul.f32 %v2366_v58, %v4100_v51 }
 0x2de   : > { %2343 = vrot.lane.b32.xlu1 %v2337_v44, %s3254_s9  ;;  %v4948_v62 = vadd.f32 %v2031_v53, %v1947_v50 }
 0x2e0   : > { %v1991_v55 = vpop.permute.xlu1 %1990 }
 0x2e1   : > { %v4938_v28 = vadd.f32 %v1991_v55, %v4879_v32  ;;  %2339 = vrot.lane.b32.xlu2 %v2336_v38, %s3254_s9  ;;  %2316 = vrot.lane.b32.xlu0 %v2313_v33, %s3254_s9  ;;  %v2592_v38 = vmul.f32 %v4997_v31, %v4100_v51 }
 0x2e3   : > { %v2056_v41 = vpop.permute.xlu2 %2055  ;;  %v1964_v6 = vpop.permute.xlu0 %1963 }
 0x2e4   : > { %v1972_v4 = vadd.f32 %v1964_v6, %v4868_v2  ;;  %v2497_v2 = vstv %s3025_s18  ;;  %s3261_s18 = smov 80  }
 0x2e5   : > { %v2498_v42 = vmul.f32 %v2497_v2, %v4107_v47  ;;  %v2499_v20 = vmul.f32 %v2497_v2, %v4080_v54 }
 0x2e6   : > { %2373 = vrot.lane.b32.xlu1 %v2367_v57, %s3255_s28  ;;  %v4962_v9 = vadd.f32 %v2056_v41, %v1972_v4  ;;  %v2599_v57 = vrot.slane %v2592_v38, 1 }
 0x2e7   : > { %v2503_v8 = vrot.slane %v2499_v20, 5  ;;  %v5033_v20 = vstv %s3022_s27  ;;  %s2837_s27 = scalar_lea.hbm %s5229_s3, %s3038_s22 }
 0x2e8   : > { %v2014_v32 = vpop.permute.xlu1 %2013 }
 0x2e9   : > { %v4951_v40 = vadd.f32 %v2014_v32, %v4894_v56  ;;  %2357 = vrot.lane.b32.xlu2 %v2353_v14, %s3255_s28  ;;  %2341 = vrot.lane.b32.xlu0 %v2338_v46, %s3254_s9  ;;  %v2368_v56 = vmul.f32 %v2366_v58, %v4080_v54  ;;  %s3020_s9 = sld [smem:[#allocation7 + $0x44]]  ;;  %v5017_v14 = vstv %s3024_s23 }
 0x2eb   : > { %v2081_v60 = vpop.permute.xlu2 %2080  ;;  %v1989_v26 = vpop.permute.xlu0 %1988 }
 0x2ec   : > { %v1994_v36 = vadd.f32 %v1989_v26, %v4882_v43  ;;  %v2502_v43 = vrot.slane %v2498_v42, 5 }
 0x2ee   : > { %2415 = vrot.lane.b32.xlu1 %v2408_v1, %s3255_s28  ;;  %v2504_v27 = vsel %vm367_vm3, %v2502_v43, %v2503_v8  ;;  %v4974_v17 = vadd.f32 %v2081_v60, %v1994_v36 }
 0x2ef   : > { %v2386_v3 = vstv %s3020_s9  ;;  %s3263_s9 = smov 112  }
 0x2f0   : > { %v2035_v22 = vpop.permute.xlu1 %2034  ;;  %v2389_v52 = vmul.f32 %v2386_v3, %v4100_v51  ;;  %v2388_v44 = vmul.f32 %v2386_v3, %v4080_v54  ;;  %v2387_v4 = vmul.f32 %v2386_v3, %v4107_v47 }
 0x2f1   : > { %v4965_v35 = vadd.f32 %v2035_v22, %v4908_v29  ;;  %2375 = vrot.lane.b32.xlu2 %v2368_v56, %s3255_s28  ;;  %2359 = vrot.lane.b32.xlu0 %v2354_v61, %s3255_s28  ;;  %v2429_v56 = vmul.f32 %v5033_v20, %v4100_v51  ;;  %v5040_v61 = vmul.f32 %v5033_v20, %v4080_v54  ;;  %v2539_v22 = vstv %s3027_s5  ;;  %s203_s5 = scalar_lea.vmem [#allocation8], %s2932_s6  ;;  %s3190_s6 = scalar_lea.hbm %s5229_s3, 16 }
 0x2f2   : > { %v2540_v3 = vmul.f32 %v2539_v22, %v4107_v47 }
 0x2f3   : > { %v2104_v19 = vpop.permute.xlu2 %2103  ;;  %v2012_v39 = vpop.permute.xlu0 %2011 }
 0x2f4   : > { %v2019_v7 = vadd.f32 %v2012_v39, %v4897_v30  ;;  %v2436_v39 = vrot.slane %v2429_v56, 4 }
 0x2f6   : > { %2507 = vrot.lane.b32.xlu1 %v2504_v27, %s3256_s13  ;;  %v4986_v37 = vadd.f32 %v2104_v19, %v2019_v7  ;;  %v2541_v7 = vmul.f32 %v2539_v22, %v4080_v54  ;;  %v2474_v27 = vmul.f32 %v5017_v14, %v4080_v54 }
 0x2f8   : > { %v2060_v29 = vpop.permute.xlu1 %2059 }
 0x2f9   : > { %v4977_v24 = vadd.f32 %v2060_v29, %v4922_v34  ;;  %2417 = vrot.lane.b32.xlu2 %v2409_v25, %s3255_s28  ;;  %2377 = vrot.lane.b32.xlu0 %v2369_v0, %s3255_s28  ;;  %v2434_v29 = vrot.slane %v5040_v61, 4 }
 0x2fb   : > { %v2129_v30 = vpop.permute.xlu2 %2128  ;;  %v2033_v5 = vpop.permute.xlu0 %2032 }
 0x2fc   : > { %v2040_v59 = vadd.f32 %v2033_v5, %v4911_v12  ;;  %v2449_v12 = vmul.f32 %v2447_v45, %v4080_v54 }
 0x2fe   : > { %2397 = vrot.lane.b32.xlu1 %v2389_v52, %s3255_s28  ;;  %v2455_v50 = vrot.slane %v2449_v12, 4  ;;  %v5002_v33 = vadd.f32 %v2129_v30, %v2040_v59  ;;  %v2547_v59 = vrot.slane %v2541_v7, 1  ;;  %v2480_v52 = vrot.slane %v2474_v27, 4 }
 0x300   : > { %v2102_v18 = vpop.permute.xlu1 %2101  ;;  %v2458_v55 = vsel %vm211_vm0, %v2455_v50, %v2457_v48 }
 0x301   : > { %v4989_v13 = vadd.f32 %v2102_v18, %v4935_v16  ;;  %2509 = vrot.lane.b32.xlu2 %v2503_v8, %s3256_s13  ;;  %2413 = vrot.lane.b32.xlu0 %v2407_v49, %s3255_s28  ;;  %v2542_v8 = vmul.f32 %v2539_v22, %v4100_v51 }
 0x303   : > { %v2154_v63 = vpop.permute.xlu2 %2153  ;;  %v2058_v34 = vpop.permute.xlu0 %2057  ;;  %v2549_v5 = vrot.slane %v2542_v8, 1 }
 0x304   : > { %v2065_v53 = vadd.f32 %v2058_v34, %v4925_v11  ;;  %v5011_v11 = vmul.f32 %v4997_v31, %v4080_v54 }
 0x306   : > { %2505 = vrot.lane.b32.xlu1 %v2502_v43, %s3256_s13  ;;  %v2597_v23 = vrot.slane %v5011_v11, 1  ;;  %v5025_v2 = vadd.f32 %v2154_v63, %v2065_v53  ;;  %v2546_v63 = vrot.slane %v2540_v3, 1 }
 0x308   : > { %v2127_v15 = vpop.permute.xlu1 %2126  ;;  %v2600_v46 = vsel %vm374_vm6, %v2597_v23, %v2599_v57 }
 0x309   : > { %v5005_v16 = vadd.f32 %v2127_v15, %v4948_v62  ;;  %2461 = vrot.lane.b32.xlu2 %v2458_v55, %s3255_s28  ;;  %2395 = vrot.lane.b32.xlu0 %v2388_v44, %s3255_s28  ;;  %v2475_v62 = vmul.f32 %v5017_v14, %v4100_v51  ;;  %v5073_v44 = vstv %s3031_s7  ;;  %v2564_v55 = vstv %s3028_s8  ;;  %s2839_s7 = sshll.u32 %s203_s5, 4  ;;  %s2841_s8 = sshll.u32 %s2837_s27, 4  ;;  %s2840_s7 = int_to_ptr.vmem [resolvable:$true] %s2839_s7  ;;  %s2842_s8 = int_to_ptr.hbm [resolvable:$true] %s2841_s8 }
 0x30a   : > { %v2638_v15 = vmul.f32 %v5073_v44, %v4100_v51 }
 0x30b   : > { %v2179_v58 = vpop.permute.xlu2 %2178  ;;  %v2083_v41 = vpop.permute.xlu0 %2082  ;;  %v2482_v1 = vrot.slane %v2475_v62, 4 }
 0x30c   : > { %v2087_v6 = vadd.f32 %v2083_v41, %v4938_v28  ;;  %v2448_v28 = vmul.f32 %v2447_v45, %v4107_v47  ;;  %v2550_v45 = vsel %vm374_vm6, %v2547_v59, %v2549_v5  ;;  %v2473_v41 = vmul.f32 %v5017_v14, %v4107_v47 }
 0x30d   : > { %v2483_v18 = vsel %vm211_vm0, %v2480_v52, %v2482_v1 }
 0x30e   : > { %2393 = vrot.lane.b32.xlu1 %v2387_v4, %s3255_s28  ;;  %v2454_v42 = vrot.slane %v2448_v28, 4  ;;  %v2479_v14 = vrot.slane %v2473_v41, 4 }
 0x310   : > { %v2152_v32 = vpop.permute.xlu1 %2151  ;;  %v2456_v43 = vsel %vm211_vm0, %v2454_v42, %v2455_v50  ;;  %v2481_v22 = vsel %vm211_vm0, %v2479_v14, %v2480_v52 }
 0x311   : > { %v5028_v60 = vadd.f32 %v2152_v32, %v4962_v9  ;;  %2603 = vrot.lane.b32.xlu2 %v2600_v46, %s3256_s13  ;;  %2463 = vrot.lane.b32.xlu0 %v2457_v48, %s3255_s28  ;;  %v2566_v32 = vmul.f32 %v2564_v55, %v4080_v54 }
 0x313   : > { %v2198_v26 = vpop.permute.xlu2 %2197  ;;  %v2106_v21 = vpop.permute.xlu0 %2105 }
 0x314   : > { %v2112_v36 = vadd.f32 %v2106_v21, %v4951_v40  ;;  %v5044_v40 = vadd.f32 %v2179_v58, %v2087_v6  ;;  %v2567_v58 = vmul.f32 %v2564_v55, %v4100_v51 }
 0x316   : > { %2488 = vrot.lane.b32.xlu1 %v2482_v1, %s3255_s28  ;;  %v5065_v10 = vadd.f32 %v2198_v26, %v2112_v36  ;;  %v2574_v28 = vrot.slane %v2567_v58, 1  ;;  %v2518_v26 = vstv %s3026_s26  ;;  %v2572_v36 = vrot.slane %v2566_v32, 1  ;;  %s3184_s26 = sshra.s32 %s2842_s8, 4  ;;  %s3185_s26 = int_to_ptr.hbm [resolvable:$true] %s3184_s26 }
 0x317   : > { %v2520_v1 = vmul.f32 %v2518_v26, %v4080_v54  ;;  %p3191_p9 = scmp.lt.s32.totalorder %s3185_s26, %s5229_s3 }
 0x318   : > { %v2177_v9 = vpop.permute.xlu1 %2176  ;;  %v2575_v56 = vsel %vm374_vm6, %v2572_v36, %v2574_v28 }
 0x319   : > { %v5047_v19 = vadd.f32 %v2177_v9, %v4974_v17  ;;  %2459 = vrot.lane.b32.xlu2 %v2456_v43, %s3255_s28  ;;  %2605 = vrot.lane.b32.xlu0 %v2599_v57, %s3256_s13  ;;  %v2437_v17 = vsel %vm211_vm0, %v2434_v29, %v2436_v39  ;;  %v2645_v57 = vrot.slane %v2638_v15, 5  ;;  %v2526_v7 = vrot.slane %v2520_v1, 1 }
 0x31b   : > { %v2223_v25 = vpop.permute.xlu2 %2222  ;;  %v2131_v0 = vpop.permute.xlu0 %2130 }
 0x31c   : > { %v2137_v30 = vadd.f32 %v2131_v0, %v4965_v35  ;;  %v2590_v35 = vmul.f32 %v4997_v31, %v4107_v47  ;;  %v2548_v31 = vsel %vm374_vm6, %v2546_v63, %v2547_v59  ;;  %v2519_v0 = vmul.f32 %v2518_v26, %v4107_v47 }
 0x31d   : > { %v2614_v63 = vstv %s3030_s24  ;;  %s3186_s24 = scalar_lea.hbm %s3185_s26, 8 }
 0x31e   : > { %2440 = vrot.lane.b32.xlu1 %v2437_v17, %s3255_s28  ;;  %v2596_v50 = vrot.slane %v2590_v35, 1  ;;  %v5089_v6 = vadd.f32 %v2223_v25, %v2137_v30  ;;  %v2565_v30 = vmul.f32 %v2564_v55, %v4107_v47  ;;  %p3187_p1 = scmp.ne.s32.totalorder %s3185_s26, %s3186_s24  ;;  %p3192_p10 = scmp.lt.s32.totalorder %s3190_s6, %s3186_s24 }
 0x320   : > { %v2196_v49 = vpop.permute.xlu1 %2195  ;;  %p3188_p4 = pnand %p3187_p1, %p3353_p3  ;;  %p3193_p2 = por %p3192_p10, %p3191_p9 }
 0x321   : > { %v5068_v12 = vadd.f32 %v2196_v49, %v4986_v37  ;;  %2553 = vrot.lane.b32.xlu2 %v2550_v45, %s3256_s13  ;;  %2486 = vrot.lane.b32.xlu0 %v2483_v18, %s3255_s28  ;;  %v5081_v37 = vmul.f32 %v5073_v44, %v4080_v54  ;;  %v2571_v45 = vrot.slane %v2565_v30, 1 }
 0x322   : > { %p3189_p8 = pneg %p3188_p4 }
 0x323   : > { %v2248_v34 = vpop.permute.xlu2 %2247  ;;  %v2156_v53 = vpop.permute.xlu0 %2155 }
 0x324   : > { %v2162_v48 = vadd.f32 %v2156_v53, %v4977_v24  ;;  %v2598_v24 = vsel %vm374_vm6, %v2596_v50, %v2597_v23  ;;  %v2643_v23 = vrot.slane %v5081_v37, 5  ;;  %v2617_v53 = vmul.f32 %v2614_v63, %v4100_v51  ;;  %p3194_p11 = pnand %p3193_p2, %p3189_p8 }
 0x325   : > { %v2616_v50 = vmul.f32 %v2614_v63, %v4080_v54 }
 0x326   : > { %2551 = vrot.lane.b32.xlu1 %v2548_v31, %s3256_s13  ;;  %v2646_v21 = vsel %vm367_vm3, %v2643_v23, %v2645_v57  ;;  %v2254_v9 = vadd.f32 %v2248_v34, %v2162_v48  ;;  %v2573_v34 = vsel %vm374_vm6, %v2571_v45, %v2572_v36  ;;  %v2636_v48 = vmul.f32 %v5073_v44, %v4107_v47 }
 0x327   : > { %v2622_v37 = vrot.slane %v2616_v50, 5 }
 0x328   : > { %v2221_v38 = vpop.permute.xlu1 %2220 }
 0x329   : > { %v5092_v4 = vadd.f32 %v2221_v38, %v5002_v33  ;;  %2601 = vrot.lane.b32.xlu2 %v2598_v24, %s3256_s13  ;;  %2555 = vrot.lane.b32.xlu0 %v2549_v5, %s3256_s13  ;;  %v2521_v33 = vmul.f32 %v2518_v26, %v4100_v51  ;;  %v2427_v5 = vmul.f32 %v5033_v20, %v4107_v47  ;;  %v2642_v51 = vrot.slane %v2636_v48, 5 }
 0x32a   : > { %v2615_v38 = vmul.f32 %v2614_v63, %v4107_v47 }
 0x32b   : > { %v2290_v11 = vpop.permute.xlu2 %2289  ;;  %v2194_v46 = vpop.permute.xlu0 %2193  ;;  %v2528_v43 = vrot.slane %v2521_v33, 1  ;;  %v2433_v18 = vrot.slane %v2427_v5, 4 }
 0x32c   : > { %v2202_v62 = vadd.f32 %v2194_v46, %v4989_v13  ;;  %v2621_v41 = vrot.slane %v2615_v38, 5 }
 0x32d   : > { %v2529_v25 = vsel %vm374_vm6, %v2526_v7, %v2528_v43 }
 0x32e   : > { %2649 = vrot.lane.b32.xlu1 %v2646_v21, %s3256_s13  ;;  %v2298_v17 = vadd.f32 %v2290_v11, %v2202_v62  ;;  %v2623_v11 = vsel %vm367_vm3, %v2621_v41, %v2622_v37 }
 0x330   : > { %v2246_v42 = vpop.permute.xlu1 %2245 }
 0x331   : > { %v5106_v13 = vadd.f32 %v2246_v42, %v5025_v2  ;;  %2578 = vrot.lane.b32.xlu2 %v2575_v56, %s3256_s13  ;;  %2484 = vrot.lane.b32.xlu0 %v2481_v22, %s3255_s28 }
 0x333   : > { %v5110_v8 = vpop.permute.xlu2 %2314  ;;  %v2219_v39 = vpop.permute.xlu0 %2218 }
 0x334   : > { %v5113_v27 = vadd.f32 %v2219_v39, %v5005_v16  ;;  %v2525_v16 = vrot.slane %v2519_v0, 1 }
 0x336   : > { %2532 = vrot.lane.b32.xlu1 %v2529_v25, %s3256_s13  ;;  %v2527_v35 = vsel %vm374_vm6, %v2525_v16, %v2526_v7  ;;  %v2323_v42 = vadd.f32 %v5110_v8, %v5113_v27 }
 0x338   : > { %v2271_v2 = vpop.permute.xlu1 %2270 }
 0x339   : > { %v2275_v3 = vadd.f32 %v2271_v2, %v5044_v40  ;;  %2651 = vrot.lane.b32.xlu2 %v2645_v57, %s3256_s13  ;;  %2580 = vrot.lane.b32.xlu0 %v2574_v28, %s3256_s13  ;;  %v2435_v40 = vsel %vm211_vm0, %v2433_v18, %v2434_v29  ;;  %v2624_v29 = vrot.slane %v2617_v53, 5 }
 0x33b   : > { %v2340_v59 = vpop.permute.xlu2 %2339  ;;  %v2244_v52 = vpop.permute.xlu0 %2243  ;;  %v2625_v44 = vsel %vm367_vm3, %v2622_v37, %v2624_v29 }
 0x33c   : > { %v2252_v49 = vadd.f32 %v2244_v52, %v5028_v60 }
 0x33e   : > { %2530 = vrot.lane.b32.xlu1 %v2527_v35, %s3256_s13  ;;  %v2348_v28 = vadd.f32 %v2340_v59, %v2252_v49 }
 0x340   : > { %v2294_v20 = vpop.permute.xlu1 %2293 }
 0x341   : > { %v5135_v60 = vadd.f32 %v2294_v20, %v5065_v10  ;;  %2576 = vrot.lane.b32.xlu2 %v2573_v34, %s3256_s13  ;;  %2438 = vrot.lane.b32.xlu0 %v2435_v40, %s3255_s28  ;;  %v2644_v10 = vsel %vm367_vm3, %v2642_v51, %v2643_v23  ;;  %s5169_s28 = sld [smem:[#allocation2]]  ;;  %vm2797_vm3 = vcmask 261120  }
 0x343   : > { %v5140_v31 = vpop.permute.xlu2 %2357  ;;  %v2269_v15 = vpop.permute.xlu0 %2268 }
 0x344   : > { %v5143_v61 = vadd.f32 %v2269_v15, %v5047_v19 }
 0x348   : > { %v2319_v55 = vpop.permute.xlu1 %2318 }
 0x349   : > { %v5149_v24 = vadd.f32 %v2319_v55, %v5089_v6  ;;  %2628 = vrot.lane.b32.xlu2 %v2625_v44, %s3256_s13  ;;  %2647 = vrot.lane.b32.xlu0 %v2644_v10, %s3256_s13 }
 0x34b   : > { %v2376_v54 = vpop.permute.xlu2 %2375  ;;  %v2292_v19 = vpop.permute.xlu0 %2291 }
 0x34c   : > { %v2299_v58 = vadd.f32 %v2292_v19, %v5068_v12 }
 0x34e   : > { %v2383_v57 = vadd.f32 %v2376_v54, %v2299_v58 }
 0x350   : > { %v2344_v32 = vpop.permute.xlu1 %2343 }
 0x351   : > { %v2350_v46 = vadd.f32 %v2344_v32, %v2254_v9  ;;  %2626 = vrot.lane.b32.xlu0 %v2623_v11, %s3256_s13  ;;  %s3257_s13 = smov 32  }
 0x353   : > { %v2418_v47 = vpop.permute.xlu2 %2417  ;;  %v2317_v23 = vpop.permute.xlu0 %2316 }
 0x354   : > { %v2424_v6 = vadd.f32 %v2418_v47, %v2350_v46  ;;  %v2324_v62 = vadd.f32 %v2317_v23, %v5092_v4 }
 0x358   : > { %v2374_v14 = vpop.permute.xlu1 %2373 }
 0x359   : > { %v5157_v26 = vadd.f32 %v2374_v14, %v2298_v17 }
 0x35b   : > { %v2510_v21 = vpop.permute.xlu2 %2509  ;;  %v2342_v33 = vpop.permute.xlu0 %2341 }
 0x35c   : > { %v2516_v12 = vadd.f32 %v2510_v21, %v2424_v6  ;;  %v2349_v36 = vadd.f32 %v2342_v33, %v5106_v13 }
 0x360   : > { %v2416_v1 = vpop.permute.xlu1 %2415 }
 0x361   : > { %v2423_v56 = vadd.f32 %v2416_v1, %v2349_v36 }
 0x363   : > { %v2462_v22 = vpop.permute.xlu2 %2461  ;;  %v2360_v9 = vpop.permute.xlu0 %2359 }
 0x364   : > { %v2364_v43 = vadd.f32 %v2360_v9, %v2275_v3  ;;  %v2469_v41 = vadd.f32 %v2462_v22, %v2383_v57 }
 0x368   : > { %v2508_v39 = vpop.permute.xlu1 %2507 }
 0x369   : > { %v2515_v59 = vadd.f32 %v2508_v39, %v2423_v56 }
 0x36b   : > { %v2604_v7 = vpop.permute.xlu2 %2603  ;;  %v2378_v4 = vpop.permute.xlu0 %2377 }
 0x36c   : > { %v2611_v49 = vadd.f32 %v2604_v7, %v2515_v59  ;;  %v2384_v44 = vadd.f32 %v2378_v4, %v5135_v60 }
 0x36e   : > { %v2675_v18 = vrot.slane %v2611_v49, 1 }
 0x370   : > { %v2398_v25 = vpop.permute.xlu1 %2397 }
 0x371   : > { %v2404_v36 = vadd.f32 %v2398_v25, %v5149_v24  ;;  %v2698_v25 = vstv %s5169_s28 }
 0x373   : > { %v5162_v0 = vpop.permute.xlu2 %2459  ;;  %v2414_v2 = vpop.permute.xlu0 %2413 }
 0x374   : > { %v2422_v30 = vadd.f32 %v2414_v2, %v2348_v28  ;;  %v2468_v49 = vadd.f32 %v5162_v0, %v5157_v26 }
 0x378   : > { %v2506_v5 = vpop.permute.xlu1 %2505 }
 0x379   : > { %v2514_v17 = vadd.f32 %v2506_v5, %v2422_v30 }
 0x37b   : > { %v2554_v16 = vpop.permute.xlu2 %2553  ;;  %v2396_v13 = vpop.permute.xlu0 %2395 }
 0x37c   : > { %v2403_v15 = vadd.f32 %v2396_v13, %v2324_v62  ;;  %v2561_v32 = vadd.f32 %v2554_v16, %v2469_v41 }
 0x380   : > { %v2394_v52 = vpop.permute.xlu1 %2393 }
 0x381   : > { %v2402_v6 = vadd.f32 %v2394_v52, %v2323_v42 }
 0x383   : > { %v2602_v8 = vpop.permute.xlu2 %2601  ;;  %v2464_v27 = vpop.permute.xlu0 %2463 }
 0x384   : > { %v2610_v45 = vadd.f32 %v2602_v8, %v2514_v17  ;;  %v2470_v54 = vadd.f32 %v2464_v27, %v2384_v44 }
 0x386   : > { %v2674_v3 = vrot.slane %v2610_v45, 1 }
 0x388   : > { %v2489_v35 = vpop.permute.xlu1 %2488  ;;  %v2676_v63 = vsel %vm374_vm6, %v2674_v3, %v2675_v18  ;;  %v2363_v3 = vadd.f32 %v5140_v31, %v5143_v61 }
 0x389   : > { %v2495_v57 = vadd.f32 %v2489_v35, %v2404_v36 }
 0x38b   : > { %v2606_v20 = vpop.permute.xlu0 %2605  ;;  %v2579_v34 = vpop.permute.xlu2 %2578 }
 0x38c   : > { %v2612_v40 = vadd.f32 %v2606_v20, %v2516_v12 }
 0x38e   : > { %v2677_v53 = vrot.slane %v2612_v40, 1 }
 0x390   : > { %v2441_v48 = vpop.permute.xlu1 %2440  ;;  %v2678_v50 = vsel %vm374_vm6, %v2675_v18, %v2677_v53 }
 0x391   : > { %v2445_v60 = vadd.f32 %v2441_v48, %v2364_v43 }
 0x393   : > { %v2487_v29 = vpop.permute.xlu0 %2486  ;;  %v2652_v37 = vpop.permute.xlu2 %2651 }
 0x394   : > { %v2494_v51 = vadd.f32 %v2487_v29, %v2403_v15 }
 0x396   : > { %v2586_v55 = vadd.f32 %v2579_v34, %v2494_v51 }
 0x398   : > { %v2683_v10 = vadd.f32 %v2678_v50, %v2586_v55  ;;  %v2552_v38 = vpop.permute.xlu1 %2551 }
 0x399   : > { %v2560_v27 = vadd.f32 %v2552_v38, %v2468_v49 }
 0x39a   : > { %v2689_v22 = vrot.slane %v2683_v10, 2 }
 0x39b   : > { %v2556_v19 = vpop.permute.xlu0 %2555  ;;  %v2577_v46 = vpop.permute.xlu2 %2576 }
 0x39c   : > { %v2562_v58 = vadd.f32 %v2556_v19, %v2470_v54 }
 0x39e   : > { %v2658_v11 = vadd.f32 %v2652_v37, %v2562_v58 }
 0x3a0   : > { %v2650_v47 = vpop.permute.xlu1 %2649  ;;  %v2665_v28 = vrot.slane %v2658_v11, 1 }
 0x3a1   : > { %v2657_v23 = vadd.f32 %v2650_v47, %v2561_v32 }
 0x3a3   : > { %v2663_v62 = vrot.slane %v2657_v23, 1  ;;  %v2485_v14 = vpop.permute.xlu0 %2484  ;;  %v2629_v39 = vpop.permute.xlu2 %2628 }
 0x3a4   : > { %v2493_v21 = vadd.f32 %v2485_v14, %v2402_v6 }
 0x3a5   : > { %v2666_v33 = vsel %vm374_vm6, %v2663_v62, %v2665_v28 }
 0x3a6   : > { %v2585_v12 = vadd.f32 %v2577_v46, %v2493_v21 }
 0x3a8   : > { %v2682_v1 = vadd.f32 %v2676_v63, %v2585_v12  ;;  %v2533_v56 = vpop.permute.xlu1 %2532 }
 0x3a9   : > { %v2537_v9 = vadd.f32 %v2533_v56, %v2445_v60 }
 0x3aa   : > { %v2688_v7 = vrot.slane %v2682_v1, 2 }
 0x3ab   : > { %v2633_v42 = vadd.f32 %v2629_v39, %v2537_v9  ;;  %v2581_v4 = vpop.permute.xlu0 %2580 }
 0x3ac   : > { %v2587_v2 = vadd.f32 %v2581_v4, %v2495_v57  ;;  %v2690_v30 = vsel %vm372_vm5, %v2688_v7, %v2689_v22 }
 0x3ad   : > { %v2670_v5 = vadd.f32 %v2666_v33, %v2633_v42 }
 0x3ae   : > { %v2684_v17 = vadd.f32 %v2677_v53, %v2587_v2 }
 0x3b0   : > { %v2691_v43 = vrot.slane %v2684_v17, 2  ;;  %v2531_v40 = vpop.permute.xlu1 %2530 }
 0x3b2   : > { %v2692_v24 = vsel %vm372_vm5, %v2689_v22, %v2691_v43  ;;  %vm2801_vm5 = vcmask 523264  }
 0x3b3   : > { %v2696_v16 = vadd.f32 %v2692_v24, %v2670_v5  ;;  %v2439_v13 = vpop.permute.xlu0 %2438 }
 0x3b4   : > { %v2444_v63 = vadd.f32 %v2439_v13, %v2363_v3 }
 0x3b5   : > { %v2700_v59 = vadd.f32 %v2698_v25, %v2696_v16 }
 0x3b6   : > { %v2536_v48 = vadd.f32 %v2531_v40, %v2444_v63 }
 0x3b7   : > { %v2702_v52 = vsub.f32 0.0, %v2700_v59 }
 0x3b9   : > { %v2705_v8 = vmul.f32 1.442695, %v2702_v52 }
 0x3bb   : > { %v2648_v45 = vpop.permute.xlu0 %2647  ;;  %3117 = vpow2.f32 %v2705_v8 }
 0x3bc   : > { %v2656_v18 = vadd.f32 %v2648_v45, %v2560_v27 }
 0x3be   : > { %v2662_v35 = vrot.slane %v2656_v18, 1 }
 0x3c0   : > { %v2664_v20 = vsel %vm374_vm6, %v2662_v35, %v2663_v62  ;;  %vm2803_vm6 = vcmask 654336  }
 0x3c1   : > { %v3118_v34 = vpop.eup %3117 }
 0x3c2   : > { %v2708_v53 = vadd.f32 1.0, %v3118_v34 }
 0x3c3   : > { %v2627_v50 = vpop.permute.xlu0 %2626 }
 0x3c4   : > { %3119 = vrcp.f32 %v2708_v53  ;;  %v2632_v15 = vadd.f32 %v2627_v50, %v2536_v48  ;;  %v2734_v10 = vand.u32 2147483648, %v2708_v53  ;;  %v2732_v61 = vand.u32 2147483647, %v2708_v53 }
 0x3c5   : > { %vm2728_vm10 = vweird.f32 %v2708_v53 }
 0x3c6   : > { %v2669_v26 = vadd.f32 %v2664_v20, %v2632_v15  ;;  %v2735_v19 = vor.u32 1.1754944e-38, %v2734_v10  ;;  %vm2733_vm12 = vcmp.eq.f32.partialorder %v2732_v61, 8.507059e+37  ;;  %v5403_v61 = vld [vmem:[#allocation12_spill] sm:$0xff] }
 0x3c8   : > { %v2695_v0 = vadd.f32 %v2690_v30, %v2669_v26 }
 0x3ca   : > { %v3120_v29 = vpop.eup %3119  ;;  %v2699_v37 = vadd.f32 %v2698_v25, %v2695_v0 }
 0x3cb   : > { %v2724_v51 = vmul.f32 %v3120_v29, %v2708_v53  ;;  %vm2729_vm9 = vweird.f32 %v3120_v29 }
 0x3cc   : > { %v2701_v44 = vsub.f32 0.0, %v2699_v37  ;;  %vm2730_vm11 = vmor %vm2728_vm10, %vm2729_vm9 }
 0x3cd   : > { %v2725_v55 = vsub.f32 1.0, %v2724_v51 }
 0x3ce   : > { %v2703_v38 = vmul.f32 1.442695, %v2701_v44 }
 0x3cf   : > { %v2726_v31 = vmul.f32 %v3120_v29, %v2725_v55 }
 0x3d0   : > { %3121 = vpow2.f32 %v2703_v38 }
 0x3d1   : > { %v2727_v54 = vadd.f32 %v3120_v29, %v2726_v31 }
 0x3d3   : > { %v2731_v58 = vsel %vm2730_vm11, %v3120_v29, %v2727_v54 }
 0x3d4   : > { %v5179_v41 = vsel %vm2733_vm12, %v2735_v19, %v2731_v58 }
 0x3d5   : > { %v2771_v32 = vrot.slane %v5179_v41, 2  ;;  %v2767_v11 = vrot.slane %v5179_v41, 1  ;;  %v2775_v23 = vrot.slane %v5179_v41, 3  ;;  %v2787_v22 = vrot.slane %v5179_v41, 6 }
 0x3d6   : > { %v3122_v46 = vpop.eup %3121  ;;  %v2783_v39 = vrot.slane %v5179_v41, 5  ;;  %v2779_v7 = vrot.slane %v5179_v41, 4  ;;  %v2791_v5 = vrot.slane %v5179_v41, 7 }
 0x3d7   : > { %2772 = vrot.lane.b32.xlu2 %v2771_v32, %s3257_s13  ;;  %2768 = vrot.lane.b32.xlu1 %v2767_v11, %s3258_s10  ;;  %v2707_v47 = vadd.f32 1.0, %v3122_v46 }
 0x3d9   : > { %3123 = vrcp.f32 %v2707_v47  ;;  %v2720_v14 = vand.u32 2147483648, %v2707_v47  ;;  %v2718_v33 = vand.u32 2147483647, %v2707_v47  ;;  %vm2714_vm14 = vweird.f32 %v2707_v47 }
 0x3db   : > { %v2721_v60 = vor.u32 1.1754944e-38, %v2720_v14  ;;  %vm2719_vm1 = vcmp.eq.f32.partialorder %v2718_v33, 8.507059e+37 }
 0x3df   : > { %2776 = vrot.lane.b32.xlu1 %v2775_v23, %s3259_s11  ;;  %v3124_v6 = vpop.eup %3123 }
 0x3e0   : > { %v2710_v28 = vmul.f32 %v3124_v6, %v2707_v47  ;;  %vm2715_vm13 = vweird.f32 %v3124_v6 }
 0x3e1   : > { %vm2716_vm15 = vmor %vm2714_vm14, %vm2715_vm13 }
 0x3e2   : > { %v2711_v62 = vsub.f32 1.0, %v2710_v28 }
 0x3e4   : > { %v2712_v21 = vmul.f32 %v3124_v6, %v2711_v62 }
 0x3e6   : > { %v2713_v12 = vadd.f32 %v3124_v6, %v2712_v21 }
 0x3e8   : > { %v2717_v36 = vsel %vm2716_vm15, %v3124_v6, %v2713_v12 }
 0x3e9   : > { %v2722_v1 = vsel %vm2719_vm1, %v2721_v60, %v2717_v36 }
 0x3ea   : > { %v2746_v56 = vrot.slane %v2722_v1, 3  ;;  %v2742_v9 = vrot.slane %v2722_v1, 2  ;;  %v2738_v57 = vrot.slane %v2722_v1, 1  ;;  %v2758_v42 = vrot.slane %v2722_v1, 6 }
 0x3eb   : > { %v2754_v4 = vrot.slane %v2722_v1, 5  ;;  %v2750_v2 = vrot.slane %v2722_v1, 4  ;;  %v2762_v30 = vrot.slane %v2722_v1, 7 }
 0x3ec   : > { %2747 = vrot.lane.b32.xlu1 %v2746_v56, %s3259_s11  ;;  %2743 = vrot.lane.b32.xlu2 %v2742_v9, %s3257_s13 }
 0x3ed   : > { %2739 = vrot.lane.b32.xlu0 %v2738_v57, %s3258_s10 }
 0x3f4   : > { %2788 = vrot.lane.b32.xlu1 %v2787_v22, %s3260_s12  ;;  %2784 = vrot.lane.b32.xlu2 %v2783_v39, %s3261_s18 }
 0x3f5   : > { %2780 = vrot.lane.b32.xlu0 %v2779_v7, %s3262_s21 }
 0x3fc   : > { %2759 = vrot.lane.b32.xlu1 %v2758_v42, %s3260_s12  ;;  %2755 = vrot.lane.b32.xlu2 %v2754_v4, %s3261_s18 }
 0x3fd   : > { %2751 = vrot.lane.b32.xlu0 %v2750_v2, %s3262_s21 }
 0x404   : > { %2763 = vrot.lane.b32.xlu2 %v2762_v30, %s3263_s9 }
 0x405   : > { %2792 = vrot.lane.b32.xlu0 %v2791_v5, %s3263_s9 }
 0x431   : > { %v2773_v43 = vpop.permute.xlu2 %2772 }
 0x446   : > { %v2744_v25 = vpop.permute.xlu2 %2743 }
 0x449   : > { %v2769_v17 = vpop.permute.xlu1 %2768 }
 0x44a   : > { %v2809_v27 = vsel %vm2795_vm2, %v5179_v41, %v2769_v17 }
 0x44b   : > { %v2810_v3 = vsel %vm2797_vm3, %v2809_v27, %v2773_v43 }
 0x44e   : > { %v2785_v59 = vpop.permute.xlu2 %2784 }
 0x451   : > { %v2777_v24 = vpop.permute.xlu1 %2776 }
 0x452   : > { %v2811_v20 = vsel %vm2799_vm4, %v2810_v3, %v2777_v24 }
 0x456   : > { %v2756_v18 = vpop.permute.xlu2 %2755 }
 0x45e   : > { %v2748_v13 = vpop.permute.xlu1 %2747  ;;  %v2764_v26 = vpop.permute.xlu2 %2763 }
 0x45f   : > { %v2740_v16 = vpop.permute.xlu0 %2739 }
 0x460   : > { %v2796_v49 = vsel %vm2795_vm2, %v2722_v1, %v2740_v16 }
 0x461   : > { %v2798_v45 = vsel %vm2797_vm3, %v2796_v49, %v2744_v25 }
 0x462   : > { %v2800_v35 = vsel %vm2799_vm4, %v2798_v45, %v2748_v13 }
 0x466   : > { %v2789_v8 = vpop.permute.xlu1 %2788 }
 0x467   : > { %v2781_v52 = vpop.permute.xlu0 %2780 }
 0x468   : > { %v2812_v40 = vsel %vm2801_vm5, %v2811_v20, %v2781_v52 }
 0x469   : > { %v2813_v48 = vsel %vm2803_vm6, %v2812_v40, %v2785_v59 }
 0x46a   : > { %v2814_v0 = vsel %vm2805_vm7, %v2813_v48, %v2789_v8 }
 0x46e   : > { %v2760_v50 = vpop.permute.xlu1 %2759 }
 0x46f   : > { %v2752_v63 = vpop.permute.xlu0 %2751 }
 0x470   : > { %v2802_v34 = vsel %vm2801_vm5, %v2800_v35, %v2752_v63 }
 0x471   : > { %v2804_v53 = vsel %vm2803_vm6, %v2802_v34, %v2756_v18 }
 0x472   : > { %v2806_v15 = vsel %vm2805_vm7, %v2804_v53, %v2760_v50 }
 0x473   : > { %v2808_v51 = vsel %vm2807_vm8, %v2806_v15, %v2764_v26 }
 0x474   : > { %v2816_v44 = vperm.slane %v2808_v51, 0 }
 0x477   : > { %v2793_v29 = vpop.permute.xlu0 %2792 }
 0x478   : > { %v2815_v37 = vsel %vm2807_vm8, %v2814_v0, %v2793_v29 }
 0x479   : > { %v2817_v55 = vperm.slane %v2815_v37, 0 }
 0x47b   : > { %v2820_v10 = vrot.slane %v2817_v55, 4 }
 0x47d   : > { %v2821_v31 = vsel %vm211_vm0, %v2816_v44, %v2820_v10 }
 0x47e   : > { %v2823_v38 = vmul.f32 %v2821_v31, %v5403_v61 }
 0x480   : > { %2824 = vst [vmem:[%s203_s5] sm:$0xff] %v2823_v38 }
 0x481   : > { %3197 = shalt.err (!%p3194_p11)
}
 0x482   : > { %3045 = dma.vmem_to_hbm [thread:$0]  (%p3353_p3), %s2840_s7, 128, %s2842_s8, %s2826_s2  }
 0x483 PF: > { %s2853_s4 = sand.u32 1, %s3228_s14   ;;  %p5404_p12 = scmp.ge.s32.totalorder %s3240_s17, 2 }
 0x484   : > { %s2854_s12 = scalar_lea.sflag [#allocation5], %s2853_s4 }
 0x485   : > { %p3056_p13 = pnand %p5404_p12, %p3322_p6 }
 0x487   : > { %p3057_p0 = pneg %p3056_p13 }
 0x489   : > { %3223 = dma.done.wait (%p3057_p0), %s2854_s12, 128  }
 0x48a   : > { %3225 = vsyncadd (%p3057_p0), %s2854_s12, 4294967168  ;;  %p18_p5 = scmp.ge.s32.totalorder %s3338_s25, 4   ;;  %s5405_s14 = smov %s3232_s15 }
 0x48b   : > { %s5406_s15 = smov %s3236_s16  ;;  %s5407_s16 = smov %s3348_s29 }
 0x48c   : > { %s5408_s17 = smov %s3338_s25  ;;  %20 = sbr.rel (!%p18_p5) target bundleno = 8 (0x8), region = 82 }
 0x491   :  { %2860 = vsyncpa [#allocation4], 1 }
 0x492   :  { %2862 = vsyncpa [#allocation4 + $0x1], 1 }
 0x493   :  { %2863 = vsyncpa [#allocation5], 1 }
 0x494   :  { %2865 = vsyncpa [#allocation5 + $0x1], 1 }
 0x495   :  { %2866 = vsyncpa [#allocation6], 1 }
 0x496   :  { %2868 = vsyncpa [#allocation6 + $0x1], 1 }

</bundles_post_ra>
